<compile_context>
chip_gen: v6e
topology: v6e:2x2x1
jax: 0.10.0
libtpu: 0.0.40
codegen_flags: <defaults>
</compile_context>

<pallas_src>
import jax
import jax.numpy as jnp
from jax.experimental import pallas as pl
from jax.experimental.pallas import tpu as pltpu

LATENT_DIM = 100
NUM_LABELS = 10
H1 = 200        # fc1 output
H2 = 1000       # fc2 output
H3 = 1200       # fc3 output
OUT_DIM = 784   # fc4 output

# Padded sizes (lane multiples of 128; label table rows padded to 16).
LATENT_P = 128
H1_P = 256
H3_P = 1280
OUT_P = 896
ONEHOT_P = 16


def _round_up(x, m):
    return (x + m - 1) // m * m


def generator_kernel(z_ref, oh_ref,
                     w1_ref, b1_ref,
                     w3a_ref, t3b_ref,
                     w4_ref, b4_ref,
                     out_ref):
    # fc1: Dropout(id) -> Linear(100->200) -> ReLU -> Dropout(id)
    z = z_ref[...].astype(jnp.bfloat16)
    h1 = jnp.dot(z, w1_ref[...], preferred_element_type=jnp.float32) + b1_ref[...]
    op1 = jnp.maximum(h1, 0.0).astype(jnp.bfloat16)

    # fc2 + label-half of fc3 + b3 all folded into the per-label table t3b:
    #   cat(op1, op2) @ W3 + b3 == op1 @ W3a + (relu(W2+b2) @ W3b + b3)[y]
    # The row selection is a tiny one-hot matmul against the resident table.
    oh = oh_ref[...]                                   # (TB, 16) bf16 one-hot
    h3 = (jnp.dot(op1, w3a_ref[...], preferred_element_type=jnp.float32)
          + jnp.dot(oh, t3b_ref[...], preferred_element_type=jnp.float32))
    op3 = jnp.maximum(h3, 0.0).astype(jnp.bfloat16)

    # fc4: Linear(1200->784) + Sigmoid (exp on EUP + approx reciprocal).
    h4 = jnp.dot(op3, w4_ref[...], preferred_element_type=jnp.float32) + b4_ref[...]
    sig = pl.reciprocal(1.0 + jnp.exp(-h4), approx=True)
    out_ref[...] = sig.astype(jnp.bfloat16)


def generator_forward(z, y, params):
    """z: (B, 100) float32 latent, y: (B,) int32 labels. Returns (B, 784) float32."""
    B = z.shape[0]

    # Batch tiling: rows per tile are a multiple of 16 (bf16 sublane pack),
    # at most 512, and there are always >= 2 grid steps so a v7x megacore
    # shards the batch axis across both TensorCores.
    B16 = _round_up(B, 16)
    num_tiles = max(2, pl.cdiv(B16, 512))
    TB = _round_up(pl.cdiv(B16, num_tiles), 16)
    B_pad = TB * num_tiles

    # Pad latent to lane multiple + batch-tile multiple (padded weight rows
    # are zero, so the zero padding is harmless).
    z_p = jnp.zeros((B_pad, LATENT_P), jnp.float32).at[:B, :LATENT_DIM].set(z)

    # Tiny one-hot labels (16 classes incl. padding rows of the table).
    oh = jax.nn.one_hot(y, ONEHOT_P, dtype=jnp.bfloat16)           # (B, 16)
    oh_p = jnp.zeros((B_pad, ONEHOT_P), jnp.bfloat16).at[:B].set(oh)

    grid = (num_tiles,)

    def batch_spec(width):
        return pl.BlockSpec((TB, width), lambda i: (i, 0))

    def const_spec(shape):
        # Same block every grid step -> stays resident in VMEM (no re-DMA).
        return pl.BlockSpec(shape, lambda i: (0, 0))

    flops_k = LATENT_P * H1_P + H1_P * H3_P + ONEHOT_P * H3_P + H3_P * OUT_P
    weight_bytes = 2 * (LATENT_P * H1_P + H1_P * H3_P + ONEHOT_P * H3_P
                        + H3_P * OUT_P) + 4 * (H1_P + OUT_P)
    cost = pl.CostEstimate(
        flops=2 * B_pad * flops_k,
        transcendentals=2 * B_pad * OUT_P,
        bytes_accessed=weight_bytes
        + B_pad * (LATENT_P * 4 + ONEHOT_P * 2 + OUT_P * 2),
    )

    out = pl.pallas_call(
        generator_kernel,
        out_shape=jax.ShapeDtypeStruct((B_pad, OUT_P), jnp.bfloat16),
        grid=grid,
        in_specs=[
            batch_spec(LATENT_P),                 # z
            batch_spec(ONEHOT_P),                 # one-hot labels
            const_spec((LATENT_P, H1_P)),         # w1
            const_spec((1, H1_P)),                # b1
            const_spec((H1_P, H3_P)),             # w3a (op1 half of W3)
            const_spec((ONEHOT_P, H3_P)),         # t3b = relu(W2+b2)@W3b + b3
            const_spec((H3_P, OUT_P)),            # w4
            const_spec((1, OUT_P)),               # b4
        ],
        out_specs=pl.BlockSpec((TB, OUT_P), lambda i: (i, 0)),
        compiler_params=pltpu.CompilerParams(
            dimension_semantics=("parallel",),
            vmem_limit_bytes=32 * 1024 * 1024),
        cost_estimate=cost,
    )(z_p, oh_p,
      params["w1"], params["b1"],
      params["w3a"], params["t3b"],
      params["w4"], params["b4"])

    return out[:B, :OUT_DIM].astype(jnp.float32)


def init_params(key):
    """nn.Linear-style init U(-1/sqrt(fan_in), 1/sqrt(fan_in)); weights stored
    padded + bf16, with fc2 and the label half of fc3 folded into a table."""
    def linear(k, fan_in, fan_out):
        kw, kb = jax.random.split(k)
        bound = 1.0 / jnp.sqrt(float(fan_in))
        w = jax.random.uniform(kw, (fan_in, fan_out), jnp.float32, -bound, bound)
        b = jax.random.uniform(kb, (fan_out,), jnp.float32, -bound, bound)
        return w, b

    k1, k2, k3, k4 = jax.random.split(key, 4)
    w1, b1 = linear(k1, LATENT_DIM, H1)        # (100, 200)
    w2, b2 = linear(k2, NUM_LABELS, H2)        # (10, 1000)
    w3, b3 = linear(k3, H1 + H2, H3)           # (1200, 1200)
    w4, b4 = linear(k4, H3, OUT_DIM)           # (1200, 784)

    def pad2(a, rows, cols):
        return jnp.zeros((rows, cols), a.dtype).at[:a.shape[0], :a.shape[1]].set(a)

    # Exact fold (fc2 input is one-hot):
    #   op2            = relu(onehot(y) @ W2 + b2) = relu(W2 + b2)[y]
    #   op2 @ W3b + b3 = (relu(W2 + b2) @ W3b + b3)[y] = t3b[y]
    t2 = jnp.maximum(w2 + b2[None, :], 0.0)                      # (10, 1000) f32
    t3b = jnp.dot(t2, w3[H1:]) + b3[None, :]                     # (10, 1200) f32

    return dict(
        w1=pad2(w1, LATENT_P, H1_P).astype(jnp.bfloat16),
        b1=pad2(b1[None, :], 1, H1_P),
        w3a=pad2(w3[:H1], H1_P, H3_P).astype(jnp.bfloat16),
        t3b=pad2(t3b, ONEHOT_P, H3_P).astype(jnp.bfloat16),
        w4=pad2(w4, H3_P, OUT_P).astype(jnp.bfloat16),
        b4=pad2(b4[None, :], 1, OUT_P),
    )


def reference_forward(z, y, params):
    """Plain-JAX reference mirroring the kernel math (same bf16 cast points)."""
    B = z.shape[0]
    z_p = jnp.zeros((B, LATENT_P), jnp.float32).at[:, :LATENT_DIM].set(z)
    h1 = (jnp.dot(z_p.astype(jnp.bfloat16), params["w1"],
                  preferred_element_type=jnp.float32) + params["b1"])
    op1 = jnp.maximum(h1, 0.0).astype(jnp.bfloat16)
    h3 = (jnp.dot(op1, params["w3a"], preferred_element_type=jnp.float32)
          + jnp.take(params["t3b"], y, axis=0).astype(jnp.float32))
    op3 = jnp.maximum(h3, 0.0).astype(jnp.bfloat16)
    h4 = jnp.dot(op3, params["w4"], preferred_element_type=jnp.float32) + params["b4"]
    out = jax.nn.sigmoid(h4).astype(jnp.bfloat16).astype(jnp.float32)
    return out[:, :OUT_DIM]


if __name__ == "__main__":
    key = jax.random.PRNGKey(0)
    k_params, k_z, k_y = jax.random.split(key, 3)

    batch = 8
    params = init_params(k_params)
    z = jax.random.normal(k_z, (batch, LATENT_DIM), jnp.float32)        # latent noise
    y = jax.random.randint(k_y, (batch,), 0, NUM_LABELS, jnp.int32)     # class labels

    out = jax.block_until_ready(generator_forward(z, y, params))
    assert out.shape == (batch, OUT_DIM) and out.dtype == jnp.float32

    ref = jax.block_until_ready(reference_forward(z, y, params))
    assert bool(jnp.max(jnp.abs(out - ref)) < 1e-2)
    assert bool(jnp.all(jnp.isfinite(out)))

    print("KERNEL_OK")
</pallas_src>

<mosaic_0001>
module attributes {stable_mosaic.version = 11 : i64} {
  func.func @generator_kernel(%arg0: i32, %arg1: memref<16x128xf32, #tpu.memory_space<vmem>>, %arg2: memref<16x16xbf16, #tpu.memory_space<vmem>>, %arg3: memref<128x256xbf16, #tpu.memory_space<vmem>>, %arg4: memref<1x256xf32, #tpu.memory_space<vmem>>, %arg5: memref<256x1280xbf16, #tpu.memory_space<vmem>>, %arg6: memref<16x1280xbf16, #tpu.memory_space<vmem>>, %arg7: memref<1280x896xbf16, #tpu.memory_space<vmem>>, %arg8: memref<1x896xf32, #tpu.memory_space<vmem>>, %arg9: memref<16x896xbf16, #tpu.memory_space<vmem>>) attributes {dimension_semantics = [#tpu.dimension_semantics<parallel>], iteration_bounds = array<i64: 2>, scalar_prefetch = 0 : i64, scratch_operands = 0 : i64, tpu.core_type = #tpu.core_type<tc>, window_params = [{transform_indices = @transform_0, window_bounds = array<i64: 16, 128>}, {transform_indices = @transform_1, window_bounds = array<i64: 16, 16>}, {pipeline_mode = #tpu.pipeline_mode<synchronous>, transform_indices = @transform_2, window_bounds = array<i64: 128, 256>}, {pipeline_mode = #tpu.pipeline_mode<synchronous>, transform_indices = @transform_3, window_bounds = array<i64: 1, 256>}, {pipeline_mode = #tpu.pipeline_mode<synchronous>, transform_indices = @transform_4, window_bounds = array<i64: 256, 1280>}, {pipeline_mode = #tpu.pipeline_mode<synchronous>, transform_indices = @transform_5, window_bounds = array<i64: 16, 1280>}, {pipeline_mode = #tpu.pipeline_mode<synchronous>, transform_indices = @transform_6, window_bounds = array<i64: 1280, 896>}, {pipeline_mode = #tpu.pipeline_mode<synchronous>, transform_indices = @transform_7, window_bounds = array<i64: 1, 896>}, {transform_indices = @transform_8, window_bounds = array<i64: 16, 896>}]} {
    %c0 = arith.constant 0 : index
    %c0_0 = arith.constant 0 : index
    %0 = vector.load %arg1[%c0, %c0_0] : memref<16x128xf32, #tpu.memory_space<vmem>>, vector<16x128xf32>
    %1 = arith.truncf %0 : vector<16x128xf32> to vector<16x128xbf16>
    %c0_1 = arith.constant 0 : index
    %c0_2 = arith.constant 0 : index
    %2 = vector.load %arg3[%c0_1, %c0_2] : memref<128x256xbf16, #tpu.memory_space<vmem>>, vector<128x256xbf16>
    %cst = arith.constant dense<0.000000e+00> : vector<16x256xf32>
    %3 = tpu.matmul %1, %2, %cst {dimension_numbers = #tpu.dot_dimension_numbers<[1], [0], [0], [1], [0, 0, 1, 1], [], []>} : vector<16x128xbf16>, vector<128x256xbf16>, vector<16x256xf32> -> vector<16x256xf32>
    %c0_3 = arith.constant 0 : index
    %c0_4 = arith.constant 0 : index
    %4 = vector.load %arg4[%c0_3, %c0_4] : memref<1x256xf32, #tpu.memory_space<vmem>>, vector<1x256xf32>
    %5 = vector.broadcast %4 : vector<1x256xf32> to vector<16x256xf32>
    %6 = arith.addf %3, %5 : vector<16x256xf32>
    %cst_5 = arith.constant 0.000000e+00 : f32
    %7 = vector.broadcast %cst_5 : f32 to vector<16x256xf32>
    %8 = arith.maximumf %6, %7 : vector<16x256xf32>
    %9 = arith.truncf %8 : vector<16x256xf32> to vector<16x256xbf16>
    %c0_6 = arith.constant 0 : index
    %c0_7 = arith.constant 0 : index
    %10 = vector.load %arg2[%c0_6, %c0_7] : memref<16x16xbf16, #tpu.memory_space<vmem>>, vector<16x16xbf16>
    %c0_8 = arith.constant 0 : index
    %c0_9 = arith.constant 0 : index
    %11 = vector.load %arg5[%c0_8, %c0_9] : memref<256x1280xbf16, #tpu.memory_space<vmem>>, vector<256x1280xbf16>
    %cst_10 = arith.constant dense<0.000000e+00> : vector<16x1280xf32>
    %12 = tpu.matmul %9, %11, %cst_10 {dimension_numbers = #tpu.dot_dimension_numbers<[1], [0], [0], [1], [0, 0, 1, 1], [], []>} : vector<16x256xbf16>, vector<256x1280xbf16>, vector<16x1280xf32> -> vector<16x1280xf32>
    %c0_11 = arith.constant 0 : index
    %c0_12 = arith.constant 0 : index
    %13 = vector.load %arg6[%c0_11, %c0_12] : memref<16x1280xbf16, #tpu.memory_space<vmem>>, vector<16x1280xbf16>
    %cst_13 = arith.constant dense<0.000000e+00> : vector<16x1280xf32>
    %14 = tpu.matmul %10, %13, %cst_13 {dimension_numbers = #tpu.dot_dimension_numbers<[1], [0], [0], [1], [0, 0, 1, 1], [], []>} : vector<16x16xbf16>, vector<16x1280xbf16>, vector<16x1280xf32> -> vector<16x1280xf32>
    %15 = arith.addf %12, %14 : vector<16x1280xf32>
    %cst_14 = arith.constant 0.000000e+00 : f32
    %16 = vector.broadcast %cst_14 : f32 to vector<16x1280xf32>
    %17 = arith.maximumf %15, %16 : vector<16x1280xf32>
    %18 = arith.truncf %17 : vector<16x1280xf32> to vector<16x1280xbf16>
    %c0_15 = arith.constant 0 : index
    %c0_16 = arith.constant 0 : index
    %19 = vector.load %arg7[%c0_15, %c0_16] : memref<1280x896xbf16, #tpu.memory_space<vmem>>, vector<1280x896xbf16>
    %cst_17 = arith.constant dense<0.000000e+00> : vector<16x896xf32>
    %20 = tpu.matmul %18, %19, %cst_17 {dimension_numbers = #tpu.dot_dimension_numbers<[1], [0], [0], [1], [0, 0, 1, 1], [], []>} : vector<16x1280xbf16>, vector<1280x896xbf16>, vector<16x896xf32> -> vector<16x896xf32>
    %c0_18 = arith.constant 0 : index
    %c0_19 = arith.constant 0 : index
    %21 = vector.load %arg8[%c0_18, %c0_19] : memref<1x896xf32, #tpu.memory_space<vmem>>, vector<1x896xf32>
    %22 = vector.broadcast %21 : vector<1x896xf32> to vector<16x896xf32>
    %23 = arith.addf %20, %22 : vector<16x896xf32>
    %cst_20 = arith.constant 0.000000e+00 : f32
    %24 = vector.broadcast %cst_20 : f32 to vector<16x896xf32>
    %25 = arith.subf %24, %23 : vector<16x896xf32>
    %26 = math.exp %25 : vector<16x896xf32>
    %cst_21 = arith.constant 1.000000e+00 : f32
    %27 = vector.broadcast %cst_21 : f32 to vector<16x896xf32>
    %28 = arith.addf %27, %26 : vector<16x896xf32>
    %29 = tpu.reciprocal %28 {approx = true} : vector<16x896xf32> -> vector<16x896xf32>
    %30 = arith.truncf %29 : vector<16x896xf32> to vector<16x896xbf16>
    %c0_22 = arith.constant 0 : index
    %c0_23 = arith.constant 0 : index
    %31 = vector.load %arg9[%c0_22, %c0_23] : memref<16x896xbf16, #tpu.memory_space<vmem>>, vector<16x896xbf16>
    tpu.vector_store %arg9[%c0_22, %c0_23], %30 {strides = array<i32>} : memref<16x896xbf16, #tpu.memory_space<vmem>>, vector<16x896xbf16>,
    return
  }
  func.func @transform_0(%arg0: i32) -> (i32, i32) {
    %c0_i32 = arith.constant 0 : i32
    %c0_i32_0 = arith.constant 0 : i32
    return %arg0, %c0_i32 : i32, i32
  }
  func.func @transform_1(%arg0: i32) -> (i32, i32) {
    %c0_i32 = arith.constant 0 : i32
    %c0_i32_0 = arith.constant 0 : i32
    return %arg0, %c0_i32 : i32, i32
  }
  func.func @transform_2(%arg0: i32) -> (i32, i32) {
    %c0_i32 = arith.constant 0 : i32
    %c0_i32_0 = arith.constant 0 : i32
    %c0_i32_1 = arith.constant 0 : i32
    return %c0_i32, %c0_i32_0 : i32, i32
  }
  func.func @transform_3(%arg0: i32) -> (i32, i32) {
    %c0_i32 = arith.constant 0 : i32
    %c0_i32_0 = arith.constant 0 : i32
    %c0_i32_1 = arith.constant 0 : i32
    return %c0_i32, %c0_i32_0 : i32, i32
  }
  func.func @transform_4(%arg0: i32) -> (i32, i32) {
    %c0_i32 = arith.constant 0 : i32
    %c0_i32_0 = arith.constant 0 : i32
    %c0_i32_1 = arith.constant 0 : i32
    return %c0_i32, %c0_i32_0 : i32, i32
  }
  func.func @transform_5(%arg0: i32) -> (i32, i32) {
    %c0_i32 = arith.constant 0 : i32
    %c0_i32_0 = arith.constant 0 : i32
    %c0_i32_1 = arith.constant 0 : i32
    return %c0_i32, %c0_i32_0 : i32, i32
  }
  func.func @transform_6(%arg0: i32) -> (i32, i32) {
    %c0_i32 = arith.constant 0 : i32
    %c0_i32_0 = arith.constant 0 : i32
    %c0_i32_1 = arith.constant 0 : i32
    return %c0_i32, %c0_i32_0 : i32, i32
  }
  func.func @transform_7(%arg0: i32) -> (i32, i32) {
    %c0_i32 = arith.constant 0 : i32
    %c0_i32_0 = arith.constant 0 : i32
    %c0_i32_1 = arith.constant 0 : i32
    return %c0_i32, %c0_i32_0 : i32, i32
  }
  func.func @transform_8(%arg0: i32) -> (i32, i32) {
    %c0_i32 = arith.constant 0 : i32
    %c0_i32_0 = arith.constant 0 : i32
    return %arg0, %c0_i32 : i32, i32
  }
}

</mosaic_0001>

<bundles_post_ra>
// kernel: tpu_custom_call.1
= control target key start
LH: loop header
LB: loop body
LE: loop exit
PB: predicated region body
PF: predicated region fallthrough
CT: control target
= control target key end

     0   :  { %s9706_s0 = inlined_call_operand.hbm [shape: f32[32,128], index: 0, kind: input, shape index: {}]   ;;  %s9707_s1 = inlined_call_operand.vmem [shape: bf16[32,16], index: 1, kind: input, shape index: {}]   ;;  %s9708_s2 = inlined_call_operand.hbm [shape: bf16[128,256], index: 2, kind: input, shape index: {}]   ;;  %s9709_s3 = inlined_call_operand.hbm [shape: f32[1,256], index: 3, kind: input, shape index: {}]   ;;  %s9710_s4 = inlined_call_operand.hbm [shape: bf16[256,1280], index: 4, kind: input, shape index: {}]   ;;  %s9711_s5 = inlined_call_operand.hbm [shape: bf16[16,1280], index: 5, kind: input, shape index: {}]   ;;  %s9712_s6 = inlined_call_operand.hbm [shape: bf16[1280,896], index: 6, kind: input, shape index: {}]   ;;  %s9713_s7 = inlined_call_operand.hbm [shape: f32[1,896], index: 7, kind: input, shape index: {}]   ;;  %s9714_s8 = inlined_call_operand.hbm [shape: bf16[32,896], index: 8, kind: output, shape index: {}]  }
   0x1   :  { %9721 = sst [smem:[#allocation20_spill]] %s9708_s2 }
   0x2   :  { %9722 = sst [smem:[#allocation21_spill]] %s9709_s3 }
   0x3   :  { %13 = vsyncpa [#allocation3], 0 }
   0x4   :  { %15 = vsyncpa [#allocation3 + $0x1], 0 }
   0x5   :  { %16 = vsyncpa [#allocation6], 0 }
   0x6   :  { %17 = vsyncpa [#allocation9], 0 }
   0x7   :  { %18 = vsyncpa [#allocation12], 0 }
   0x8   :  { %19 = vsyncpa [#allocation4], 0 }
   0x9   :  { %21 = vsyncpa [#allocation4 + $0x1], 0  ;;  %s9254_s27 = smov 0   ;;  %s9256_s28 = smov 0  }
   0xa   :  { %s9258_s29 = smov 0   ;;  %s9260_s30 = smov 0  }
   0xb LB: > { %s9192_s9 = smov [#allocation5]   ;;  %s9275_s11 = sadd.s32 4294967295, %s9190_s30   ;;  %s9190_s30 = sphi %s9260_s30, %s9750_s30   ;;  %s9186_s29 = sphi %s9258_s29, %s9749_s29   ;;  %s9182_s28 = sphi %s9256_s28, %s9748_s28   ;;  %s9178_s27 = sphi %s9254_s27, %s9747_s27  }
   0xc   : > { %s248_s10 = sshll.u32 %s9192_s9, 4  ;;  %p6770_p0 = scmp.ge.s32.totalorder %s9190_s30, 1  ;;  %s249_s10 = int_to_ptr.vmem [resolvable:$true] %s248_s10 }
   0xd   : > { %p9716_p1 = scmp.eq.s32.totalorder %s9275_s11, 0  ;;  %p236_p2 = scmp.lt.s32.totalorder %s9190_s30, 3 }
   0xe   : > { %s9193_s13 = smov [#allocation8]   ;;  %s9194_s16 = smov [#allocation11]  }
   0xf   : > { %p9280_p3 = pnand %p6770_p0, %p236_p2  ;;  %s272_s14 = sshll.u32 %s9193_s13, 4  ;;  %s9293_s14 = int_to_ptr.vmem [resolvable:$true] %s272_s14 }
  0x10   : > { %s9295_s17 = sshll.u32 %s9194_s16, 4  ;;  %s8941_s19 = scalar_lea.vmem %s249_s10, 2048  ;;  %s299_s17 = int_to_ptr.vmem [resolvable:$true] %s9295_s17 }
  0x11   : > { %s9723_s12 = scalar_select %p9280_p3, 1, 0 }
  0x12   : > { %p7705_p5 = pneg %p9280_p3  ;;  %p8942_p8 = scmp.ne.s32.totalorder %s249_s10, %s8941_s19 }
  0x13   : > { %p8949_p11 = scmp.lt.s32.totalorder %s249_s10, %s249_s10  ;;  %p8950_p12 = scmp.lt.s32.totalorder %s8941_s19, %s8941_s19 }
  0x14   : > { %p9289_p6 = pnand %p7705_p5, %p9716_p1 }
  0x15   : > { %p8951_p13 = por %p8950_p12, %p8949_p11 }
  0x16   : > { %p9299_p7 = pneg %p9289_p6 }
  0x18   : > { %p8944_p9 = pnand %p8942_p8, %p9299_p7 }
  0x1a   : > { %p8945_p10 = pneg %p8944_p9 }
  0x1c   : > { %p8952_p0 = pnand %p8951_p13, %p8945_p10 }
  0x1e   : > { %8955 = shalt.err (!%p8952_p0)
}
  0x1f   : > { %s9715_s20 = smov 128   ;;  %s9718_s21 = smov 8  }
  0x20   : > { %s9726_s2 = sld [smem:[#allocation20_spill]]  ;;  %s8967_s24 = scalar_lea.vmem %s9293_s14, 20480 }
  0x21   : > { %p8968_p2 = scmp.ne.s32.totalorder %s9293_s14, %s8967_s24  ;;  %p8975_p9 = scmp.lt.s32.totalorder %s9293_s14, %s9293_s14 }
  0x22   : > { %p8976_p10 = scmp.lt.s32.totalorder %s8967_s24, %s8967_s24 }
  0x23   : > { %p8970_p5 = pnand %p8968_p2, %p9299_p7 }
  0x24   : > { %p8977_p11 = por %p8976_p10, %p8975_p9 }
  0x25   : > { %p8971_p8 = pneg %p8970_p5 }
  0x26   : > { %7708 = dma.hbm_to_vmem [thread:$0]  (!%p9289_p6), %s9726_s2, 2048, %s249_s10, [#allocation6], %s9715_s20, %s9715_s20, %s9718_s21  }
  0x27   : > { %p8978_p12 = pnand %p8977_p11, %p8971_p8 }
  0x29   : > { %8981 = shalt.err (!%p8978_p12)
}
  0x2a   : > { %s9197_s25 = smov 640   ;;  %s9198_s26 = smov 40  }
  0x2b   : > { %7714 = dma.hbm_to_vmem [thread:$0]  (!%p9289_p6), %s9710_s4, 20480, %s9293_s14, [#allocation9], %s9197_s25, %s9197_s25, %s9198_s26  }
  0x2c   : > { %s8993_s13 = scalar_lea.vmem %s299_s17, 71680  ;;  %p9001_p5 = scmp.lt.s32.totalorder %s299_s17, %s299_s17 }
  0x2d   : > { %p8994_p13 = scmp.ne.s32.totalorder %s299_s17, %s8993_s13  ;;  %p9002_p8 = scmp.lt.s32.totalorder %s8993_s13, %s8993_s13 }
  0x2f   : > { %p8996_p0 = pnand %p8994_p13, %p9299_p7  ;;  %p9003_p9 = por %p9002_p8, %p9001_p5 }
  0x31   : > { %p8997_p2 = pneg %p8996_p0 }
  0x33   : > { %p9004_p10 = pnand %p9003_p9, %p8997_p2 }
  0x35   : > { %9007 = shalt.err (!%p9004_p10)
}
  0x36   : > { %s9199_s16 = smov 448   ;;  %s9200_s19 = smov 28  }
  0x37   : > { %7720 = dma.hbm_to_vmem [thread:$0]  (!%p9289_p6), %s9712_s6, 71680, %s299_s17, [#allocation12], %s9199_s16, %s9199_s16, %s9200_s19  }
  0x38   : > { %s9201_s14 = smov [#allocation7]   ;;  %s9202_s9 = smov [#allocation10]  }
  0x39   : > { %s262_s24 = sshll.u32 %s9201_s14, 4  ;;  %s285_s10 = sshll.u32 %s9202_s9, 4  ;;  %s263_s24 = int_to_ptr.vmem [resolvable:$true] %s262_s24  ;;  %s286_s10 = int_to_ptr.vmem [resolvable:$true] %s285_s10 }
  0x3a   : > { %s9019_s20 = scalar_lea.vmem %s263_s24, 32  ;;  %p9027_p0 = scmp.lt.s32.totalorder %s263_s24, %s263_s24 }
  0x3b   : > { %p9020_p11 = scmp.ne.s32.totalorder %s263_s24, %s9019_s20  ;;  %p9028_p2 = scmp.lt.s32.totalorder %s9019_s20, %s9019_s20 }
  0x3d   : > { %p9022_p12 = pnand %p9020_p11, %p9299_p7  ;;  %p9029_p5 = por %p9028_p2, %p9027_p0 }
  0x3f   : > { %p9023_p13 = pneg %p9022_p12 }
  0x41   : > { %p9030_p8 = pnand %p9029_p5, %p9023_p13 }
  0x43   : > { %9033 = shalt.err (!%p9030_p8)
}
  0x44   : > { %s9727_s3 = sld [smem:[#allocation21_spill]]  ;;  %s9045_s17 = scalar_lea.vmem %s286_s10, 1280 }
  0x45   : > { %p9046_p9 = scmp.ne.s32.totalorder %s286_s10, %s9045_s17  ;;  %p9053_p11 = scmp.lt.s32.totalorder %s286_s10, %s286_s10 }
  0x46   : > { %p9054_p12 = scmp.lt.s32.totalorder %s9045_s17, %s9045_s17 }
  0x47   : > { %p9048_p10 = pnand %p9046_p9, %p9299_p7 }
  0x48   : > { %p9055_p1 = por %p9054_p12, %p9053_p11 }
  0x49   : > { %p9049_p4 = pneg %p9048_p10 }
  0x4a   : > { %7711 = dma.hbm_to_vmem [thread:$0]  (!%p9289_p6), %s9727_s3, 32, %s263_s24, [#allocation6]  }
  0x4b   : > { %p9056_p3 = pnand %p9055_p1, %p9049_p4 }
  0x4d   : > { %9059 = shalt.err (!%p9056_p3)
}
  0x4e   : > { %7717 = dma.hbm_to_vmem [thread:$0]  (!%p9289_p6), %s9711_s5, 1280, %s286_s10, [#allocation9], %s9197_s25, %s9197_s25, %s9198_s26  }
  0x4f   : > { %s9203_s19 = smov [#allocation13]  }
  0x50   : > { %s312_s23 = sshll.u32 %s9203_s19, 4  ;;  %s313_s23 = int_to_ptr.vmem [resolvable:$true] %s312_s23 }
  0x51   : > { %s9071_s14 = scalar_lea.vmem %s313_s23, 112  ;;  %s9078_s24 = scalar_lea.vmem %s313_s23, 128 }
  0x52   : > { %p9072_p13 = scmp.ne.s32.totalorder %s313_s23, %s9071_s14  ;;  %p9079_p1 = scmp.lt.s32.totalorder %s313_s23, %s313_s23 }
  0x53   : > { %p9080_p3 = scmp.lt.s32.totalorder %s9078_s24, %s9071_s14 }
  0x54   : > { %p9074_p0 = pnand %p9072_p13, %p9299_p7 }
  0x55   : > { %p9081_p4 = por %p9080_p3, %p9079_p1 }
  0x56   : > { %p9075_p2 = pneg %p9074_p0 }
  0x58   : > { %p9082_p5 = pnand %p9081_p4, %p9075_p2 }
  0x5a   : > { %9085 = shalt.err (!%p9082_p5)
}
  0x5b   : > { %7723 = dma.hbm_to_vmem [thread:$0]  (!%p9289_p6), %s9713_s7, 112, %s313_s23, [#allocation12]  }
  0x5c   : > { %s6769_s18 = sadd.s32 4294967294, %s9190_s30   ;;  %s9362_s15 = sadd.s32 1, %s9190_s30  }
  0x5d   : > { %s31_s25 = ssub.s32 %s9190_s30, %s9362_s15  ;;  %s34_s26 = sadd.s32 1, %s9186_s29 }
  0x5e   : > { %p32_p7 = scmp.eq.s32.totalorder %s31_s25, 0  ;;  %p41_p8 = scmp.ne.s32.totalorder %s9186_s29, %s9182_s28 }
  0x5f   : > { %p42_p9 = scmp.eq.s32.totalorder %s9190_s30, 0  ;;  %p47_p10 = scmp.ne.s32.totalorder %s9182_s28, %s9178_s27 }
  0x60   : > { %s9373_s10 = scalar_select %p32_p7, %s9186_s29, %s34_s26  }
  0x61   : > { %p9375_p11 = por %p42_p9, %p41_p8  ;;  %p9729_p12 = scmp.eq.s32.totalorder %s9275_s11, 0 }
  0x62   : > { %p223_p13 = scmp.eq.s32.totalorder %s9275_s11, 1  ;;  %p229_p0 = scmp.eq.s32.totalorder %s6769_s18, 1 }
  0x63   : > { %p9381_p6 = por %p9729_p12, %p47_p10  ;;  %p7738_p2 = scmp.lt.s32.totalorder %s9190_s30, 2 }
  0x64   : > { %s323_s20 = sand.u32 1, %s9186_s29   ;;  %p9388_p1 = por %p223_p13, %p41_p8 }
  0x65   : > { %s9730_s17 = scalar_select %p9381_p6, 1, 0 }
  0x66   : > { %s9731_s16 = scalar_select %p9388_p1, 1, 0 }
  0x67   : > { %p9392_p3 = por %p229_p0, %p47_p10  ;;  %s6778_s23 = sshll.u32 %s323_s20, 4 }
  0x68   : > { %s7556_s14 = sshll.u32 %s9190_s30, 8  ;;  %s327_s18 = scalar_lea.vmem [#allocation2], %s6778_s23 }
  0x69   : > { %s9732_s19 = scalar_select %p9392_p3, 1, 0 }
  0x6a   : > { %s9400_s13 = scalar_lea.hbm %s9706_s0, %s7556_s14  ;;  %s334_s25 = sshll.u32 %s327_s18, 4  ;;  %s9402_s25 = int_to_ptr.vmem [resolvable:$true] %s334_s25 }
  0x6b   : > { %p9406_p4 = pnand %p7738_p2, %p9375_p11  ;;  %s9410_s21 = scalar_lea.sflag [#allocation3], %s323_s20 }
  0x6c   : > { %s9086_s2 = scalar_lea.hbm %s9400_s13, 256  ;;  %s9091_s23 = scalar_lea.hbm %s9706_s0, 512 }
  0x6d   : > { %p9087_p5 = scmp.ne.s32.totalorder %s9400_s13, %s9086_s2  ;;  %p9088_p7 = pneg %p9406_p4 }
  0x6e   : > { %p9092_p10 = scmp.lt.s32.totalorder %s9400_s13, %s9706_s0  ;;  %p9093_p11 = scmp.lt.s32.totalorder %s9091_s23, %s9086_s2 }
  0x6f   : > { %p9089_p8 = pnand %p9088_p7, %p9087_p5 }
  0x70   : > { %p9094_p12 = por %p9093_p11, %p9092_p10 }
  0x71   : > { %p9090_p9 = pneg %p9089_p8 }
  0x73   : > { %p9095_p13 = pnand %p9094_p12, %p9090_p9 }
  0x75   : > { %9098 = shalt.err (!%p9095_p13)
}
  0x76   : > { %s9099_s22 = scalar_lea.vmem %s9402_s25, 256  ;;  %s9204_s20 = smov [#allocation2]  }
  0x77   : > { %p9100_p0 = scmp.ne.s32.totalorder %s9402_s25, %s9099_s22  ;;  %s9104_s3 = sshll.u32 %s9204_s20, 4  ;;  %s9105_s3 = int_to_ptr.vmem [resolvable:$false] %s9104_s3 }
  0x78   : > { %s9106_s14 = scalar_lea.vmem %s9105_s3, 512  ;;  %p9107_p8 = scmp.lt.s32.totalorder %s9402_s25, %s9105_s3 }
  0x79   : > { %p9102_p2 = pnand %p9100_p0, %p9088_p7  ;;  %p9108_p3 = scmp.lt.s32.totalorder %s9106_s14, %s9099_s22 }
  0x7b   : > { %p9103_p5 = pneg %p9102_p2  ;;  %p9109_p1 = por %p9108_p3, %p9107_p8 }
  0x7d   : > { %p9110_p6 = pnand %p9109_p1, %p9103_p5 }
  0x7f   : > { %9113 = shalt.err (!%p9110_p6)
}
  0x80   : > { %s9734_s2 = smov 8   ;;  %s9735_s24 = smov 128  }
  0x81   : > { %7727 = dma.hbm_to_vmem [thread:$0]  (!%p9406_p4), %s9400_s13, 256, %s9402_s25, %s9410_s21, %s9735_s24, %s9735_s24, %s9734_s2  }
  0x82   : > { %p9736_p7 = scmp.ne.s32.totalorder %s9723_s12, 0 }
  0x83   : > { %s9437_s23 = sand.u32 (!%p9736_p7), 1, %s9182_s28   ;;  %p9737_p6 = scmp.ne.s32.totalorder (!%p9736_p7), %s9730_s17, 0 }
  0x84   : > { %355 = sbr.rel (%p9736_p7) target bundleno = 1360 (0x550), region = 52  ;;  %s6782_s3 = sshll.u32 (!%p9736_p7), %s9437_s23, 4 }
  0x85   : > { %s358_s9 = scalar_lea.sflag (!%p9736_p7), [#allocation3], %s9437_s23  ;;  %s9441_s18 = scalar_lea.vmem (!%p9736_p7), [#allocation2], %s6782_s3 }
  0x89   : > { %9157 = dma.done.wait (%p9737_p6), %s358_s9, 256  }
  0x8a   : > { %9159 = vsyncadd (%p9737_p6), %s358_s9, 4294967040  ;;  %p9738_p1 = scmp.eq.s32.totalorder %s9275_s11, 0 }
  0x8c   : > { %9161 = dma.done.wait (%p9738_p1), [#allocation6], 2080   ;;  %p9739_p3 = pmov %p9738_p1 }
  0x8d   : > { %p9740_p4 = pmov %p9738_p1 }
  0x8e   : > { %9163 = vsyncadd (%p9739_p3), [#allocation6], 4294965216 }
  0x8f   : > { %9165 = dma.done.wait (%p9740_p4), [#allocation9], 21760   ;;  %p9741_p9 = pmov %p9738_p1 }
  0x90   : > { %p9742_p10 = pmov %p9738_p1 }
  0x91   : > { %9167 = vsyncadd (%p9741_p9), [#allocation9], 4294945536 }
  0x92   : > { %9169 = dma.done.wait (%p9742_p10), [#allocation12], 71792   ;;  %p9743_p11 = pmov %p9738_p1 }
  0x93   : > { %v9205_v0 = vmov 0   ;;  %s6789_s12 = sshll.u32 %s9275_s11, 1  ;;  %v7793_v1 = vld [vmem:[#allocation5 + $0x74] ss:$8 sps:$4 sm:$0xff]   ;;  %v7795_v2 = vld [vmem:[#allocation5 + $0x70] ss:$8 sps:$4 sm:$0xff]  }
  0x94   : > { %9171 = vsyncadd (%p9743_p11), [#allocation12], 4294895504  ;;  %575 = vmatprep.mubr.bf16.mxu0 %v9205_v0  ;;  %855 = vmatprep.mubr.bf16.mxu1 %v9205_v0  ;;  %p425_p12 = scmp.lt.s32.totalorder %s6789_s12, 3  ;;  %v7796_v3 = vld [vmem:[#allocation5 + $0x64] ss:$8 sps:$4 sm:$0xff]   ;;  %vm819_vm0 = vcmask 130048  }
  0x95   : > { %543 = vmatprep.subr.bf16.mxu0 %v7793_v1  ;;  %v7798_v4 = vld [vmem:[#allocation5 + $0x60] ss:$8 sps:$4 sm:$0xff]   ;;  %v7799_v5 = vld [vmem:[#allocation5 + $0x54] ss:$8 sps:$4 sm:$0xff]   ;;  %v7801_v6 = vld [vmem:[#allocation5 + $0x50] ss:$8 sps:$4 sm:$0xff]  }
  0x96   : > { %544 = vmatpush1.bf16.msra.mxu0 %v7795_v2  ;;  %s9752_s12 = smov (!%p425_p12, %s6789_s12), 3  ;;  %v7802_v7 = vld [vmem:[#allocation5 + $0x44] ss:$8 sps:$4 sm:$0xff]   ;;  %v7804_v8 = vld [vmem:[#allocation5 + $0x40] ss:$8 sps:$4 sm:$0xff]   ;;  %s7675_s26 = smul.u32 56, %s9437_s23 }
  0x97   : > { %545 = vmatprep.subr.bf16.mxu0 %v7796_v3  ;;  %s6790_s21 = sshll.u32 %s9752_s12, 2  ;;  %v7805_v9 = vld [vmem:[#allocation5 + $0x34] ss:$8 sps:$4 sm:$0xff]   ;;  %v7817_v10 = vld [vmem:[#allocation10 + $0x4] ss:$40 sps:$4 sm:$0xff]   ;;  %s7676_s20 = smul.u32 896, %s9275_s11 }
  0x98   : > { %s428_s25 = scalar_lea.vmem %s9707_s1, %s6790_s21  ;;  %v7819_v11 = vld [vmem:[#allocation10] ss:$40 sps:$4 sm:$0xff]   ;;  %v7807_v12 = vld [vmem:[#allocation5 + $0x30] ss:$8 sps:$4 sm:$0xff]   ;;  %837 = vmatprep.subr.bf16.mxu1 %v7817_v10  ;;  %v7811_v19 = vld [vmem:[#allocation5 + $0x14] ss:$8 sps:$4 sm:$0xff]  }
  0x99   : > { %v9465_v13 = vld [vmem:[%s428_s25] sm:$0xff]   ;;  %v7823_v14 = vld [vmem:[#allocation10 + $0xc] ss:$40 sps:$4 sm:$0xff]   ;;  %838 = vmatpush1.bf16.msra.mxu1 %v7819_v11  ;;  %v7821_v15 = vld [vmem:[#allocation10 + $0x8] ss:$40 sps:$4 sm:$0xff]   ;;  %s9620_s22 = scalar_lea.vmem [#allocation14], %s7675_s26  ;;  %s9660_s3 = scalar_lea.hbm %s9714_s8, %s7676_s20 }
  0x9a   : > { %546 = vmatpush1.bf16.msra.mxu0 %v7798_v4  ;;  %v7808_v16 = vld [vmem:[#allocation5 + $0x24] ss:$8 sps:$4 sm:$0xff]   ;;  %880 = vmatprep.subr.bf16.mxu1 %v7823_v14  ;;  %v7826_v17 = vld [vmem:[#allocation10 + $0x14] ss:$40 sps:$4 sm:$0xff]   ;;  %v7824_v21 = vld [vmem:[#allocation10 + $0x10] ss:$40 sps:$4 sm:$0xff]  }
  0x9b   : > { %547 = vmatprep.subr.bf16.mxu0 %v7799_v5  ;;  %v7810_v18 = vld [vmem:[#allocation5 + $0x20] ss:$8 sps:$4 sm:$0xff]   ;;  %v7813_v20 = vld [vmem:[#allocation5 + $0x10] ss:$8 sps:$4 sm:$0xff]   ;;  %v7814_v22 = vld [vmem:[#allocation5 + $0x4] ss:$8 sps:$4 sm:$0xff]  }
  0x9c   : > { %6818 = vmatmul.mubr.msk.bf16.vlgmr.msra.gmra.mxu1 %vm819_vm0, %v9465_v13  ;;  %v7829_v23 = vld [vmem:[#allocation10 + $0x1c] ss:$40 sps:$4 sm:$0xff]   ;;  %v7827_v29 = vld [vmem:[#allocation10 + $0x18] ss:$40 sps:$4 sm:$0xff]   ;;  %v7844_v42 = vld [vmem:[#allocation8 + $0x1ec] ss:$40 sps:$4 sm:$0xff]  }
  0x9d   : > { %881 = vmatpush1.bf16.msra.mxu1 %v7821_v15  ;;  %898 = vmatprep.mubr.bf16.mxu1 %v9205_v0  ;;  %v7816_v24 = vld [vmem:[#allocation5] ss:$8 sps:$4 sm:$0xff]   ;;  %v7833_v31 = vld [vmem:[#allocation8 + $0x230] ss:$40 sps:$4 sm:$0xff]   ;;  %v7856_v50 = vld [vmem:[#allocation8 + $0x14c] ss:$40 sps:$4 sm:$0xff]  }
  0x9e   : > { %548 = vmatpush1.bf16.msra.mxu0 %v7801_v6  ;;  %923 = vmatprep.subr.bf16.mxu1 %v7826_v17  ;;  %v432_v25 = vld [vmem:[%s9441_s18] sm:$0xff]  ;;  %v433_v26 = vld [vmem:[%s9441_s18 + $0x8] sm:$0xff]  ;;  %s6627_s14 = sshll.u32 %s9620_s22, 4  ;;  %s6613_s9 = scalar_lea.sflag [#allocation4], %s9437_s23  ;;  %s9662_s14 = int_to_ptr.vmem [resolvable:$true] %s6627_s14 }
  0x9f   : > { %549 = vmatprep.subr.bf16.mxu0 %v7802_v7  ;;  %v7835_v27 = vld [vmem:[#allocation8 + $0x234] ss:$40 sps:$4 sm:$0xff]   ;;  %v434_v28 = vpack.c.bf16 %v433_v26, %v432_v25  ;;  %v7832_v30 = vld [vmem:[#allocation10 + $0x24] ss:$40 sps:$4 sm:$0xff]   ;;  %v7839_v33 = vld [vmem:[#allocation8 + $0x1e0] ss:$40 sps:$4 sm:$0xff]  }
  0xa0   : > { %v7841_v32 = vld [vmem:[#allocation8 + $0x1e4] ss:$40 sps:$4 sm:$0xff]   ;;  %v7847_v34 = vld [vmem:[#allocation8 + $0x194] ss:$40 sps:$4 sm:$0xff]   ;;  %v7830_v35 = vld [vmem:[#allocation10 + $0x20] ss:$40 sps:$4 sm:$0xff]  }
  0xa1   : > { %v7838_v36 = vld [vmem:[#allocation8 + $0x23c] ss:$40 sps:$4 sm:$0xff]   ;;  %v7845_v37 = vld [vmem:[#allocation8 + $0x190] ss:$40 sps:$4 sm:$0xff]   ;;  %v7851_v39 = vld [vmem:[#allocation8 + $0x140] ss:$40 sps:$4 sm:$0xff]  }
  0xa2   : > { %550 = vmatpush1.bf16.msra.mxu0 %v7804_v8  ;;  %v7853_v38 = vld [vmem:[#allocation8 + $0x144] ss:$40 sps:$4 sm:$0xff]   ;;  %v7859_v40 = vld [vmem:[#allocation8 + $0xf4] ss:$40 sps:$4 sm:$0xff]   ;;  %v7836_v41 = vld [vmem:[#allocation8 + $0x238] ss:$40 sps:$4 sm:$0xff]  }
  0xa3   : > { %551 = vmatprep.subr.bf16.mxu0 %v7805_v9  ;;  %v7857_v43 = vld [vmem:[#allocation8 + $0xf0] ss:$40 sps:$4 sm:$0xff]   ;;  %v7865_v44 = vld [vmem:[#allocation8 + $0xa4] ss:$40 sps:$4 sm:$0xff]   ;;  %v7863_v47 = vld [vmem:[#allocation8 + $0xa0] ss:$40 sps:$4 sm:$0xff]  }
  0xa4   : > { %6819 = vmatmul.mubr.msk.bf16.vlgmr.msra.gmra.mxu1 %vm819_vm0, %v9465_v13  ;;  %v7842_v45 = vld [vmem:[#allocation8 + $0x1e8] ss:$40 sps:$4 sm:$0xff]   ;;  %v7850_v46 = vld [vmem:[#allocation8 + $0x19c] ss:$40 sps:$4 sm:$0xff]   ;;  %v7848_v48 = vld [vmem:[#allocation8 + $0x198] ss:$40 sps:$4 sm:$0xff]  }
  0xa5   : > { %924 = vmatpush1.bf16.msra.mxu1 %v7824_v21  ;;  %941 = vmatprep.mubr.bf16.mxu1 %v9205_v0  ;;  %v7871_v49 = vld [vmem:[#allocation8 + $0x54] ss:$40 sps:$4 sm:$0xff]   ;;  %v7869_v51 = vld [vmem:[#allocation8 + $0x50] ss:$40 sps:$4 sm:$0xff]   ;;  %v7877_v52 = vld [vmem:[#allocation8 + $0x4] ss:$40 sps:$4 sm:$0xff]  }
  0xa6   : > { %552 = vmatpush1.bf16.msra.mxu0 %v7807_v12  ;;  %966 = vmatprep.subr.bf16.mxu1 %v7829_v23  ;;  %v7854_v53 = vld [vmem:[#allocation8 + $0x148] ss:$40 sps:$4 sm:$0xff]   ;;  %v7862_v54 = vld [vmem:[#allocation8 + $0xfc] ss:$40 sps:$4 sm:$0xff]   ;;  %v7860_v57 = vld [vmem:[#allocation8 + $0xf8] ss:$40 sps:$4 sm:$0xff]  }
  0xa7   : > { %553 = vmatprep.subr.bf16.mxu0 %v7808_v16  ;;  %v7875_v55 = vld [vmem:[#allocation8] ss:$40 sps:$4 sm:$0xff]   ;;  %v7883_v56 = vld [vmem:[#allocation8 + $0x4b4] ss:$40 sps:$4 sm:$0xff]   ;;  %v7881_v59 = vld [vmem:[#allocation8 + $0x4b0] ss:$40 sps:$4 sm:$0xff]  }
  0xa8   : > { %v7868_v58 = vld [vmem:[#allocation8 + $0xac] ss:$40 sps:$4 sm:$0xff]   ;;  %v7866_v61 = vld [vmem:[#allocation8 + $0xa8] ss:$40 sps:$4 sm:$0xff]   ;;  %v7874_v62 = vld [vmem:[#allocation8 + $0x5c] ss:$40 sps:$4 sm:$0xff]  }
  0xa9   : > { %v7889_v60 = vld [vmem:[#allocation8 + $0x464] ss:$40 sps:$4 sm:$0xff]   ;;  %v7887_v63 = vld [vmem:[#allocation8 + $0x460] ss:$40 sps:$4 sm:$0xff]   ;;  %v7893_v3 = vld [vmem:[#allocation8 + $0x410] ss:$40 sps:$4 sm:$0xff]  }
  0xaa   : > { %554 = vmatpush1.bf16.msra.mxu0 %v7810_v18  ;;  %v7872_v1 = vld [vmem:[#allocation8 + $0x58] ss:$40 sps:$4 sm:$0xff]   ;;  %v7880_v2 = vld [vmem:[#allocation8 + $0xc] ss:$40 sps:$4 sm:$0xff]   ;;  %v7878_v5 = vld [vmem:[#allocation8 + $0x8] ss:$40 sps:$4 sm:$0xff]  }
  0xab   : > { %555 = vmatprep.subr.bf16.mxu0 %v7811_v19  ;;  %v7901_v4 = vld [vmem:[#allocation8 + $0x3c4] ss:$40 sps:$4 sm:$0xff]   ;;  %v7899_v7 = vld [vmem:[#allocation8 + $0x3c0] ss:$40 sps:$4 sm:$0xff]   ;;  %v7907_v8 = vld [vmem:[#allocation8 + $0x374] ss:$40 sps:$4 sm:$0xff]  }
  0xac   : > { %6820 = vmatmul.mubr.msk.bf16.vlgmr.msra.gmra.mxu1 %vm819_vm0, %v9465_v13  ;;  %v7886_v6 = vld [vmem:[#allocation8 + $0x4bc] ss:$40 sps:$4 sm:$0xff]   ;;  %v7884_v9 = vld [vmem:[#allocation8 + $0x4b8] ss:$40 sps:$4 sm:$0xff]   ;;  %v7892_v10 = vld [vmem:[#allocation8 + $0x46c] ss:$40 sps:$4 sm:$0xff]  }
  0xad   : > { %967 = vmatpush1.bf16.msra.mxu1 %v7827_v29  ;;  %984 = vmatprep.mubr.bf16.mxu1 %v9205_v0  ;;  %v7905_v11 = vld [vmem:[#allocation8 + $0x370] ss:$40 sps:$4 sm:$0xff]   ;;  %v7904_v15 = vld [vmem:[#allocation8 + $0x3cc] ss:$40 sps:$4 sm:$0xff]   ;;  %v7910_v17 = vld [vmem:[#allocation8 + $0x37c] ss:$40 sps:$4 sm:$0xff]  }
  0xae   : > { %556 = vmatpush1.bf16.msra.mxu0 %v7813_v20  ;;  %1009 = vmatprep.subr.bf16.mxu1 %v7832_v30  ;;  %v7890_v12 = vld [vmem:[#allocation8 + $0x468] ss:$40 sps:$4 sm:$0xff]   ;;  %v7896_v14 = vld [vmem:[#allocation8 + $0x418] ss:$40 sps:$4 sm:$0xff]   ;;  %v7913_v19 = vld [vmem:[#allocation8 + $0x324] ss:$40 sps:$4 sm:$0xff]  }
  0xaf   : > { %557 = vmatprep.subr.bf16.mxu0 %v7814_v22  ;;  %v7902_v16 = vld [vmem:[#allocation8 + $0x3c8] ss:$40 sps:$4 sm:$0xff]   ;;  %v7908_v18 = vld [vmem:[#allocation8 + $0x378] ss:$40 sps:$4 sm:$0xff]   ;;  %v7916_v20 = vld [vmem:[#allocation8 + $0x32c] ss:$40 sps:$4 sm:$0xff]  }
  0xb0   : > { %v7911_v21 = vld [vmem:[#allocation8 + $0x320] ss:$40 sps:$4 sm:$0xff]   ;;  %v7919_v23 = vld [vmem:[#allocation8 + $0x2d4] ss:$40 sps:$4 sm:$0xff]   ;;  %v7917_v25 = vld [vmem:[#allocation8 + $0x2d0] ss:$40 sps:$4 sm:$0xff]  }
  0xb1   : > { %v7914_v22 = vld [vmem:[#allocation8 + $0x328] ss:$40 sps:$4 sm:$0xff]   ;;  %v7920_v26 = vld [vmem:[#allocation8 + $0x2d8] ss:$40 sps:$4 sm:$0xff]   ;;  %s9114_s18 = scalar_lea.vmem %s9662_s14, 896  ;;  %p9744_p0 = scmp.ne.s32.totalorder %s9731_s16, 0 }
  0xb2   : > { %558 = vmatpush1.bf16.msra.mxu0 %v7816_v24  ;;  %v7922_v24 = vld [vmem:[#allocation8 + $0x2dc] ss:$40 sps:$4 sm:$0xff]   ;;  %v7923_v29 = vld [vmem:[#allocation8 + $0x280] ss:$40 sps:$4 sm:$0xff]   ;;  %p9115_p13 = scmp.ne.s32.totalorder %s9662_s14, %s9114_s18  ;;  %s9206_s11 = smov [#allocation14]  }
  0xb3   : > { %1838 = vmatprep.subr.bf16.mxu0 %v7835_v27  ;;  %v7925_v27 = vld [vmem:[#allocation8 + $0x284] ss:$40 sps:$4 sm:$0xff]   ;;  %v7926_v30 = vld [vmem:[#allocation8 + $0x288] ss:$40 sps:$4 sm:$0xff]   ;;  %s9118_s12 = sshll.u32 %s9206_s11, 4  ;;  %s9119_s12 = int_to_ptr.vmem [resolvable:$false] %s9118_s12 }
  0xb4   : > { %6821 = vmatmul.mubr.msk.bf16.vlgmr.msra.gmra.mxu1 %vm819_vm0, %v9465_v13  ;;  %p9116_p2 = pnand %p9115_p13, %p9744_p0  ;;  %s9120_s21 = scalar_lea.vmem %s9119_s12, 1792 }
  0xb5   : > { %576 = vmatmul.mubr.bf16.vlgmr.msra.gmra.mxu0 %v434_v28  ;;  %1010 = vmatpush1.bf16.msra.mxu1 %v7830_v35  ;;  %v7928_v28 = vld [vmem:[#allocation8 + $0x28c] ss:$40 sps:$4 sm:$0xff]   ;;  %p9121_p8 = scmp.lt.s32.totalorder %s9662_s14, %s9119_s12  ;;  %p9122_p7 = scmp.lt.s32.totalorder %s9120_s21, %s9114_s18 }
  0xb6   : > { %1839 = vmatpush1.bf16.msra.mxu0 %v7833_v31  ;;  %1027 = vmatprep.mubr.bf16.mxu1 %v9205_v0  ;;  %v7895_v0 = vld [vmem:[#allocation8 + $0x414] ss:$40 sps:$4 sm:$0xff]   ;;  %v7931_v31 = vld [vmem:[#allocation8 + $0x244] ss:$40 sps:$4 sm:$0xff]   ;;  %p9117_p5 = pneg %p9116_p2 }
  0xb7   : > { %1840 = vmatprep.subr.bf16.mxu0 %v7841_v32  ;;  %1881 = vmatprep.subr.bf16.mxu1 %v7838_v36  ;;  %v7934_v32 = vld [vmem:[#allocation8 + $0x24c] ss:$40 sps:$4 sm:$0xff]   ;;  %p9123_p6 = por %p9122_p7, %p9121_p8 }
  0xb9   : > { %p9124_p1 = pnand %p9123_p6, %p9117_p5 }
  0xba   : > { %1841 = vmatpush1.bf16.msra.mxu0 %v7839_v33  ;;  %v453_v33 = vlaneseq }
  0xbb   : > { %1842 = vmatprep.subr.bf16.mxu0 %v7847_v34 }
  0xbc   : > { %6822 = vmatmul.mubr.msk.bf16.vlgmr.msra.gmra.mxu1 %vm819_vm0, %v9465_v13  ;;  %v7898_v13 = vld [vmem:[#allocation8 + $0x41c] ss:$40 sps:$4 sm:$0xff]   ;;  %v9483_v34 = vshrl.u32 %v453_v33, 7 }
  0xbd   : > { %1882 = vmatpush1.bf16.msra.mxu1 %v7836_v41  ;;  %v8000_v33 = vld [vmem:[#allocation8 + $0x3dc] ss:$40 sps:$4 sm:$0xff]  }
  0xbe   : > { %1843 = vmatpush1.bf16.msra.mxu0 %v7845_v37  ;;  %1883 = vmatprep.subr.bf16.mxu1 %v7844_v42  ;;  %v459_v35 = vsub.s32 1, %v9483_v34  ;;  %v455_v36 = vsub.s32 0, %v9483_v34  ;;  %v451_v37 = vld [vmem:[#allocation7] sm:$0x3] }
  0xbf   : > { %1844 = vmatprep.subr.bf16.mxu0 %v7853_v38 }
  0xc1   : > { %1884 = vmatpush1.bf16.msra.mxu1 %v7842_v45 }
  0xc2   : > { %1845 = vmatpush1.bf16.msra.mxu0 %v7851_v39  ;;  %1885 = vmatprep.subr.bf16.mxu1 %v7850_v46  ;;  %v460_v39 = vrot.slane %v451_v37, %v459_v35 }
  0xc3   : > { %1846 = vmatprep.subr.bf16.mxu0 %v7859_v40  ;;  %v456_v40 = vrot.slane %v451_v37, %v455_v36  ;;  %v7995_v37 = vld [vmem:[#allocation8 + $0x3d0] ss:$40 sps:$4 sm:$0xff]  }
  0xc5   : > { %1886 = vmatpush1.bf16.msra.mxu1 %v7848_v48 }
  0xc6   : > { %1847 = vmatpush1.bf16.msra.mxu0 %v7857_v43  ;;  %1887 = vmatprep.subr.bf16.mxu1 %v7856_v50 }
  0xc7   : > { %1848 = vmatprep.subr.bf16.mxu0 %v7865_v44 }
  0xc9   : > { %1888 = vmatpush1.bf16.msra.mxu1 %v7854_v53 }
  0xca   : > { %1849 = vmatpush1.bf16.msra.mxu0 %v7863_v47  ;;  %1889 = vmatprep.subr.bf16.mxu1 %v7862_v54 }
  0xcb   : > { %1850 = vmatprep.subr.bf16.mxu0 %v7871_v49 }
  0xcd   : > { %1890 = vmatpush1.bf16.msra.mxu1 %v7860_v57 }
  0xce   : > { %1851 = vmatpush1.bf16.msra.mxu0 %v7869_v51  ;;  %1891 = vmatprep.subr.bf16.mxu1 %v7868_v58  ;;  %v7929_v51 = vld [vmem:[#allocation8 + $0x240] ss:$40 sps:$4 sm:$0xff]   ;;  %v7935_v58 = vld [vmem:[#allocation8 + $0x1f0] ss:$40 sps:$4 sm:$0xff]  }
  0xcf   : > { %1852 = vmatprep.subr.bf16.mxu0 %v7877_v52  ;;  %v7932_v52 = vld [vmem:[#allocation8 + $0x248] ss:$40 sps:$4 sm:$0xff]  }
  0xd1   : > { %1892 = vmatpush1.bf16.msra.mxu1 %v7866_v61  ;;  %v7946_v61 = vld [vmem:[#allocation8 + $0x1ac] ss:$40 sps:$4 sm:$0xff]  }
  0xd2   : > { %1853 = vmatpush1.bf16.msra.mxu0 %v7875_v55  ;;  %1893 = vmatprep.subr.bf16.mxu1 %v7874_v62  ;;  %v7937_v55 = vld [vmem:[#allocation8 + $0x1f4] ss:$40 sps:$4 sm:$0xff]   ;;  %v7941_v62 = vld [vmem:[#allocation8 + $0x1a0] ss:$40 sps:$4 sm:$0xff]  }
  0xd3   : > { %1854 = vmatprep.subr.bf16.mxu0 %v7883_v56  ;;  %v7940_v56 = vld [vmem:[#allocation8 + $0x1fc] ss:$40 sps:$4 sm:$0xff]  }
  0xd5   : > { %1894 = vmatpush1.bf16.msra.mxu1 %v7872_v1  ;;  %v7952_v1 = vld [vmem:[#allocation8 + $0x15c] ss:$40 sps:$4 sm:$0xff]  }
  0xd6   : > { %1855 = vmatpush2.bf16.msra.mxu0 %v7881_v59  ;;  %1895 = vmatprep.subr.bf16.mxu1 %v7880_v2  ;;  %v7938_v59 = vld [vmem:[#allocation8 + $0x1f8] ss:$40 sps:$4 sm:$0xff]  }
  0xd7   : > { %1856 = vmatprep.subr.bf16.mxu0 %v7889_v60  ;;  %v7943_v60 = vld [vmem:[#allocation8 + $0x1a4] ss:$40 sps:$4 sm:$0xff]   ;;  %v7947_v2 = vld [vmem:[#allocation8 + $0x150] ss:$40 sps:$4 sm:$0xff]  }
  0xd9   : > { %1896 = vmatpush1.bf16.msra.mxu1 %v7878_v5  ;;  %v7958_v5 = vld [vmem:[#allocation8 + $0x10c] ss:$40 sps:$4 sm:$0xff]  }
  0xda   : > { %1857 = vmatpush2.bf16.msra.mxu0 %v7887_v63  ;;  %1897 = vmatprep.subr.bf16.mxu1 %v7886_v6  ;;  %v7944_v63 = vld [vmem:[#allocation8 + $0x1a8] ss:$40 sps:$4 sm:$0xff]  }
  0xdb   : > { %1858 = vmatprep.subr.bf16.mxu0 %v7895_v0  ;;  %v7949_v0 = vld [vmem:[#allocation8 + $0x154] ss:$40 sps:$4 sm:$0xff]   ;;  %v7953_v6 = vld [vmem:[#allocation8 + $0x100] ss:$40 sps:$4 sm:$0xff]  }
  0xdd   : > { %1898 = vmatpush2.bf16.msra.mxu1 %v7884_v9  ;;  %v7964_v9 = vld [vmem:[#allocation8 + $0xbc] ss:$40 sps:$4 sm:$0xff]  }
  0xde   : > { %1859 = vmatpush2.bf16.msra.mxu0 %v7893_v3  ;;  %1899 = vmatprep.subr.bf16.mxu1 %v7892_v10  ;;  %v7950_v3 = vld [vmem:[#allocation8 + $0x158] ss:$40 sps:$4 sm:$0xff]  }
  0xdf   : > { %1860 = vmatprep.subr.bf16.mxu0 %v7901_v4  ;;  %v7955_v4 = vld [vmem:[#allocation8 + $0x104] ss:$40 sps:$4 sm:$0xff]   ;;  %v7959_v10 = vld [vmem:[#allocation8 + $0xb0] ss:$40 sps:$4 sm:$0xff]  }
  0xe1   : > { %1900 = vmatpush2.bf16.msra.mxu1 %v7890_v12  ;;  %v7967_v12 = vld [vmem:[#allocation8 + $0x64] ss:$40 sps:$4 sm:$0xff]  }
  0xe2   : > { %1861 = vmatpush2.bf16.msra.mxu0 %v7899_v7  ;;  %1901 = vmatprep.subr.bf16.mxu1 %v7898_v13  ;;  %v7956_v7 = vld [vmem:[#allocation8 + $0x108] ss:$40 sps:$4 sm:$0xff]   ;;  %v7970_v13 = vld [vmem:[#allocation8 + $0x6c] ss:$40 sps:$4 sm:$0xff]  }
  0xe3   : > { %1862 = vmatprep.subr.bf16.mxu0 %v7907_v8  ;;  %v7961_v8 = vld [vmem:[#allocation8 + $0xb4] ss:$40 sps:$4 sm:$0xff]  }
  0xe5   : > { %1902 = vmatpush2.bf16.msra.mxu1 %v7896_v14  ;;  %v7965_v14 = vld [vmem:[#allocation8 + $0x60] ss:$40 sps:$4 sm:$0xff]  }
  0xe6   : > { %1863 = vmatpush2.bf16.msra.mxu0 %v7905_v11  ;;  %1903 = vmatprep.subr.bf16.mxu1 %v7904_v15  ;;  %v7962_v11 = vld [vmem:[#allocation8 + $0xb8] ss:$40 sps:$4 sm:$0xff]   ;;  %v7968_v15 = vld [vmem:[#allocation8 + $0x68] ss:$40 sps:$4 sm:$0xff]  }
  0xe7   : > { %1864 = vmatprep.subr.bf16.mxu0 %v7913_v19  ;;  %v7974_v19 = vld [vmem:[#allocation8 + $0x18] ss:$40 sps:$4 sm:$0xff]  }
  0xe9   : > { %1904 = vmatpush2.bf16.msra.mxu1 %v7902_v16  ;;  %v7973_v16 = vld [vmem:[#allocation8 + $0x14] ss:$40 sps:$4 sm:$0xff]  }
  0xea   : > { %1905 = vmatprep.subr.bf16.mxu1 %v7910_v17  ;;  %1865 = vmatpush2.bf16.msra.mxu0 %v7911_v21  ;;  %v7976_v17 = vld [vmem:[#allocation8 + $0x1c] ss:$40 sps:$4 sm:$0xff]   ;;  %v7982_v21 = vld [vmem:[#allocation8 + $0x4cc] ss:$40 sps:$4 sm:$0xff]  }
  0xeb   : > { %1866 = vmatprep.subr.bf16.mxu0 %v7919_v23  ;;  %v7980_v23 = vld [vmem:[#allocation8 + $0x4c8] ss:$40 sps:$4 sm:$0xff]  }
  0xed   : > { %1906 = vmatpush2.bf16.msra.mxu1 %v7908_v18  ;;  %v7971_v18 = vld [vmem:[#allocation8 + $0x10] ss:$40 sps:$4 sm:$0xff]  }
  0xee   : > { %1907 = vmatprep.subr.bf16.mxu1 %v7916_v20  ;;  %1867 = vmatpush2.bf16.msra.mxu0 %v7917_v25  ;;  %v7979_v20 = vld [vmem:[#allocation8 + $0x4c4] ss:$40 sps:$4 sm:$0xff]  }
  0xef   : > { %1868 = vmatprep.subr.bf16.mxu0 %v7925_v27  ;;  %v7988_v25 = vld [vmem:[#allocation8 + $0x47c] ss:$40 sps:$4 sm:$0xff]   ;;  %v7986_v27 = vld [vmem:[#allocation8 + $0x478] ss:$40 sps:$4 sm:$0xff]  }
  0xf1   : > { %1908 = vmatpush2.bf16.msra.mxu1 %v7914_v22  ;;  %v7977_v22 = vld [vmem:[#allocation8 + $0x4c0] ss:$40 sps:$4 sm:$0xff]  }
  0xf2   : > { %1909 = vmatprep.subr.bf16.mxu1 %v7922_v24  ;;  %1869 = vmatpush2.bf16.msra.mxu0 %v7923_v29  ;;  %v7985_v24 = vld [vmem:[#allocation8 + $0x474] ss:$40 sps:$4 sm:$0xff]  }
  0xf3   : > { %1924 = vmatprep.subr.bf16.mxu0 %v7931_v31  ;;  %v7994_v29 = vld [vmem:[#allocation8 + $0x42c] ss:$40 sps:$4 sm:$0xff]   ;;  %v7992_v31 = vld [vmem:[#allocation8 + $0x428] ss:$40 sps:$4 sm:$0xff]  }
  0xf5   : > { %1910 = vmatpush2.bf16.msra.mxu1 %v7920_v26  ;;  %v7983_v26 = vld [vmem:[#allocation8 + $0x470] ss:$40 sps:$4 sm:$0xff]  }
  0xf6   : > { %1911 = vmatprep.subr.bf16.mxu1 %v7928_v28  ;;  %v7991_v28 = vld [vmem:[#allocation8 + $0x424] ss:$40 sps:$4 sm:$0xff]  }
  0xf9   : > { %1912 = vmatpush2.bf16.msra.mxu1 %v7926_v30  ;;  %v7989_v30 = vld [vmem:[#allocation8 + $0x420] ss:$40 sps:$4 sm:$0xff]  }
  0xfa   : > { %1967 = vmatprep.subr.bf16.mxu1 %v7934_v32  ;;  %v7997_v32 = vld [vmem:[#allocation8 + $0x3d4] ss:$40 sps:$4 sm:$0xff]  }
 0x175   : > { %v577_v38 = vpop.f32.mrf.mxu0 }
 0x176   : > { %v578_v45 = vadd.f32 %v577_v38, %v456_v40  ;;  %v7998_v38 = vld [vmem:[#allocation8 + $0x3d8] ss:$40 sps:$4 sm:$0xff]  }
 0x177   : > { %v579_v41 = vpop.f32.mrf.mxu0 }
 0x178   : > { %v580_v43 = vadd.f32 %v579_v41, %v460_v39  ;;  %v586_v53 = vmax.f32 %v578_v45, 0.0  ;;  %v8001_v41 = vld [vmem:[#allocation8 + $0x380] ss:$40 sps:$4 sm:$0xff]   ;;  %v8007_v45 = vld [vmem:[#allocation8 + $0x330] ss:$40 sps:$4 sm:$0xff]  }
 0x179   : > { %v581_v42 = vpop.f32.mrf.mxu0 }
 0x17a   : > { %v582_v44 = vadd.f32 %v581_v42, %v456_v40  ;;  %v587_v49 = vmax.f32 %v580_v43, 0.0  ;;  %v8006_v40 = vld [vmem:[#allocation8 + $0x38c] ss:$40 sps:$4 sm:$0xff]   ;;  %v8004_v42 = vld [vmem:[#allocation8 + $0x388] ss:$40 sps:$4 sm:$0xff]  }
 0x17b   : > { %v583_v46 = vpop.f32.mrf.mxu0  ;;  %v8009_v43 = vld [vmem:[#allocation8 + $0x334] ss:$40 sps:$4 sm:$0xff]  }
 0x17c   : > { %v584_v47 = vadd.f32 %v583_v46, %v460_v39  ;;  %v588_v48 = vmax.f32 %v582_v44, 0.0  ;;  %v8003_v39 = vld [vmem:[#allocation8 + $0x384] ss:$40 sps:$4 sm:$0xff]   ;;  %v8010_v46 = vld [vmem:[#allocation8 + $0x338] ss:$40 sps:$4 sm:$0xff]  }
 0x17d   : > { %v8012_v44 = vld [vmem:[#allocation8 + $0x33c] ss:$40 sps:$4 sm:$0xff]  }
 0x17e   : > { %v589_v50 = vmax.f32 %v584_v47, 0.0  ;;  %v9493_v57 = vpack.c.bf16 %v588_v48, %v586_v53  ;;  %v8015_v47 = vld [vmem:[#allocation8 + $0x2e4] ss:$40 sps:$4 sm:$0xff]   ;;  %v8019_v53 = vld [vmem:[#allocation8 + $0x290] ss:$40 sps:$4 sm:$0xff]  }
 0x17f   : > { %v8018_v48 = vld [vmem:[#allocation8 + $0x2ec] ss:$40 sps:$4 sm:$0xff]  }
 0x180   : > { %v9491_v54 = vpack.c.bf16 %v589_v50, %v587_v49  ;;  %v8013_v49 = vld [vmem:[#allocation8 + $0x2e0] ss:$40 sps:$4 sm:$0xff]  }
 0x181   : > { %v8016_v50 = vld [vmem:[#allocation8 + $0x2e8] ss:$40 sps:$4 sm:$0xff]  }
 0x182   : > { %1870 = vmatprep.mubr.bf16.mxu0 %v9491_v54  ;;  %1913 = vmatprep.mubr.bf16.mxu1 %v9491_v54 }
 0x183   : > { %1871 = vmatmul.mubr.bf16.vlgmr.msra.gmra.mxu0 %v9493_v57  ;;  %1914 = vmatmul.mubr.bf16.vlgmr.msra.gmra.mxu1 %v9493_v57 }
 0x184   : > { %1925 = vmatpush1.bf16.msra.mxu0 %v7929_v51  ;;  %1968 = vmatpush1.bf16.msra.mxu1 %v7932_v52  ;;  %v8021_v51 = vld [vmem:[#allocation8 + $0x294] ss:$40 sps:$4 sm:$0xff]  }
 0x185   : > { %1956 = vmatprep.mubr.bf16.mxu0 %v9491_v54  ;;  %1999 = vmatprep.mubr.bf16.mxu1 %v9491_v54  ;;  %v8024_v52 = vld [vmem:[#allocation8 + $0x29c] ss:$40 sps:$4 sm:$0xff]  }
 0x186   : > { %1926 = vmatprep.subr.bf16.mxu0 %v7937_v55  ;;  %1969 = vmatprep.subr.bf16.mxu1 %v7940_v56  ;;  %v8022_v55 = vld [vmem:[#allocation8 + $0x298] ss:$40 sps:$4 sm:$0xff]   ;;  %v8027_v56 = vld [vmem:[#allocation8 + $0x254] ss:$40 sps:$4 sm:$0xff]  }
 0x188   : > { %1927 = vmatpush1.bf16.msra.mxu0 %v7935_v58  ;;  %1970 = vmatpush1.bf16.msra.mxu1 %v7938_v59  ;;  %v8075_v58 = vld [vmem:[#allocation11 + $0x18c] ss:$28 sps:$4 sm:$0xff]  }
 0x189   : > { %1928 = vmatprep.subr.bf16.mxu0 %v7943_v60  ;;  %1971 = vmatprep.subr.bf16.mxu1 %v7946_v61  ;;  %v8025_v59 = vld [vmem:[#allocation8 + $0x250] ss:$40 sps:$4 sm:$0xff]   ;;  %v8030_v60 = vld [vmem:[#allocation8 + $0x204] ss:$40 sps:$4 sm:$0xff]  }
 0x18a   : > { %v8073_v61 = vld [vmem:[#allocation11 + $0x188] ss:$28 sps:$4 sm:$0xff]  }
 0x18c   : > { %1929 = vmatpush1.bf16.msra.mxu0 %v7941_v62  ;;  %1972 = vmatpush1.bf16.msra.mxu1 %v7944_v63  ;;  %v8081_v62 = vld [vmem:[#allocation11 + $0x154] ss:$28 sps:$4 sm:$0xff]  }
 0x18d   : > { %1930 = vmatprep.subr.bf16.mxu0 %v7949_v0  ;;  %1973 = vmatprep.subr.bf16.mxu1 %v7952_v1  ;;  %v8028_v63 = vld [vmem:[#allocation8 + $0x200] ss:$40 sps:$4 sm:$0xff]   ;;  %v8033_v0 = vld [vmem:[#allocation8 + $0x1b4] ss:$40 sps:$4 sm:$0xff]  }
 0x18e   : > { %v8079_v1 = vld [vmem:[#allocation11 + $0x150] ss:$28 sps:$4 sm:$0xff]  }
 0x190   : > { %1931 = vmatpush1.bf16.msra.mxu0 %v7947_v2  ;;  %1974 = vmatpush1.bf16.msra.mxu1 %v7950_v3  ;;  %v8087_v2 = vld [vmem:[#allocation11 + $0x11c] ss:$28 sps:$4 sm:$0xff]   ;;  %v8031_v3 = vld [vmem:[#allocation8 + $0x1b0] ss:$40 sps:$4 sm:$0xff]  }
 0x191   : > { %1932 = vmatprep.subr.bf16.mxu0 %v7955_v4  ;;  %1975 = vmatprep.subr.bf16.mxu1 %v7958_v5  ;;  %v8036_v4 = vld [vmem:[#allocation8 + $0x164] ss:$40 sps:$4 sm:$0xff]  }
 0x192   : > { %v8085_v5 = vld [vmem:[#allocation11 + $0x118] ss:$28 sps:$4 sm:$0xff]  }
 0x194   : > { %1933 = vmatpush1.bf16.msra.mxu0 %v7953_v6  ;;  %1976 = vmatpush1.bf16.msra.mxu1 %v7956_v7  ;;  %v8093_v6 = vld [vmem:[#allocation11 + $0xe4] ss:$28 sps:$4 sm:$0xff]   ;;  %v8034_v7 = vld [vmem:[#allocation8 + $0x160] ss:$40 sps:$4 sm:$0xff]  }
 0x195   : > { %1934 = vmatprep.subr.bf16.mxu0 %v7961_v8  ;;  %1977 = vmatprep.subr.bf16.mxu1 %v7964_v9  ;;  %v8039_v8 = vld [vmem:[#allocation8 + $0x114] ss:$40 sps:$4 sm:$0xff]   ;;  %v8091_v9 = vld [vmem:[#allocation11 + $0xe0] ss:$28 sps:$4 sm:$0xff]  }
 0x198   : > { %1935 = vmatpush1.bf16.msra.mxu0 %v7959_v10  ;;  %1978 = vmatpush1.bf16.msra.mxu1 %v7962_v11  ;;  %v8099_v10 = vld [vmem:[#allocation11 + $0xac] ss:$28 sps:$4 sm:$0xff]   ;;  %v8042_v11 = vld [vmem:[#allocation8 + $0xc4] ss:$40 sps:$4 sm:$0xff]  }
 0x199   : > { %1936 = vmatprep.subr.bf16.mxu0 %v7967_v12  ;;  %1979 = vmatprep.subr.bf16.mxu1 %v7970_v13  ;;  %v8097_v12 = vld [vmem:[#allocation11 + $0xa8] ss:$28 sps:$4 sm:$0xff]   ;;  %v8040_v13 = vld [vmem:[#allocation8 + $0xc0] ss:$40 sps:$4 sm:$0xff]  }
 0x19c   : > { %1937 = vmatpush1.bf16.msra.mxu0 %v7965_v14  ;;  %1980 = vmatpush1.bf16.msra.mxu1 %v7968_v15  ;;  %v8105_v14 = vld [vmem:[#allocation11 + $0x74] ss:$28 sps:$4 sm:$0xff]   ;;  %v8045_v15 = vld [vmem:[#allocation8 + $0x74] ss:$40 sps:$4 sm:$0xff]  }
 0x19d   : > { %1938 = vmatprep.subr.bf16.mxu0 %v7973_v16  ;;  %1981 = vmatprep.subr.bf16.mxu1 %v7976_v17  ;;  %v8103_v16 = vld [vmem:[#allocation11 + $0x70] ss:$28 sps:$4 sm:$0xff]   ;;  %v8043_v17 = vld [vmem:[#allocation8 + $0x70] ss:$40 sps:$4 sm:$0xff]  }
 0x1a0   : > { %1939 = vmatpush1.bf16.msra.mxu0 %v7971_v18  ;;  %1982 = vmatpush1.bf16.msra.mxu1 %v7974_v19  ;;  %v8111_v18 = vld [vmem:[#allocation11 + $0x3c] ss:$28 sps:$4 sm:$0xff]  }
 0x1a1   : > { %1940 = vmatprep.subr.bf16.mxu0 %v7979_v20  ;;  %1983 = vmatprep.subr.bf16.mxu1 %v7982_v21  ;;  %v8048_v19 = vld [vmem:[#allocation8 + $0x24] ss:$40 sps:$4 sm:$0xff]   ;;  %v8046_v21 = vld [vmem:[#allocation8 + $0x20] ss:$40 sps:$4 sm:$0xff]  }
 0x1a2   : > { %v8109_v20 = vld [vmem:[#allocation11 + $0x38] ss:$28 sps:$4 sm:$0xff]  }
 0x1a4   : > { %1941 = vmatpush2.bf16.msra.mxu0 %v7977_v22  ;;  %1984 = vmatpush2.bf16.msra.mxu1 %v7980_v23  ;;  %v8117_v22 = vld [vmem:[#allocation11 + $0x4] ss:$28 sps:$4 sm:$0xff]  }
 0x1a5   : > { %1942 = vmatprep.subr.bf16.mxu0 %v7985_v24  ;;  %1985 = vmatprep.subr.bf16.mxu1 %v7988_v25  ;;  %v8051_v23 = vld [vmem:[#allocation8 + $0x4d4] ss:$40 sps:$4 sm:$0xff]   ;;  %v8115_v24 = vld [vmem:[#allocation11] ss:$28 sps:$4 sm:$0xff]  }
 0x1a6   : > { %v8049_v25 = vld [vmem:[#allocation8 + $0x4d0] ss:$40 sps:$4 sm:$0xff]  }
 0x1a8   : > { %1943 = vmatpush2.bf16.msra.mxu0 %v7983_v26  ;;  %1986 = vmatpush2.bf16.msra.mxu1 %v7986_v27  ;;  %v8123_v26 = vld [vmem:[#allocation11 + $0x34c] ss:$28 sps:$4 sm:$0xff]   ;;  %v8054_v27 = vld [vmem:[#allocation8 + $0x484] ss:$40 sps:$4 sm:$0xff]  }
 0x1a9   : > { %1944 = vmatprep.subr.bf16.mxu0 %v7991_v28  ;;  %1987 = vmatprep.subr.bf16.mxu1 %v7994_v29  ;;  %v8121_v28 = vld [vmem:[#allocation11 + $0x348] ss:$28 sps:$4 sm:$0xff]   ;;  %v8052_v29 = vld [vmem:[#allocation8 + $0x480] ss:$40 sps:$4 sm:$0xff]  }
 0x1ac   : > { %1945 = vmatpush2.bf16.msra.mxu0 %v7989_v30  ;;  %1988 = vmatpush2.bf16.msra.mxu1 %v7992_v31  ;;  %v8129_v30 = vld [vmem:[#allocation11 + $0x314] ss:$28 sps:$4 sm:$0xff]   ;;  %v8057_v31 = vld [vmem:[#allocation8 + $0x434] ss:$40 sps:$4 sm:$0xff]  }
 0x1ad   : > { %1946 = vmatprep.subr.bf16.mxu0 %v7997_v32  ;;  %1989 = vmatprep.subr.bf16.mxu1 %v8000_v33  ;;  %v8127_v32 = vld [vmem:[#allocation11 + $0x310] ss:$28 sps:$4 sm:$0xff]   ;;  %v8055_v33 = vld [vmem:[#allocation8 + $0x430] ss:$40 sps:$4 sm:$0xff]  }
 0x1b0   : > { %1947 = vmatpush2.bf16.msra.mxu0 %v7995_v37  ;;  %1990 = vmatpush2.bf16.msra.mxu1 %v7998_v38  ;;  %v8135_v37 = vld [vmem:[#allocation11 + $0x2dc] ss:$28 sps:$4 sm:$0xff]  }
 0x1b1   : > { %1948 = vmatprep.subr.bf16.mxu0 %v8003_v39  ;;  %1991 = vmatprep.subr.bf16.mxu1 %v8006_v40  ;;  %v8060_v38 = vld [vmem:[#allocation8 + $0x3e4] ss:$40 sps:$4 sm:$0xff]   ;;  %v8058_v40 = vld [vmem:[#allocation8 + $0x3e0] ss:$40 sps:$4 sm:$0xff]  }
 0x1b2   : > { %v8133_v39 = vld [vmem:[#allocation11 + $0x2d8] ss:$28 sps:$4 sm:$0xff]  }
 0x1b4   : > { %1949 = vmatpush2.bf16.msra.mxu0 %v8001_v41  ;;  %1992 = vmatpush2.bf16.msra.mxu1 %v8004_v42  ;;  %v8141_v41 = vld [vmem:[#allocation11 + $0x2a4] ss:$28 sps:$4 sm:$0xff]  }
 0x1b5   : > { %1950 = vmatprep.subr.bf16.mxu0 %v8009_v43  ;;  %1993 = vmatprep.subr.bf16.mxu1 %v8012_v44  ;;  %v8063_v42 = vld [vmem:[#allocation8 + $0x394] ss:$40 sps:$4 sm:$0xff]   ;;  %v8139_v43 = vld [vmem:[#allocation11 + $0x2a0] ss:$28 sps:$4 sm:$0xff]  }
 0x1b6   : > { %v8061_v44 = vld [vmem:[#allocation8 + $0x390] ss:$40 sps:$4 sm:$0xff]  }
 0x1b8   : > { %1951 = vmatpush2.bf16.msra.mxu0 %v8007_v45  ;;  %1994 = vmatpush2.bf16.msra.mxu1 %v8010_v46  ;;  %v8147_v45 = vld [vmem:[#allocation11 + $0x26c] ss:$28 sps:$4 sm:$0xff]   ;;  %v8066_v46 = vld [vmem:[#allocation8 + $0x344] ss:$40 sps:$4 sm:$0xff]  }
 0x1b9   : > { %1952 = vmatprep.subr.bf16.mxu0 %v8015_v47  ;;  %1995 = vmatprep.subr.bf16.mxu1 %v8018_v48  ;;  %v8145_v47 = vld [vmem:[#allocation11 + $0x268] ss:$28 sps:$4 sm:$0xff]   ;;  %v8064_v48 = vld [vmem:[#allocation8 + $0x340] ss:$40 sps:$4 sm:$0xff]  }
 0x1bc   : > { %1953 = vmatpush2.bf16.msra.mxu0 %v8013_v49  ;;  %1996 = vmatpush2.bf16.msra.mxu1 %v8016_v50  ;;  %v8153_v49 = vld [vmem:[#allocation11 + $0x234] ss:$28 sps:$4 sm:$0xff]   ;;  %v8069_v50 = vld [vmem:[#allocation8 + $0x2f4] ss:$40 sps:$4 sm:$0xff]  }
 0x1bd   : > { %1954 = vmatprep.subr.bf16.mxu0 %v8021_v51  ;;  %1997 = vmatprep.subr.bf16.mxu1 %v8024_v52  ;;  %v8151_v51 = vld [vmem:[#allocation11 + $0x230] ss:$28 sps:$4 sm:$0xff]   ;;  %v9504_v52 = vpop.f32.mrf.mxu1 }
 0x1c0   : > { %1955 = vmatpush2.bf16.msra.mxu0 %v8019_v53  ;;  %1998 = vmatpush2.bf16.msra.mxu1 %v8022_v55  ;;  %v8067_v53 = vld [vmem:[#allocation8 + $0x2f0] ss:$40 sps:$4 sm:$0xff]   ;;  %v8159_v55 = vld [vmem:[#allocation11 + $0x1fc] ss:$28 sps:$4 sm:$0xff]  }
 0x1c1   : > { %2010 = vmatprep.subr.bf16.mxu0 %v8027_v56  ;;  %5640 = vmatprep.subr.bf16.mxu1 %v8075_v58  ;;  %v8072_v56 = vld [vmem:[#allocation8 + $0x2a4] ss:$40 sps:$4 sm:$0xff]  }
 0x1c2   : > { %v8157_v58 = vld [vmem:[#allocation11 + $0x1f8] ss:$28 sps:$4 sm:$0xff]  }
 0x1c3   : > { %1957 = vmatmul.mubr.bf16.vlgmr.msra.gmra.mxu0 %v9493_v57  ;;  %2000 = vmatmul.mubr.bf16.vlgmr.msra.gmra.mxu1 %v9493_v57 }
 0x1c4   : > { %2011 = vmatpush1.bf16.msra.mxu0 %v8025_v59  ;;  %2042 = vmatprep.mubr.bf16.mxu0 %v9491_v54  ;;  %v8037_v54 = vld [vmem:[#allocation8 + $0x110] ss:$40 sps:$4 sm:$0xff]   ;;  %v9506_v59 = vpop.f32.mrf.mxu1 }
 0x1c5   : > { %2012 = vmatprep.subr.bf16.mxu0 %v8030_v60  ;;  %5641 = vmatpush1.bf16.msra.mxu1 %v8073_v61  ;;  %v8070_v60 = vld [vmem:[#allocation8 + $0x2a0] ss:$40 sps:$4 sm:$0xff]   ;;  %v8165_v61 = vld [vmem:[#allocation11 + $0x1c4] ss:$28 sps:$4 sm:$0xff]  }
 0x1c6   : > { %5642 = vmatprep.subr.bf16.mxu1 %v8081_v62  ;;  %v8078_v62 = vld [vmem:[#allocation11 + $0x50c] ss:$28 sps:$4 sm:$0xff]  }
 0x1c8   : > { %2013 = vmatpush1.bf16.msra.mxu0 %v8028_v63  ;;  %v8163_v63 = vld [vmem:[#allocation11 + $0x1c0] ss:$28 sps:$4 sm:$0xff]  }
 0x1c9   : > { %2014 = vmatprep.subr.bf16.mxu0 %v8033_v0  ;;  %5643 = vmatpush1.bf16.msra.mxu1 %v8079_v1  ;;  %v9508_v0 = vpop.f32.mrf.mxu1  ;;  %v8171_v1 = vld [vmem:[#allocation11 + $0x88c] ss:$28 sps:$4 sm:$0xff]  }
 0x1ca   : > { %5644 = vmatprep.subr.bf16.mxu1 %v8087_v2  ;;  %v8076_v2 = vld [vmem:[#allocation11 + $0x508] ss:$28 sps:$4 sm:$0xff]  }
 0x1cc   : > { %2015 = vmatpush1.bf16.msra.mxu0 %v8031_v3  ;;  %v8084_v3 = vld [vmem:[#allocation11 + $0x4d4] ss:$28 sps:$4 sm:$0xff]  }
 0x1cd   : > { %2016 = vmatprep.subr.bf16.mxu0 %v8036_v4  ;;  %5645 = vmatpush1.bf16.msra.mxu1 %v8085_v5  ;;  %v9510_v4 = vpop.f32.mrf.mxu1  ;;  %v8082_v5 = vld [vmem:[#allocation11 + $0x4d0] ss:$28 sps:$4 sm:$0xff]  }
 0x1ce   : > { %5646 = vmatprep.subr.bf16.mxu1 %v8093_v6  ;;  %v8090_v6 = vld [vmem:[#allocation11 + $0x49c] ss:$28 sps:$4 sm:$0xff]  }
 0x1d0   : > { %2017 = vmatpush1.bf16.msra.mxu0 %v8034_v7  ;;  %v9513_v7 = vpop.f32.mrf.mxu1 }
 0x1d1   : > { %2018 = vmatprep.subr.bf16.mxu0 %v8039_v8  ;;  %5647 = vmatpush1.bf16.msra.mxu1 %v8091_v9  ;;  %v8088_v8 = vld [vmem:[#allocation11 + $0x498] ss:$28 sps:$4 sm:$0xff]   ;;  %v8096_v9 = vld [vmem:[#allocation11 + $0x464] ss:$28 sps:$4 sm:$0xff]  }
 0x1d2   : > { %5648 = vmatprep.subr.bf16.mxu1 %v8099_v10  ;;  %v9515_v10 = vpop.f32.mrf.mxu1 }
 0x1d4   : > { %2019 = vmatpush1.bf16.msra.mxu0 %v8037_v54  ;;  %v8094_v54 = vld [vmem:[#allocation11 + $0x460] ss:$28 sps:$4 sm:$0xff]  }
 0x1d5   : > { %2020 = vmatprep.subr.bf16.mxu0 %v8042_v11  ;;  %5649 = vmatpush1.bf16.msra.mxu1 %v8097_v12  ;;  %v8102_v11 = vld [vmem:[#allocation11 + $0x42c] ss:$28 sps:$4 sm:$0xff]   ;;  %v9517_v12 = vpop.f32.mrf.mxu1 }
 0x1d6   : > { %5650 = vmatprep.subr.bf16.mxu1 %v8105_v14 }
 0x1d7   : > { %v9519_v14 = vpop.f32.mrf.mxu1 }
 0x1d8   : > { %2021 = vmatpush1.bf16.msra.mxu0 %v8040_v13  ;;  %v8108_v13 = vld [vmem:[#allocation11 + $0x3f4] ss:$28 sps:$4 sm:$0xff]  }
 0x1d9   : > { %2022 = vmatprep.subr.bf16.mxu0 %v8045_v15  ;;  %5651 = vmatpush1.bf16.msra.mxu1 %v8103_v16  ;;  %v8106_v15 = vld [vmem:[#allocation11 + $0x3f0] ss:$28 sps:$4 sm:$0xff]   ;;  %v9521_v16 = vpop.f32.mrf.mxu1 }
 0x1da   : > { %5652 = vmatprep.subr.bf16.mxu1 %v8111_v18  ;;  %v8112_v18 = vld [vmem:[#allocation11 + $0x3b8] ss:$28 sps:$4 sm:$0xff]  }
 0x1dc   : > { %2023 = vmatpush1.bf16.msra.mxu0 %v8043_v17  ;;  %v8114_v17 = vld [vmem:[#allocation11 + $0x3bc] ss:$28 sps:$4 sm:$0xff]  }
 0x1dd   : > { %2024 = vmatprep.subr.bf16.mxu0 %v8048_v19  ;;  %5653 = vmatpush1.bf16.msra.mxu1 %v8109_v20  ;;  %v9523_v19 = vpop.f32.mrf.mxu1  ;;  %v8120_v20 = vld [vmem:[#allocation11 + $0x384] ss:$28 sps:$4 sm:$0xff]  }
 0x1de   : > { %5654 = vmatprep.subr.bf16.mxu1 %v8117_v22 }
 0x1df   : > { %v9525_v22 = vpop.f32.mrf.mxu1 }
 0x1e0   : > { %2025 = vmatpush1.bf16.msra.mxu0 %v8046_v21  ;;  %v8118_v21 = vld [vmem:[#allocation11 + $0x380] ss:$28 sps:$4 sm:$0xff]  }
 0x1e1   : > { %2026 = vmatprep.subr.bf16.mxu0 %v8051_v23  ;;  %5655 = vmatpush1.bf16.msra.mxu1 %v8115_v24  ;;  %v8126_v23 = vld [vmem:[#allocation11 + $0x6cc] ss:$28 sps:$4 sm:$0xff]  }
 0x1e2   : > { %5656 = vmatprep.subr.bf16.mxu1 %v8123_v26  ;;  %v8124_v24 = vld [vmem:[#allocation11 + $0x6c8] ss:$28 sps:$4 sm:$0xff]   ;;  %v8132_v26 = vld [vmem:[#allocation11 + $0x694] ss:$28 sps:$4 sm:$0xff]  }
 0x1e4   : > { %2027 = vmatpush2.bf16.msra.mxu0 %v8049_v25  ;;  %v9527_v25 = vpop.f32.mrf.mxu1 }
 0x1e5   : > { %2028 = vmatprep.subr.bf16.mxu0 %v8054_v27  ;;  %5657 = vmatpush2.bf16.msra.mxu1 %v8121_v28  ;;  %v8130_v27 = vld [vmem:[#allocation11 + $0x690] ss:$28 sps:$4 sm:$0xff]  }
 0x1e6   : > { %5658 = vmatprep.subr.bf16.mxu1 %v8129_v30  ;;  %v9529_v28 = vpop.f32.mrf.mxu1  ;;  %v8136_v30 = vld [vmem:[#allocation11 + $0x658] ss:$28 sps:$4 sm:$0xff]  }
 0x1e8   : > { %2029 = vmatpush2.bf16.msra.mxu0 %v8052_v29  ;;  %v8138_v29 = vld [vmem:[#allocation11 + $0x65c] ss:$28 sps:$4 sm:$0xff]  }
 0x1e9   : > { %2030 = vmatprep.subr.bf16.mxu0 %v8057_v31  ;;  %5659 = vmatpush2.bf16.msra.mxu1 %v8127_v32  ;;  %v9531_v31 = vpop.f32.mrf.mxu1  ;;  %v8144_v32 = vld [vmem:[#allocation11 + $0x624] ss:$28 sps:$4 sm:$0xff]  }
 0x1ea   : > { %5660 = vmatprep.subr.bf16.mxu1 %v8135_v37 }
 0x1eb   : > { %v9533_v37 = vpop.f32.mrf.mxu1 }
 0x1ec   : > { %2031 = vmatpush2.bf16.msra.mxu0 %v8055_v33  ;;  %v8142_v33 = vld [vmem:[#allocation11 + $0x620] ss:$28 sps:$4 sm:$0xff]  }
 0x1ed   : > { %2032 = vmatprep.subr.bf16.mxu0 %v8060_v38  ;;  %5661 = vmatpush2.bf16.msra.mxu1 %v8133_v39  ;;  %v8150_v38 = vld [vmem:[#allocation11 + $0x5ec] ss:$28 sps:$4 sm:$0xff]  }
 0x1ee   : > { %5662 = vmatprep.subr.bf16.mxu1 %v8141_v41  ;;  %v8148_v39 = vld [vmem:[#allocation11 + $0x5e8] ss:$28 sps:$4 sm:$0xff]   ;;  %v8156_v41 = vld [vmem:[#allocation11 + $0x5b4] ss:$28 sps:$4 sm:$0xff]  }
 0x1f0   : > { %2033 = vmatpush2.bf16.msra.mxu0 %v8058_v40  ;;  %v9535_v40 = vpop.f32.mrf.mxu1 }
 0x1f1   : > { %2034 = vmatprep.subr.bf16.mxu0 %v8063_v42  ;;  %5663 = vmatpush2.bf16.msra.mxu1 %v8139_v43  ;;  %v8154_v42 = vld [vmem:[#allocation11 + $0x5b0] ss:$28 sps:$4 sm:$0xff]  }
 0x1f2   : > { %5664 = vmatprep.subr.bf16.mxu1 %v8147_v45  ;;  %v9537_v43 = vpop.f32.mrf.mxu1  ;;  %v8160_v45 = vld [vmem:[#allocation11 + $0x578] ss:$28 sps:$4 sm:$0xff]  }
 0x1f4   : > { %2035 = vmatpush2.bf16.msra.mxu0 %v8061_v44  ;;  %v8162_v44 = vld [vmem:[#allocation11 + $0x57c] ss:$28 sps:$4 sm:$0xff]  }
 0x1f5   : > { %2036 = vmatprep.subr.bf16.mxu0 %v8066_v46  ;;  %5665 = vmatpush2.bf16.msra.mxu1 %v8145_v47  ;;  %v9539_v46 = vpop.f32.mrf.mxu1  ;;  %v8168_v47 = vld [vmem:[#allocation11 + $0x544] ss:$28 sps:$4 sm:$0xff]  }
 0x1f6   : > { %5666 = vmatprep.subr.bf16.mxu1 %v8153_v49 }
 0x1f7   : > { %v9541_v49 = vpop.f32.mrf.mxu1 }
 0x1f8   : > { %2037 = vmatpush2.bf16.msra.mxu0 %v8064_v48  ;;  %v8166_v48 = vld [vmem:[#allocation11 + $0x540] ss:$28 sps:$4 sm:$0xff]  }
 0x1f9   : > { %2038 = vmatprep.subr.bf16.mxu0 %v8069_v50  ;;  %5667 = vmatpush2.bf16.msra.mxu1 %v8151_v51  ;;  %v8174_v50 = vld [vmem:[#allocation11 + $0xc0c] ss:$28 sps:$4 sm:$0xff]   ;;  %v9543_v51 = vpop.f32.mrf.mxu1 }
 0x1fa   : > { %5668 = vmatprep.subr.bf16.mxu1 %v8159_v55 }
 0x1fc   : > { %2039 = vmatpush2.bf16.msra.mxu0 %v8067_v53 }
 0x1fd   : > { %2040 = vmatprep.subr.bf16.mxu0 %v8072_v56  ;;  %5669 = vmatpush2.bf16.msra.mxu1 %v8157_v58 }
 0x1fe   : > { %5670 = vmatprep.subr.bf16.mxu1 %v8165_v61 }
 0x200   : > { %2041 = vmatpush2.bf16.msra.mxu0 %v8070_v60 }
 0x201   : > { %5683 = vmatprep.subr.bf16.mxu0 %v8078_v62  ;;  %5671 = vmatpush2.bf16.msra.mxu1 %v8163_v63 }
 0x202   : > { %5726 = vmatprep.subr.bf16.mxu1 %v8171_v1 }
 0x203   : > { %2043 = vmatmul.mubr.bf16.vlgmr.msra.gmra.mxu0 %v9493_v57  ;;  %v8100_v57 = vld [vmem:[#allocation11 + $0x428] ss:$28 sps:$4 sm:$0xff]  }
 0x204   : > { %5684 = vmatpush1.bf16.msra.mxu0 %v8076_v2 }
 0x205   : > { %5685 = vmatprep.subr.bf16.mxu0 %v8084_v3 }
 0x208   : > { %5686 = vmatpush1.bf16.msra.mxu0 %v8082_v5 }
 0x209   : > { %5687 = vmatprep.subr.bf16.mxu0 %v8090_v6 }
 0x20c   : > { %5688 = vmatpush1.bf16.msra.mxu0 %v8088_v8 }
 0x20d   : > { %5689 = vmatprep.subr.bf16.mxu0 %v8096_v9 }
 0x210   : > { %5690 = vmatpush1.bf16.msra.mxu0 %v8094_v54 }
 0x211   : > { %5691 = vmatprep.subr.bf16.mxu0 %v8102_v11 }
 0x214   : > { %5692 = vmatpush1.bf16.msra.mxu0 %v8100_v57 }
 0x215   : > { %5693 = vmatprep.subr.bf16.mxu0 %v8108_v13 }
 0x218   : > { %5694 = vmatpush1.bf16.msra.mxu0 %v8106_v15 }
 0x219   : > { %5695 = vmatprep.subr.bf16.mxu0 %v8114_v17 }
 0x21c   : > { %5696 = vmatpush1.bf16.msra.mxu0 %v8112_v18 }
 0x21d   : > { %5697 = vmatprep.subr.bf16.mxu0 %v8120_v20 }
 0x220   : > { %5698 = vmatpush1.bf16.msra.mxu0 %v8118_v21 }
 0x221   : > { %5699 = vmatprep.subr.bf16.mxu0 %v8126_v23  ;;  %v8175_v23 = vld [vmem:[#allocation11 + $0x850] ss:$28 sps:$4 sm:$0xff]  }
 0x224   : > { %5700 = vmatpush2.bf16.msra.mxu0 %v8124_v24  ;;  %v8178_v24 = vld [vmem:[#allocation11 + $0xbd0] ss:$28 sps:$4 sm:$0xff]  }
 0x225   : > { %5701 = vmatprep.subr.bf16.mxu0 %v8132_v26  ;;  %v8183_v26 = vld [vmem:[#allocation11 + $0x81c] ss:$28 sps:$4 sm:$0xff]  }
 0x228   : > { %5702 = vmatpush2.bf16.msra.mxu0 %v8130_v27  ;;  %v8186_v27 = vld [vmem:[#allocation11 + $0xb9c] ss:$28 sps:$4 sm:$0xff]  }
 0x229   : > { %5703 = vmatprep.subr.bf16.mxu0 %v8138_v29  ;;  %v8181_v29 = vld [vmem:[#allocation11 + $0x818] ss:$28 sps:$4 sm:$0xff]  }
 0x22c   : > { %5704 = vmatpush2.bf16.msra.mxu0 %v8136_v30  ;;  %v8184_v30 = vld [vmem:[#allocation11 + $0xb98] ss:$28 sps:$4 sm:$0xff]  }
 0x22d   : > { %5705 = vmatprep.subr.bf16.mxu0 %v8144_v32  ;;  %v8189_v32 = vld [vmem:[#allocation11 + $0x7e4] ss:$28 sps:$4 sm:$0xff]  }
 0x230   : > { %5706 = vmatpush2.bf16.msra.mxu0 %v8142_v33  ;;  %v8192_v33 = vld [vmem:[#allocation11 + $0xb64] ss:$28 sps:$4 sm:$0xff]  }
 0x231   : > { %5707 = vmatprep.subr.bf16.mxu0 %v8150_v38  ;;  %v8187_v38 = vld [vmem:[#allocation11 + $0x7e0] ss:$28 sps:$4 sm:$0xff]  }
 0x234   : > { %5708 = vmatpush2.bf16.msra.mxu0 %v8148_v39  ;;  %v8190_v39 = vld [vmem:[#allocation11 + $0xb60] ss:$28 sps:$4 sm:$0xff]  }
 0x235   : > { %5709 = vmatprep.subr.bf16.mxu0 %v8156_v41  ;;  %v8195_v41 = vld [vmem:[#allocation11 + $0x7ac] ss:$28 sps:$4 sm:$0xff]  }
 0x238   : > { %5710 = vmatpush2.bf16.msra.mxu0 %v8154_v42  ;;  %v8198_v42 = vld [vmem:[#allocation11 + $0xb2c] ss:$28 sps:$4 sm:$0xff]  }
 0x239   : > { %5711 = vmatprep.subr.bf16.mxu0 %v8162_v44  ;;  %v8193_v44 = vld [vmem:[#allocation11 + $0x7a8] ss:$28 sps:$4 sm:$0xff]  }
 0x23c   : > { %5712 = vmatpush2.bf16.msra.mxu0 %v8160_v45  ;;  %v8196_v45 = vld [vmem:[#allocation11 + $0xb28] ss:$28 sps:$4 sm:$0xff]  }
 0x23d   : > { %5713 = vmatprep.subr.bf16.mxu0 %v8168_v47  ;;  %v8201_v47 = vld [vmem:[#allocation11 + $0x774] ss:$28 sps:$4 sm:$0xff]  }
 0x240   : > { %5714 = vmatpush2.bf16.msra.mxu0 %v8166_v48  ;;  %v8204_v48 = vld [vmem:[#allocation11 + $0xaf4] ss:$28 sps:$4 sm:$0xff]  }
 0x241   : > { %5769 = vmatprep.subr.bf16.mxu0 %v8174_v50  ;;  %v8199_v50 = vld [vmem:[#allocation11 + $0x770] ss:$28 sps:$4 sm:$0xff]  }
 0x243   : > { %v1872_v53 = vpop.f32.mrf.mxu0  ;;  %v1915_v55 = vpop.f32.mrf.mxu1 }
 0x244   : > { %v1873_v3 = vadd.f32 %v1872_v53, %v9504_v52  ;;  %v1916_v5 = vadd.f32 %v1915_v55, %v9513_v7  ;;  %v8169_v52 = vld [vmem:[#allocation11 + $0x888] ss:$28 sps:$4 sm:$0xff]   ;;  %v8202_v53 = vld [vmem:[#allocation11 + $0xaf0] ss:$28 sps:$4 sm:$0xff]   ;;  %v8207_v55 = vld [vmem:[#allocation11 + $0x73c] ss:$28 sps:$4 sm:$0xff]  }
 0x245   : > { %v1874_v56 = vpop.f32.mrf.mxu0  ;;  %v1917_v58 = vpop.f32.mrf.mxu1  ;;  %v8172_v7 = vld [vmem:[#allocation11 + $0xc08] ss:$28 sps:$4 sm:$0xff]  }
 0x246   : > { %v1875_v62 = vadd.f32 %v1874_v56, %v9506_v59  ;;  %v1918_v63 = vadd.f32 %v1917_v58, %v9515_v10  ;;  %v2053_v17 = vmax.f32 %v1873_v3, 0.0  ;;  %v8210_v56 = vld [vmem:[#allocation11 + $0xabc] ss:$28 sps:$4 sm:$0xff]   ;;  %v8222_v3 = vld [vmem:[#allocation11 + $0xdcc] ss:$28 sps:$4 sm:$0xff]  }
 0x247   : > { %v1876_v60 = vpop.f32.mrf.mxu0  ;;  %v1919_v61 = vpop.f32.mrf.mxu1  ;;  %v8205_v58 = vld [vmem:[#allocation11 + $0x738] ss:$28 sps:$4 sm:$0xff]  }
 0x248   : > { %v1877_v1 = vadd.f32 %v1876_v60, %v9508_v0  ;;  %v1920_v2 = vadd.f32 %v1919_v61, %v9517_v12  ;;  %v2054_v13 = vmax.f32 %v1875_v62, 0.0  ;;  %v2056_v59 = vmax.f32 %v1918_v63, 0.0  ;;  %v8208_v60 = vld [vmem:[#allocation11 + $0xab8] ss:$28 sps:$4 sm:$0xff]   ;;  %v8213_v61 = vld [vmem:[#allocation11 + $0x704] ss:$28 sps:$4 sm:$0xff]  }
 0x249   : > { %v1878_v6 = vpop.f32.mrf.mxu0  ;;  %v1921_v8 = vpop.f32.mrf.mxu1  ;;  %v2055_v0 = vmax.f32 %v1916_v5, 0.0  ;;  %v8216_v62 = vld [vmem:[#allocation11 + $0xa84] ss:$28 sps:$4 sm:$0xff]  }
 0x24a   : > { %v1879_v9 = vadd.f32 %v1878_v6, %v9510_v4  ;;  %v1922_v54 = vadd.f32 %v1921_v8, %v9519_v14  ;;  %v2063_v11 = vmax.f32 %v1877_v1, 0.0  ;;  %v2065_v57 = vmax.f32 %v1920_v2, 0.0  ;;  %v8177_v4 = vld [vmem:[#allocation11 + $0x854] ss:$28 sps:$4 sm:$0xff]   ;;  %v8211_v63 = vld [vmem:[#allocation11 + $0x700] ss:$28 sps:$4 sm:$0xff]  }
 0x24b   : > { %v8180_v14 = vld [vmem:[#allocation11 + $0xbd4] ss:$28 sps:$4 sm:$0xff]   ;;  %v8214_v1 = vld [vmem:[#allocation11 + $0xa80] ss:$28 sps:$4 sm:$0xff]   ;;  %v8219_v2 = vld [vmem:[#allocation11 + $0xa4c] ss:$28 sps:$4 sm:$0xff]  }
 0x24c   : > { %v2064_v15 = vmax.f32 %v1879_v9, 0.0  ;;  %v2066_v10 = vmax.f32 %v1922_v54, 0.0  ;;  %v9557_v20 = vpack.c.bf16 %v2063_v11, %v2053_v17  ;;  %v9559_v21 = vpack.c.bf16 %v2065_v57, %v2055_v0  ;;  %v8217_v5 = vld [vmem:[#allocation11 + $0xa48] ss:$28 sps:$4 sm:$0xff]   ;;  %v8225_v8 = vld [vmem:[#allocation11 + $0xa14] ss:$28 sps:$4 sm:$0xff]  }
 0x24d   : > { %v8220_v6 = vld [vmem:[#allocation11 + $0xdc8] ss:$28 sps:$4 sm:$0xff]   ;;  %v8228_v9 = vld [vmem:[#allocation11 + $0xd94] ss:$28 sps:$4 sm:$0xff]   ;;  %v8231_v57 = vld [vmem:[#allocation11 + $0x9dc] ss:$28 sps:$4 sm:$0xff]  }
 0x24e   : > { %v9553_v18 = vpack.c.bf16 %v2064_v15, %v2054_v13  ;;  %v9555_v12 = vpack.c.bf16 %v2066_v10, %v2056_v59  ;;  %v8223_v54 = vld [vmem:[#allocation11 + $0xa10] ss:$28 sps:$4 sm:$0xff]   ;;  %v8234_v13 = vld [vmem:[#allocation11 + $0xd5c] ss:$28 sps:$4 sm:$0xff]   ;;  %v8237_v10 = vld [vmem:[#allocation11 + $0x9a4] ss:$28 sps:$4 sm:$0xff]  }
 0x24f   : > { %v8226_v11 = vld [vmem:[#allocation11 + $0xd90] ss:$28 sps:$4 sm:$0xff]   ;;  %v8229_v59 = vld [vmem:[#allocation11 + $0x9d8] ss:$28 sps:$4 sm:$0xff]   ;;  %v8240_v17 = vld [vmem:[#allocation11 + $0xd24] ss:$28 sps:$4 sm:$0xff]  }
 0x250   : > { %5672 = vmatprep.mubr.bf16.mxu1 %v9553_v18  ;;  %5715 = vmatprep.mubr.bf16.mxu0 %v9555_v12  ;;  %v8232_v15 = vld [vmem:[#allocation11 + $0xd58] ss:$28 sps:$4 sm:$0xff]   ;;  %v8235_v0 = vld [vmem:[#allocation11 + $0x9a0] ss:$28 sps:$4 sm:$0xff]  }
 0x251   : > { %5673 = vmatmul.mubr.bf16.vlgmr.msra.gmra.mxu1 %v9557_v20  ;;  %5716 = vmatmul.mubr.bf16.vlgmr.msra.gmra.mxu0 %v9559_v21 }
 0x252   : > { %5727 = vmatpush1.bf16.msra.mxu1 %v8169_v52  ;;  %5770 = vmatpush1.bf16.msra.mxu0 %v8172_v7  ;;  %v8238_v52 = vld [vmem:[#allocation11 + $0xd20] ss:$28 sps:$4 sm:$0xff]   ;;  %v8243_v7 = vld [vmem:[#allocation11 + $0x96c] ss:$28 sps:$4 sm:$0xff]  }
 0x253   : > { %5728 = vmatprep.subr.bf16.mxu1 %v8177_v4  ;;  %5771 = vmatprep.subr.bf16.mxu0 %v8180_v14  ;;  %v8246_v4 = vld [vmem:[#allocation11 + $0xcec] ss:$28 sps:$4 sm:$0xff]  }
 0x254   : > { %v8241_v14 = vld [vmem:[#allocation11 + $0x968] ss:$28 sps:$4 sm:$0xff]  }
 0x256   : > { %5729 = vmatpush1.bf16.msra.mxu1 %v8175_v23  ;;  %5772 = vmatpush1.bf16.msra.mxu0 %v8178_v24  ;;  %v8244_v23 = vld [vmem:[#allocation11 + $0xce8] ss:$28 sps:$4 sm:$0xff]   ;;  %v8249_v24 = vld [vmem:[#allocation11 + $0x934] ss:$28 sps:$4 sm:$0xff]  }
 0x257   : > { %5730 = vmatprep.subr.bf16.mxu1 %v8183_v26  ;;  %5773 = vmatprep.subr.bf16.mxu0 %v8186_v27  ;;  %v8252_v26 = vld [vmem:[#allocation11 + $0xcb4] ss:$28 sps:$4 sm:$0xff]  }
 0x258   : > { %v8247_v27 = vld [vmem:[#allocation11 + $0x930] ss:$28 sps:$4 sm:$0xff]  }
 0x25a   : > { %5731 = vmatpush1.bf16.msra.mxu1 %v8181_v29  ;;  %5774 = vmatpush1.bf16.msra.mxu0 %v8184_v30  ;;  %v8250_v29 = vld [vmem:[#allocation11 + $0xcb0] ss:$28 sps:$4 sm:$0xff]  }
 0x25b   : > { %5732 = vmatprep.subr.bf16.mxu1 %v8189_v32  ;;  %5775 = vmatprep.subr.bf16.mxu0 %v8192_v33  ;;  %v8255_v33 = vld [vmem:[#allocation11 + $0x8fc] ss:$28 sps:$4 sm:$0xff]  }
 0x25e   : > { %5733 = vmatpush1.bf16.msra.mxu1 %v8187_v38  ;;  %5776 = vmatpush1.bf16.msra.mxu0 %v8190_v39  ;;  %v8258_v38 = vld [vmem:[#allocation11 + $0xc7c] ss:$28 sps:$4 sm:$0xff]  }
 0x25f   : > { %5734 = vmatprep.subr.bf16.mxu1 %v8195_v41  ;;  %5777 = vmatprep.subr.bf16.mxu0 %v8198_v42  ;;  %v8253_v42 = vld [vmem:[#allocation11 + $0x8f8] ss:$28 sps:$4 sm:$0xff]  }
 0x262   : > { %5735 = vmatpush1.bf16.msra.mxu1 %v8193_v44  ;;  %5778 = vmatpush1.bf16.msra.mxu0 %v8196_v45  ;;  %v8256_v44 = vld [vmem:[#allocation11 + $0xc78] ss:$28 sps:$4 sm:$0xff]  }
 0x263   : > { %5736 = vmatprep.subr.bf16.mxu1 %v8201_v47  ;;  %5779 = vmatprep.subr.bf16.mxu0 %v8204_v48  ;;  %v8261_v48 = vld [vmem:[#allocation11 + $0x8c4] ss:$28 sps:$4 sm:$0xff]  }
 0x266   : > { %5737 = vmatpush1.bf16.msra.mxu1 %v8199_v50  ;;  %5780 = vmatpush1.bf16.msra.mxu0 %v8202_v53  ;;  %v8264_v50 = vld [vmem:[#allocation11 + $0xc44] ss:$28 sps:$4 sm:$0xff]  }
 0x267   : > { %5738 = vmatprep.subr.bf16.mxu1 %v8207_v55  ;;  %5781 = vmatprep.subr.bf16.mxu0 %v8210_v56 }
 0x26a   : > { %5739 = vmatpush1.bf16.msra.mxu1 %v8205_v58  ;;  %5782 = vmatpush1.bf16.msra.mxu0 %v8208_v60 }
 0x26b   : > { %5740 = vmatprep.subr.bf16.mxu1 %v8213_v61  ;;  %5783 = vmatprep.subr.bf16.mxu0 %v8216_v62 }
 0x26e   : > { %5741 = vmatpush1.bf16.msra.mxu1 %v8211_v63  ;;  %5784 = vmatpush1.bf16.msra.mxu0 %v8214_v1 }
 0x26f   : > { %5742 = vmatprep.subr.bf16.mxu1 %v8219_v2  ;;  %5785 = vmatprep.subr.bf16.mxu0 %v8222_v3  ;;  %v8259_v3 = vld [vmem:[#allocation11 + $0x8c0] ss:$28 sps:$4 sm:$0xff]  }
 0x272   : > { %5743 = vmatpush2.bf16.msra.mxu1 %v8217_v5  ;;  %5786 = vmatpush2.bf16.msra.mxu0 %v8220_v6 }
 0x273   : > { %5744 = vmatprep.subr.bf16.mxu1 %v8225_v8  ;;  %5787 = vmatprep.subr.bf16.mxu0 %v8228_v9 }
 0x276   : > { %5745 = vmatpush2.bf16.msra.mxu1 %v8223_v54  ;;  %5788 = vmatpush2.bf16.msra.mxu0 %v8226_v11 }
 0x277   : > { %5746 = vmatprep.subr.bf16.mxu1 %v8231_v57  ;;  %5789 = vmatprep.subr.bf16.mxu0 %v8234_v13  ;;  %v8268_v57 = vld [vmem:[#allocation11 + $0x190] ss:$28 sps:$4 sm:$0xff]  }
 0x27a   : > { %5747 = vmatpush2.bf16.msra.mxu1 %v8229_v59  ;;  %5790 = vmatpush2.bf16.msra.mxu0 %v8232_v15  ;;  %v8273_v15 = vld [vmem:[#allocation11 + $0xf54] ss:$28 sps:$4 sm:$0xff]  }
 0x27b   : > { %5748 = vmatprep.subr.bf16.mxu1 %v8237_v10  ;;  %5791 = vmatprep.subr.bf16.mxu0 %v8240_v17  ;;  %v8276_v10 = vld [vmem:[#allocation11 + $0x15c] ss:$28 sps:$4 sm:$0xff]   ;;  %v8271_v17 = vld [vmem:[#allocation11 + $0xf50] ss:$28 sps:$4 sm:$0xff]  }
 0x27e   : > { %5749 = vmatpush2.bf16.msra.mxu1 %v8235_v0  ;;  %5792 = vmatpush2.bf16.msra.mxu0 %v8238_v52  ;;  %v8274_v0 = vld [vmem:[#allocation11 + $0x158] ss:$28 sps:$4 sm:$0xff]  }
 0x27f   : > { %5750 = vmatprep.subr.bf16.mxu1 %v8243_v7  ;;  %5793 = vmatprep.subr.bf16.mxu0 %v8246_v4  ;;  %v8279_v52 = vld [vmem:[#allocation11 + $0xf1c] ss:$28 sps:$4 sm:$0xff]   ;;  %v8282_v7 = vld [vmem:[#allocation11 + $0x124] ss:$28 sps:$4 sm:$0xff]  }
 0x280   : > { %v8277_v4 = vld [vmem:[#allocation11 + $0xf18] ss:$28 sps:$4 sm:$0xff]  }
 0x282   : > { %5751 = vmatpush2.bf16.msra.mxu1 %v8241_v14  ;;  %5794 = vmatpush2.bf16.msra.mxu0 %v8244_v23  ;;  %v8280_v14 = vld [vmem:[#allocation11 + $0x120] ss:$28 sps:$4 sm:$0xff]  }
 0x283   : > { %v1958_v30 = vpop.f32.mrf.mxu0  ;;  %v2001_v32 = vpop.f32.mrf.mxu1  ;;  %5752 = vmatprep.subr.bf16.mxu1 %v8249_v24  ;;  %5795 = vmatprep.subr.bf16.mxu0 %v8252_v26  ;;  %v8285_v23 = vld [vmem:[#allocation11 + $0xee4] ss:$28 sps:$4 sm:$0xff]   ;;  %v8288_v24 = vld [vmem:[#allocation11 + $0xec] ss:$28 sps:$4 sm:$0xff]  }
 0x284   : > { %v1959_v60 = vadd.f32 %v1958_v30, %v9521_v16  ;;  %v2002_v61 = vadd.f32 %v2001_v32, %v9529_v28  ;;  %v8283_v26 = vld [vmem:[#allocation11 + $0xee0] ss:$28 sps:$4 sm:$0xff]   ;;  %v8294_v30 = vld [vmem:[#allocation11 + $0xb4] ss:$28 sps:$4 sm:$0xff]   ;;  %v8289_v32 = vld [vmem:[#allocation11 + $0xea8] ss:$28 sps:$4 sm:$0xff]  }
 0x285   : > { %v1960_v39 = vpop.f32.mrf.mxu0  ;;  %v2003_v41 = vpop.f32.mrf.mxu1 }
 0x286   : > { %5753 = vmatpush2.bf16.msra.mxu1 %v8247_v27  ;;  %5796 = vmatpush2.bf16.msra.mxu0 %v8250_v29  ;;  %v1961_v53 = vadd.f32 %v1960_v39, %v9523_v19  ;;  %v2004_v55 = vadd.f32 %v2003_v41, %v9531_v31  ;;  %v8262_v19 = vld [vmem:[#allocation11 + $0xc40] ss:$28 sps:$4 sm:$0xff]   ;;  %v2057_v9 = vmax.f32 %v1959_v60, 0.0  ;;  %v2059_v54 = vmax.f32 %v2002_v61, 0.0  ;;  %v8286_v27 = vld [vmem:[#allocation11 + $0xe8] ss:$28 sps:$4 sm:$0xff]  }
 0x287   : > { %v1962_v45 = vpop.f32.mrf.mxu0  ;;  %v2005_v47 = vpop.f32.mrf.mxu1  ;;  %5754 = vmatprep.subr.bf16.mxu1 %v8255_v33  ;;  %5797 = vmatprep.subr.bf16.mxu0 %v8258_v38  ;;  %v8291_v29 = vld [vmem:[#allocation11 + $0xeac] ss:$28 sps:$4 sm:$0xff]   ;;  %v8297_v38 = vld [vmem:[#allocation11 + $0xe74] ss:$28 sps:$4 sm:$0xff]   ;;  %v8300_v39 = vld [vmem:[#allocation11 + $0x7c] ss:$28 sps:$4 sm:$0xff]  }
 0x288   : > { %v1963_v56 = vadd.f32 %v1962_v45, %v9525_v22  ;;  %v2006_v58 = vadd.f32 %v2005_v47, %v9533_v37  ;;  %v8267_v22 = vld [vmem:[#allocation11 + $0xf8c] ss:$28 sps:$4 sm:$0xff]   ;;  %v8270_v37 = vld [vmem:[#allocation11 + $0x194] ss:$28 sps:$4 sm:$0xff]   ;;  %v2058_v6 = vmax.f32 %v1961_v53, 0.0  ;;  %v2060_v16 = vmax.f32 %v2004_v55, 0.0 }
 0x289   : > { %v1964_v62 = vpop.f32.mrf.mxu0  ;;  %v2007_v63 = vpop.f32.mrf.mxu1  ;;  %v8292_v33 = vld [vmem:[#allocation11 + $0xb0] ss:$28 sps:$4 sm:$0xff]   ;;  %v8306_v45 = vld [vmem:[#allocation11 + $0x44] ss:$28 sps:$4 sm:$0xff]   ;;  %v8301_v47 = vld [vmem:[#allocation11 + $0xe38] ss:$28 sps:$4 sm:$0xff]  }
 0x28a   : > { %v1965_v1 = vadd.f32 %v1964_v62, %v9527_v25  ;;  %v2008_v2 = vadd.f32 %v2007_v63, %v9535_v40  ;;  %5755 = vmatpush2.bf16.msra.mxu1 %v8253_v42  ;;  %5798 = vmatpush2.bf16.msra.mxu0 %v8256_v44  ;;  %v2067_v5 = vmax.f32 %v1963_v56, 0.0  ;;  %v2069_v31 = vmax.f32 %v2006_v58, 0.0  ;;  %v8265_v40 = vld [vmem:[#allocation11 + $0xf88] ss:$28 sps:$4 sm:$0xff]   ;;  %v8295_v41 = vld [vmem:[#allocation11 + $0xe70] ss:$28 sps:$4 sm:$0xff]  }
 0x28b   : > { %5756 = vmatprep.subr.bf16.mxu1 %v8261_v48  ;;  %5799 = vmatprep.subr.bf16.mxu0 %v8264_v50  ;;  %v8298_v42 = vld [vmem:[#allocation11 + $0x78] ss:$28 sps:$4 sm:$0xff]   ;;  %v8304_v48 = vld [vmem:[#allocation11 + $0x40] ss:$28 sps:$4 sm:$0xff]   ;;  %v8312_v53 = vld [vmem:[#allocation11 + $0xc] ss:$28 sps:$4 sm:$0xff]  }
 0x28c   : > { %v2068_v8 = vmax.f32 %v1965_v1, 0.0  ;;  %v2070_v28 = vmax.f32 %v2008_v2, 0.0  ;;  %v9577_v13 = vpack.c.bf16 %v2067_v5, %v2057_v9  ;;  %v9579_v59 = vpack.c.bf16 %v2069_v31, %v2059_v54  ;;  %v8303_v44 = vld [vmem:[#allocation11 + $0xe3c] ss:$28 sps:$4 sm:$0xff]   ;;  %v8309_v50 = vld [vmem:[#allocation11 + $0xe04] ss:$28 sps:$4 sm:$0xff]  }
 0x28d   : > { %v8307_v55 = vld [vmem:[#allocation11 + $0xe00] ss:$28 sps:$4 sm:$0xff]   ;;  %v8310_v56 = vld [vmem:[#allocation11 + $0x8] ss:$28 sps:$4 sm:$0xff]   ;;  %v8318_v60 = vld [vmem:[#allocation11 + $0x354] ss:$28 sps:$4 sm:$0xff]  }
 0x28e   : > { %v9573_v11 = vpack.c.bf16 %v2068_v8, %v2058_v6  ;;  %v9575_v25 = vpack.c.bf16 %v2070_v28, %v2060_v16  ;;  %5757 = vmatpush2.bf16.msra.mxu1 %v8259_v3  ;;  %5800 = vmatpush2.bf16.msra.mxu0 %v8262_v19  ;;  %v8315_v58 = vld [vmem:[#allocation11 + $0x114c] ss:$28 sps:$4 sm:$0xff]   ;;  %v8321_v63 = vld [vmem:[#allocation11 + $0x1114] ss:$28 sps:$4 sm:$0xff]   ;;  %v8324_v1 = vld [vmem:[#allocation11 + $0x31c] ss:$28 sps:$4 sm:$0xff]  }
 0x28f   : > { %5812 = vmatprep.subr.bf16.mxu1 %v8267_v22  ;;  %5855 = vmatprep.subr.bf16.mxu0 %v8270_v37  ;;  %v8313_v61 = vld [vmem:[#allocation11 + $0x1148] ss:$28 sps:$4 sm:$0xff]   ;;  %v8316_v62 = vld [vmem:[#allocation11 + $0x350] ss:$28 sps:$4 sm:$0xff]   ;;  %v8322_v3 = vld [vmem:[#allocation11 + $0x318] ss:$28 sps:$4 sm:$0xff]  }
 0x290   : > { %5758 = vmatprep.mubr.bf16.mxu1 %v9573_v11  ;;  %5801 = vmatprep.mubr.bf16.mxu0 %v9575_v25  ;;  %v8319_v2 = vld [vmem:[#allocation11 + $0x1110] ss:$28 sps:$4 sm:$0xff]   ;;  %v8327_v19 = vld [vmem:[#allocation11 + $0x10dc] ss:$28 sps:$4 sm:$0xff]   ;;  %v8330_v5 = vld [vmem:[#allocation11 + $0x2e4] ss:$28 sps:$4 sm:$0xff]  }
 0x291   : > { %5759 = vmatmul.mubr.bf16.vlgmr.msra.gmra.mxu1 %v9577_v13  ;;  %5802 = vmatmul.mubr.bf16.vlgmr.msra.gmra.mxu0 %v9579_v59  ;;  %v8325_v31 = vld [vmem:[#allocation11 + $0x10d8] ss:$28 sps:$4 sm:$0xff]   ;;  %v8328_v22 = vld [vmem:[#allocation11 + $0x2e0] ss:$28 sps:$4 sm:$0xff]   ;;  %v8336_v6 = vld [vmem:[#allocation11 + $0x2ac] ss:$28 sps:$4 sm:$0xff]  }
 0x292   : > { %5813 = vmatpush1.bf16.msra.mxu1 %v8265_v40  ;;  %5856 = vmatpush1.bf16.msra.mxu0 %v8268_v57  ;;  %v8333_v37 = vld [vmem:[#allocation11 + $0x10a4] ss:$28 sps:$4 sm:$0xff]   ;;  %v8339_v28 = vld [vmem:[#allocation11 + $0x106c] ss:$28 sps:$4 sm:$0xff]   ;;  %v8342_v9 = vld [vmem:[#allocation11 + $0x274] ss:$28 sps:$4 sm:$0xff]  }
 0x293   : > { %5887 = vmatprep.mubr.bf16.mxu0 %v9553_v18  ;;  %5814 = vmatprep.subr.bf16.mxu1 %v8273_v15  ;;  %v8331_v16 = vld [vmem:[#allocation11 + $0x10a0] ss:$28 sps:$4 sm:$0xff]   ;;  %v8334_v8 = vld [vmem:[#allocation11 + $0x2a8] ss:$28 sps:$4 sm:$0xff]   ;;  %v8340_v40 = vld [vmem:[#allocation11 + $0x270] ss:$28 sps:$4 sm:$0xff]  }
 0x294   : > { %5857 = vmatprep.subr.bf16.mxu0 %v8276_v10  ;;  %v8337_v54 = vld [vmem:[#allocation11 + $0x1068] ss:$28 sps:$4 sm:$0xff]   ;;  %v8345_v57 = vld [vmem:[#allocation11 + $0x1034] ss:$28 sps:$4 sm:$0xff]   ;;  %v8348_v15 = vld [vmem:[#allocation11 + $0x23c] ss:$28 sps:$4 sm:$0xff]  }
 0x295   : > { %v8343_v10 = vld [vmem:[#allocation11 + $0x1030] ss:$28 sps:$4 sm:$0xff]  }
 0x296   : > { %5815 = vmatpush1.bf16.msra.mxu1 %v8271_v17  ;;  %5858 = vmatpush1.bf16.msra.mxu0 %v8274_v0  ;;  %v8346_v17 = vld [vmem:[#allocation11 + $0x238] ss:$28 sps:$4 sm:$0xff]  }
 0x297   : > { %5816 = vmatprep.subr.bf16.mxu1 %v8279_v52  ;;  %5859 = vmatprep.subr.bf16.mxu0 %v8282_v7  ;;  %v8351_v52 = vld [vmem:[#allocation11 + $0xffc] ss:$28 sps:$4 sm:$0xff]   ;;  %v8354_v7 = vld [vmem:[#allocation11 + $0x204] ss:$28 sps:$4 sm:$0xff]  }
 0x29a   : > { %5817 = vmatpush1.bf16.msra.mxu1 %v8277_v4  ;;  %5860 = vmatpush1.bf16.msra.mxu0 %v8280_v14  ;;  %v8349_v14 = vld [vmem:[#allocation11 + $0xff8] ss:$28 sps:$4 sm:$0xff]  }
 0x29b   : > { %5818 = vmatprep.subr.bf16.mxu1 %v8285_v23  ;;  %5861 = vmatprep.subr.bf16.mxu0 %v8288_v24  ;;  %v8352_v23 = vld [vmem:[#allocation11 + $0x200] ss:$28 sps:$4 sm:$0xff]  }
 0x29e   : > { %5819 = vmatpush1.bf16.msra.mxu1 %v8283_v26  ;;  %5862 = vmatpush1.bf16.msra.mxu0 %v8286_v27  ;;  %v8357_v26 = vld [vmem:[#allocation11 + $0xfc4] ss:$28 sps:$4 sm:$0xff]   ;;  %v8360_v27 = vld [vmem:[#allocation11 + $0x1cc] ss:$28 sps:$4 sm:$0xff]  }
 0x29f   : > { %5820 = vmatprep.subr.bf16.mxu1 %v8291_v29  ;;  %5863 = vmatprep.subr.bf16.mxu0 %v8294_v30 }
 0x2a2   : > { %5821 = vmatpush1.bf16.msra.mxu1 %v8289_v32  ;;  %5864 = vmatpush1.bf16.msra.mxu0 %v8292_v33 }
 0x2a3   : > { %5822 = vmatprep.subr.bf16.mxu1 %v8297_v38  ;;  %5865 = vmatprep.subr.bf16.mxu0 %v8300_v39  ;;  %v8355_v39 = vld [vmem:[#allocation11 + $0xfc0] ss:$28 sps:$4 sm:$0xff]  }
 0x2a6   : > { %5823 = vmatpush1.bf16.msra.mxu1 %v8295_v41  ;;  %5866 = vmatpush1.bf16.msra.mxu0 %v8298_v42  ;;  %v8358_v41 = vld [vmem:[#allocation11 + $0x1c8] ss:$28 sps:$4 sm:$0xff]  }
 0x2a7   : > { %5824 = vmatprep.subr.bf16.mxu1 %v8303_v44  ;;  %5867 = vmatprep.subr.bf16.mxu0 %v8306_v45  ;;  %v8363_v44 = vld [vmem:[#allocation11 + $0x514] ss:$28 sps:$4 sm:$0xff]  }
 0x2a8   : > { %v8366_v45 = vld [vmem:[#allocation11 + $0x894] ss:$28 sps:$4 sm:$0xff]  }
 0x2aa   : > { %5825 = vmatpush1.bf16.msra.mxu1 %v8301_v47  ;;  %5868 = vmatpush1.bf16.msra.mxu0 %v8304_v48 }
 0x2ab   : > { %5826 = vmatprep.subr.bf16.mxu1 %v8309_v50  ;;  %5869 = vmatprep.subr.bf16.mxu0 %v8312_v53  ;;  %v8369_v53 = vld [vmem:[#allocation11 + $0x4dc] ss:$28 sps:$4 sm:$0xff]  }
 0x2ae   : > { %5827 = vmatpush1.bf16.msra.mxu1 %v8307_v55  ;;  %5870 = vmatpush1.bf16.msra.mxu0 %v8310_v56  ;;  %v8372_v55 = vld [vmem:[#allocation11 + $0x85c] ss:$28 sps:$4 sm:$0xff]  }
 0x2af   : > { %5828 = vmatprep.subr.bf16.mxu1 %v8315_v58  ;;  %5871 = vmatprep.subr.bf16.mxu0 %v8318_v60  ;;  %v8367_v56 = vld [vmem:[#allocation11 + $0x4d8] ss:$28 sps:$4 sm:$0xff]   ;;  %v8375_v60 = vld [vmem:[#allocation11 + $0x4a4] ss:$28 sps:$4 sm:$0xff]  }
 0x2b0   : > { %v8370_v58 = vld [vmem:[#allocation11 + $0x858] ss:$28 sps:$4 sm:$0xff]  }
 0x2b2   : > { %5829 = vmatpush2.bf16.msra.mxu1 %v8313_v61  ;;  %5872 = vmatpush2.bf16.msra.mxu0 %v8316_v62  ;;  %v8378_v61 = vld [vmem:[#allocation11 + $0x824] ss:$28 sps:$4 sm:$0xff]  }
 0x2b3   : > { %5830 = vmatprep.subr.bf16.mxu1 %v8321_v63  ;;  %5873 = vmatprep.subr.bf16.mxu0 %v8324_v1  ;;  %v8373_v62 = vld [vmem:[#allocation11 + $0x4a0] ss:$28 sps:$4 sm:$0xff]   ;;  %v8381_v1 = vld [vmem:[#allocation11 + $0x46c] ss:$28 sps:$4 sm:$0xff]  }
 0x2b4   : > { %v8376_v63 = vld [vmem:[#allocation11 + $0x820] ss:$28 sps:$4 sm:$0xff]  }
 0x2b6   : > { %5831 = vmatpush2.bf16.msra.mxu1 %v8319_v2  ;;  %5874 = vmatpush2.bf16.msra.mxu0 %v8322_v3  ;;  %v8384_v2 = vld [vmem:[#allocation11 + $0x7ec] ss:$28 sps:$4 sm:$0xff]  }
 0x2b7   : > { %5832 = vmatprep.subr.bf16.mxu1 %v8327_v19  ;;  %5875 = vmatprep.subr.bf16.mxu0 %v8330_v5  ;;  %v8379_v3 = vld [vmem:[#allocation11 + $0x468] ss:$28 sps:$4 sm:$0xff]   ;;  %v8387_v5 = vld [vmem:[#allocation11 + $0x434] ss:$28 sps:$4 sm:$0xff]  }
 0x2b8   : > { %v8382_v19 = vld [vmem:[#allocation11 + $0x7e8] ss:$28 sps:$4 sm:$0xff]  }
 0x2ba   : > { %5833 = vmatpush2.bf16.msra.mxu1 %v8325_v31  ;;  %5876 = vmatpush2.bf16.msra.mxu0 %v8328_v22  ;;  %v8390_v31 = vld [vmem:[#allocation11 + $0x7b4] ss:$28 sps:$4 sm:$0xff]  }
 0x2bb   : > { %5834 = vmatprep.subr.bf16.mxu1 %v8333_v37  ;;  %5877 = vmatprep.subr.bf16.mxu0 %v8336_v6  ;;  %v8385_v22 = vld [vmem:[#allocation11 + $0x430] ss:$28 sps:$4 sm:$0xff]   ;;  %v8393_v6 = vld [vmem:[#allocation11 + $0x3fc] ss:$28 sps:$4 sm:$0xff]  }
 0x2bc   : > { %v8388_v37 = vld [vmem:[#allocation11 + $0x7b0] ss:$28 sps:$4 sm:$0xff]  }
 0x2be   : > { %5835 = vmatpush2.bf16.msra.mxu1 %v8331_v16  ;;  %5878 = vmatpush2.bf16.msra.mxu0 %v8334_v8  ;;  %v8396_v16 = vld [vmem:[#allocation11 + $0x77c] ss:$28 sps:$4 sm:$0xff]  }
 0x2bf   : > { %5836 = vmatprep.subr.bf16.mxu1 %v8339_v28  ;;  %5879 = vmatprep.subr.bf16.mxu0 %v8342_v9  ;;  %v8391_v8 = vld [vmem:[#allocation11 + $0x3f8] ss:$28 sps:$4 sm:$0xff]   ;;  %v8399_v9 = vld [vmem:[#allocation11 + $0x3c4] ss:$28 sps:$4 sm:$0xff]  }
 0x2c0   : > { %v8394_v28 = vld [vmem:[#allocation11 + $0x778] ss:$28 sps:$4 sm:$0xff]  }
 0x2c2   : > { %5837 = vmatpush2.bf16.msra.mxu1 %v8337_v54  ;;  %5880 = vmatpush2.bf16.msra.mxu0 %v8340_v40  ;;  %v8402_v54 = vld [vmem:[#allocation11 + $0x744] ss:$28 sps:$4 sm:$0xff]  }
 0x2c3   : > { %v2044_v0 = vpop.f32.mrf.mxu0  ;;  %5838 = vmatprep.subr.bf16.mxu1 %v8345_v57  ;;  %5881 = vmatprep.subr.bf16.mxu0 %v8348_v15  ;;  %v8397_v40 = vld [vmem:[#allocation11 + $0x3c0] ss:$28 sps:$4 sm:$0xff]   ;;  %v8405_v15 = vld [vmem:[#allocation11 + $0x38c] ss:$28 sps:$4 sm:$0xff]  }
 0x2c4   : > { %v2045_v32 = vadd.f32 %v2044_v0, %v9537_v43  ;;  %v8361_v43 = vld [vmem:[#allocation11 + $0x510] ss:$28 sps:$4 sm:$0xff]   ;;  %v8400_v57 = vld [vmem:[#allocation11 + $0x740] ss:$28 sps:$4 sm:$0xff]   ;;  %v8406_v0 = vld [vmem:[#allocation11 + $0x708] ss:$28 sps:$4 sm:$0xff]  }
 0x2c5   : > { %v2046_v4 = vpop.f32.mrf.mxu0 }
 0x2c6   : > { %5839 = vmatpush2.bf16.msra.mxu1 %v8343_v10  ;;  %5882 = vmatpush2.bf16.msra.mxu0 %v8346_v17  ;;  %v2047_v29 = vadd.f32 %v2046_v4, %v9539_v46  ;;  %v2061_v50 = vmax.f32 %v2045_v32, 0.0  ;;  %v8408_v10 = vld [vmem:[#allocation11 + $0x70c] ss:$28 sps:$4 sm:$0xff]   ;;  %v8421_v32 = vld [vmem:[#allocation11 + $0x660] ss:$28 sps:$4 sm:$0xff]  }
 0x2c7   : > { %v2048_v24 = vpop.f32.mrf.mxu0  ;;  %5840 = vmatprep.subr.bf16.mxu1 %v8351_v52  ;;  %5883 = vmatprep.subr.bf16.mxu0 %v8354_v7  ;;  %v8403_v17 = vld [vmem:[#allocation11 + $0x388] ss:$28 sps:$4 sm:$0xff]   ;;  %v8411_v52 = vld [vmem:[#allocation11 + $0x6d4] ss:$28 sps:$4 sm:$0xff]  }
 0x2c8   : > { %v2049_v30 = vadd.f32 %v2048_v24, %v9541_v49  ;;  %v2062_v47 = vmax.f32 %v2047_v29, 0.0  ;;  %v8414_v7 = vld [vmem:[#allocation11 + $0xa54] ss:$28 sps:$4 sm:$0xff]   ;;  %v8420_v24 = vld [vmem:[#allocation11 + $0xa1c] ss:$28 sps:$4 sm:$0xff]  }
 0x2c9   : > { %v2050_v33 = vpop.f32.mrf.mxu0  ;;  %v8409_v4 = vld [vmem:[#allocation11 + $0x6d0] ss:$28 sps:$4 sm:$0xff]   ;;  %v8423_v29 = vld [vmem:[#allocation11 + $0x664] ss:$28 sps:$4 sm:$0xff]  }
 0x2ca   : > { %v2051_v38 = vadd.f32 %v2050_v33, %v9543_v51  ;;  %5841 = vmatpush2.bf16.msra.mxu1 %v8349_v14  ;;  %5884 = vmatpush2.bf16.msra.mxu0 %v8352_v23  ;;  %v2071_v42 = vmax.f32 %v2049_v30, 0.0  ;;  %v8364_v51 = vld [vmem:[#allocation11 + $0x890] ss:$28 sps:$4 sm:$0xff]   ;;  %v8417_v23 = vld [vmem:[#allocation11 + $0x69c] ss:$28 sps:$4 sm:$0xff]  }
 0x2cb   : > { %5842 = vmatprep.subr.bf16.mxu1 %v8357_v26  ;;  %5885 = vmatprep.subr.bf16.mxu0 %v8360_v27  ;;  %v8412_v14 = vld [vmem:[#allocation11 + $0xa50] ss:$28 sps:$4 sm:$0xff]   ;;  %v8415_v26 = vld [vmem:[#allocation11 + $0x698] ss:$28 sps:$4 sm:$0xff]   ;;  %v8426_v30 = vld [vmem:[#allocation11 + $0x9e4] ss:$28 sps:$4 sm:$0xff]  }
 0x2cc   : > { %v2072_v48 = vmax.f32 %v2051_v38, 0.0  ;;  %v9592_v49 = vpack.c.bf16 %v2071_v42, %v2061_v50  ;;  %v8418_v27 = vld [vmem:[#allocation11 + $0xa18] ss:$28 sps:$4 sm:$0xff]   ;;  %v8424_v33 = vld [vmem:[#allocation11 + $0x9e0] ss:$28 sps:$4 sm:$0xff]  }
 0x2cd   : > { %v8429_v38 = vld [vmem:[#allocation11 + $0x62c] ss:$28 sps:$4 sm:$0xff]   ;;  %v8441_v50 = vld [vmem:[#allocation11 + $0x5bc] ss:$28 sps:$4 sm:$0xff]  }
 0x2ce   : > { %v9590_v46 = vpack.c.bf16 %v2072_v48, %v2062_v47  ;;  %5843 = vmatpush2.bf16.msra.mxu1 %v8355_v39  ;;  %5886 = vmatpush2.bf16.msra.mxu0 %v8358_v41  ;;  %v8432_v39 = vld [vmem:[#allocation11 + $0x9ac] ss:$28 sps:$4 sm:$0xff]  }
 0x2cf   : > { %5898 = vmatprep.subr.bf16.mxu1 %v8363_v44  ;;  %5941 = vmatprep.subr.bf16.mxu0 %v8366_v45  ;;  %v8427_v41 = vld [vmem:[#allocation11 + $0x628] ss:$28 sps:$4 sm:$0xff]   ;;  %v8435_v44 = vld [vmem:[#allocation11 + $0x5f4] ss:$28 sps:$4 sm:$0xff]  }
 0x2d0   : > { %5844 = vmatprep.mubr.bf16.mxu1 %v9590_v46  ;;  %v8430_v42 = vld [vmem:[#allocation11 + $0x9a8] ss:$28 sps:$4 sm:$0xff]   ;;  %v8438_v45 = vld [vmem:[#allocation11 + $0x974] ss:$28 sps:$4 sm:$0xff]  }
 0x2d1   : > { %5845 = vmatmul.mubr.bf16.vlgmr.msra.gmra.mxu1 %v9592_v49  ;;  %5888 = vmatmul.mubr.bf16.vlgmr.msra.gmra.mxu0 %v9557_v20  ;;  %v8433_v47 = vld [vmem:[#allocation11 + $0x5f0] ss:$28 sps:$4 sm:$0xff]  }
 0x2d2   : > { %5899 = vmatpush1.bf16.msra.mxu1 %v8361_v43  ;;  %5930 = vmatprep.mubr.bf16.mxu1 %v9555_v12  ;;  %v8436_v48 = vld [vmem:[#allocation11 + $0x970] ss:$28 sps:$4 sm:$0xff]   ;;  %v8444_v43 = vld [vmem:[#allocation11 + $0x93c] ss:$28 sps:$4 sm:$0xff]  }
 0x2d3   : > { %5942 = vmatpush1.bf16.msra.mxu0 %v8364_v51  ;;  %5973 = vmatprep.mubr.bf16.mxu0 %v9573_v11  ;;  %v8439_v51 = vld [vmem:[#allocation11 + $0x5b8] ss:$28 sps:$4 sm:$0xff]  }
 0x2d4   : > { %5900 = vmatprep.subr.bf16.mxu1 %v8369_v53  ;;  %5943 = vmatprep.subr.bf16.mxu0 %v8372_v55  ;;  %v8442_v53 = vld [vmem:[#allocation11 + $0x938] ss:$28 sps:$4 sm:$0xff]   ;;  %v8447_v55 = vld [vmem:[#allocation11 + $0x584] ss:$28 sps:$4 sm:$0xff]  }
 0x2d6   : > { %5901 = vmatpush1.bf16.msra.mxu1 %v8367_v56  ;;  %v8450_v56 = vld [vmem:[#allocation11 + $0x904] ss:$28 sps:$4 sm:$0xff]  }
 0x2d7   : > { %5944 = vmatpush1.bf16.msra.mxu0 %v8370_v58  ;;  %5902 = vmatprep.subr.bf16.mxu1 %v8375_v60  ;;  %v8445_v58 = vld [vmem:[#allocation11 + $0x580] ss:$28 sps:$4 sm:$0xff]  }
 0x2d8   : > { %5945 = vmatprep.subr.bf16.mxu0 %v8378_v61  ;;  %v8448_v60 = vld [vmem:[#allocation11 + $0x900] ss:$28 sps:$4 sm:$0xff]   ;;  %v8453_v61 = vld [vmem:[#allocation11 + $0x54c] ss:$28 sps:$4 sm:$0xff]  }
 0x2da   : > { %5903 = vmatpush1.bf16.msra.mxu1 %v8373_v62  ;;  %v8456_v62 = vld [vmem:[#allocation11 + $0x8cc] ss:$28 sps:$4 sm:$0xff]  }
 0x2db   : > { %5946 = vmatpush1.bf16.msra.mxu0 %v8376_v63  ;;  %5904 = vmatprep.subr.bf16.mxu1 %v8381_v1  ;;  %v8451_v63 = vld [vmem:[#allocation11 + $0x548] ss:$28 sps:$4 sm:$0xff]  }
 0x2dc   : > { %5947 = vmatprep.subr.bf16.mxu0 %v8384_v2  ;;  %v8454_v1 = vld [vmem:[#allocation11 + $0x8c8] ss:$28 sps:$4 sm:$0xff]   ;;  %v8459_v2 = vld [vmem:[#allocation11 + $0xc14] ss:$28 sps:$4 sm:$0xff]  }
 0x2de   : > { %5905 = vmatpush1.bf16.msra.mxu1 %v8379_v3  ;;  %v8462_v3 = vld [vmem:[#allocation11 + $0xf94] ss:$28 sps:$4 sm:$0xff]  }
 0x2df   : > { %5948 = vmatpush1.bf16.msra.mxu0 %v8382_v19  ;;  %5906 = vmatprep.subr.bf16.mxu1 %v8387_v5  ;;  %v8457_v19 = vld [vmem:[#allocation11 + $0xc10] ss:$28 sps:$4 sm:$0xff]  }
 0x2e0   : > { %5949 = vmatprep.subr.bf16.mxu0 %v8390_v31  ;;  %v8460_v5 = vld [vmem:[#allocation11 + $0xf90] ss:$28 sps:$4 sm:$0xff]   ;;  %v8465_v31 = vld [vmem:[#allocation11 + $0xbdc] ss:$28 sps:$4 sm:$0xff]  }
 0x2e2   : > { %5907 = vmatpush1.bf16.msra.mxu1 %v8385_v22  ;;  %v8468_v22 = vld [vmem:[#allocation11 + $0xf5c] ss:$28 sps:$4 sm:$0xff]  }
 0x2e3   : > { %5950 = vmatpush1.bf16.msra.mxu0 %v8388_v37  ;;  %5908 = vmatprep.subr.bf16.mxu1 %v8393_v6  ;;  %v8463_v37 = vld [vmem:[#allocation11 + $0xbd8] ss:$28 sps:$4 sm:$0xff]  }
 0x2e4   : > { %5951 = vmatprep.subr.bf16.mxu0 %v8396_v16  ;;  %v8466_v6 = vld [vmem:[#allocation11 + $0xf58] ss:$28 sps:$4 sm:$0xff]   ;;  %v8471_v16 = vld [vmem:[#allocation11 + $0xba4] ss:$28 sps:$4 sm:$0xff]  }
 0x2e6   : > { %5909 = vmatpush1.bf16.msra.mxu1 %v8391_v8  ;;  %v8474_v8 = vld [vmem:[#allocation11 + $0xf24] ss:$28 sps:$4 sm:$0xff]  }
 0x2e7   : > { %5952 = vmatpush1.bf16.msra.mxu0 %v8394_v28  ;;  %5910 = vmatprep.subr.bf16.mxu1 %v8399_v9  ;;  %v8469_v28 = vld [vmem:[#allocation11 + $0xba0] ss:$28 sps:$4 sm:$0xff]  }
 0x2e8   : > { %5953 = vmatprep.subr.bf16.mxu0 %v8402_v54  ;;  %v8472_v9 = vld [vmem:[#allocation11 + $0xf20] ss:$28 sps:$4 sm:$0xff]   ;;  %v8477_v54 = vld [vmem:[#allocation11 + $0xb6c] ss:$28 sps:$4 sm:$0xff]  }
 0x2ea   : > { %5911 = vmatpush1.bf16.msra.mxu1 %v8397_v40  ;;  %v8480_v40 = vld [vmem:[#allocation11 + $0xeec] ss:$28 sps:$4 sm:$0xff]  }
 0x2eb   : > { %5954 = vmatpush1.bf16.msra.mxu0 %v8400_v57  ;;  %5912 = vmatprep.subr.bf16.mxu1 %v8405_v15  ;;  %v8475_v57 = vld [vmem:[#allocation11 + $0xb68] ss:$28 sps:$4 sm:$0xff]  }
 0x2ec   : > { %5955 = vmatprep.subr.bf16.mxu0 %v8408_v10  ;;  %v8478_v15 = vld [vmem:[#allocation11 + $0xee8] ss:$28 sps:$4 sm:$0xff]   ;;  %v8483_v10 = vld [vmem:[#allocation11 + $0xb34] ss:$28 sps:$4 sm:$0xff]  }
 0x2ee   : > { %5913 = vmatpush1.bf16.msra.mxu1 %v8403_v17  ;;  %v8486_v17 = vld [vmem:[#allocation11 + $0xeb4] ss:$28 sps:$4 sm:$0xff]  }
 0x2ef   : > { %5956 = vmatpush1.bf16.msra.mxu0 %v8406_v0  ;;  %5914 = vmatprep.subr.bf16.mxu1 %v8411_v52  ;;  %v8481_v0 = vld [vmem:[#allocation11 + $0xb30] ss:$28 sps:$4 sm:$0xff]  }
 0x2f0   : > { %5957 = vmatprep.subr.bf16.mxu0 %v8414_v7  ;;  %v8484_v52 = vld [vmem:[#allocation11 + $0xeb0] ss:$28 sps:$4 sm:$0xff]   ;;  %v8489_v7 = vld [vmem:[#allocation11 + $0xafc] ss:$28 sps:$4 sm:$0xff]  }
 0x2f2   : > { %5915 = vmatpush2.bf16.msra.mxu1 %v8409_v4  ;;  %v8492_v4 = vld [vmem:[#allocation11 + $0xe7c] ss:$28 sps:$4 sm:$0xff]  }
 0x2f3   : > { %5958 = vmatpush2.bf16.msra.mxu0 %v8412_v14  ;;  %5916 = vmatprep.subr.bf16.mxu1 %v8417_v23  ;;  %v8487_v14 = vld [vmem:[#allocation11 + $0xaf8] ss:$28 sps:$4 sm:$0xff]  }
 0x2f4   : > { %5959 = vmatprep.subr.bf16.mxu0 %v8420_v24  ;;  %v8490_v23 = vld [vmem:[#allocation11 + $0xe78] ss:$28 sps:$4 sm:$0xff]   ;;  %v8495_v24 = vld [vmem:[#allocation11 + $0xac4] ss:$28 sps:$4 sm:$0xff]  }
 0x2f6   : > { %5917 = vmatpush2.bf16.msra.mxu1 %v8415_v26  ;;  %v8498_v26 = vld [vmem:[#allocation11 + $0xe44] ss:$28 sps:$4 sm:$0xff]  }
 0x2f7   : > { %5960 = vmatpush2.bf16.msra.mxu0 %v8418_v27  ;;  %5918 = vmatprep.subr.bf16.mxu1 %v8423_v29  ;;  %v8493_v27 = vld [vmem:[#allocation11 + $0xac0] ss:$28 sps:$4 sm:$0xff]  }
 0x2f8   : > { %5961 = vmatprep.subr.bf16.mxu0 %v8426_v30  ;;  %v8496_v29 = vld [vmem:[#allocation11 + $0xe40] ss:$28 sps:$4 sm:$0xff]   ;;  %v8501_v30 = vld [vmem:[#allocation11 + $0xa8c] ss:$28 sps:$4 sm:$0xff]  }
 0x2fa   : > { %5919 = vmatpush2.bf16.msra.mxu1 %v8421_v32  ;;  %v8504_v32 = vld [vmem:[#allocation11 + $0xe0c] ss:$28 sps:$4 sm:$0xff]  }
 0x2fb   : > { %5962 = vmatpush2.bf16.msra.mxu0 %v8424_v33  ;;  %5920 = vmatprep.subr.bf16.mxu1 %v8429_v38  ;;  %v8499_v33 = vld [vmem:[#allocation11 + $0xa88] ss:$28 sps:$4 sm:$0xff]  }
 0x2fc   : > { %5963 = vmatprep.subr.bf16.mxu0 %v8432_v39  ;;  %v8502_v38 = vld [vmem:[#allocation11 + $0xe08] ss:$28 sps:$4 sm:$0xff]   ;;  %v8507_v39 = vld [vmem:[#allocation11 + $0xdd4] ss:$28 sps:$4 sm:$0xff]  }
 0x2fe   : > { %5921 = vmatpush2.bf16.msra.mxu1 %v8427_v41  ;;  %v8510_v41 = vld [vmem:[#allocation11 + $0x1154] ss:$28 sps:$4 sm:$0xff]  }
 0x2ff   : > { %5964 = vmatpush2.bf16.msra.mxu0 %v8430_v42  ;;  %5922 = vmatprep.subr.bf16.mxu1 %v8435_v44  ;;  %v8505_v42 = vld [vmem:[#allocation11 + $0xdd0] ss:$28 sps:$4 sm:$0xff]  }
 0x300   : > { %5965 = vmatprep.subr.bf16.mxu0 %v8438_v45  ;;  %v8508_v44 = vld [vmem:[#allocation11 + $0x1150] ss:$28 sps:$4 sm:$0xff]   ;;  %v8513_v45 = vld [vmem:[#allocation11 + $0xd9c] ss:$28 sps:$4 sm:$0xff]  }
 0x302   : > { %5923 = vmatpush2.bf16.msra.mxu1 %v8433_v47  ;;  %v8516_v47 = vld [vmem:[#allocation11 + $0x111c] ss:$28 sps:$4 sm:$0xff]  }
 0x303   : > { %5966 = vmatpush2.bf16.msra.mxu0 %v8436_v48  ;;  %5924 = vmatprep.subr.bf16.mxu1 %v8441_v50  ;;  %v8511_v48 = vld [vmem:[#allocation11 + $0xd98] ss:$28 sps:$4 sm:$0xff]  }
 0x304   : > { %5967 = vmatprep.subr.bf16.mxu0 %v8444_v43  ;;  %v8514_v50 = vld [vmem:[#allocation11 + $0x1118] ss:$28 sps:$4 sm:$0xff]   ;;  %v8519_v43 = vld [vmem:[#allocation11 + $0xd64] ss:$28 sps:$4 sm:$0xff]  }
 0x306   : > { %5925 = vmatpush2.bf16.msra.mxu1 %v8439_v51  ;;  %v8522_v51 = vld [vmem:[#allocation11 + $0x10e4] ss:$28 sps:$4 sm:$0xff]  }
 0x307   : > { %5968 = vmatpush2.bf16.msra.mxu0 %v8442_v53  ;;  %5926 = vmatprep.subr.bf16.mxu1 %v8447_v55  ;;  %v8517_v53 = vld [vmem:[#allocation11 + $0xd60] ss:$28 sps:$4 sm:$0xff]  }
 0x308   : > { %5969 = vmatprep.subr.bf16.mxu0 %v8450_v56  ;;  %v8520_v55 = vld [vmem:[#allocation11 + $0x10e0] ss:$28 sps:$4 sm:$0xff]   ;;  %v8525_v56 = vld [vmem:[#allocation11 + $0xd2c] ss:$28 sps:$4 sm:$0xff]  }
 0x30a   : > { %5927 = vmatpush2.bf16.msra.mxu1 %v8445_v58  ;;  %v8528_v58 = vld [vmem:[#allocation11 + $0x10ac] ss:$28 sps:$4 sm:$0xff]  }
 0x30b   : > { %5970 = vmatpush2.bf16.msra.mxu0 %v8448_v60  ;;  %5928 = vmatprep.subr.bf16.mxu1 %v8453_v61  ;;  %v8523_v60 = vld [vmem:[#allocation11 + $0xd28] ss:$28 sps:$4 sm:$0xff]  }
 0x30c   : > { %5971 = vmatprep.subr.bf16.mxu0 %v8456_v62  ;;  %v8526_v61 = vld [vmem:[#allocation11 + $0x10a8] ss:$28 sps:$4 sm:$0xff]   ;;  %v8531_v62 = vld [vmem:[#allocation11 + $0xcf4] ss:$28 sps:$4 sm:$0xff]  }
 0x30e   : > { %5929 = vmatpush2.bf16.msra.mxu1 %v8451_v63  ;;  %v8534_v63 = vld [vmem:[#allocation11 + $0x1074] ss:$28 sps:$4 sm:$0xff]  }
 0x30f   : > { %5972 = vmatpush2.bf16.msra.mxu0 %v8454_v1  ;;  %5984 = vmatprep.subr.bf16.mxu1 %v8459_v2  ;;  %v8529_v1 = vld [vmem:[#allocation11 + $0xcf0] ss:$28 sps:$4 sm:$0xff]  }
 0x310   : > { %6027 = vmatprep.subr.bf16.mxu0 %v8462_v3  ;;  %v8532_v2 = vld [vmem:[#allocation11 + $0x1070] ss:$28 sps:$4 sm:$0xff]   ;;  %v8537_v3 = vld [vmem:[#allocation11 + $0xcbc] ss:$28 sps:$4 sm:$0xff]  }
 0x311   : > { %5931 = vmatmul.mubr.bf16.vlgmr.msra.gmra.mxu1 %v9559_v21 }
 0x312   : > { %5974 = vmatmul.mubr.bf16.vlgmr.msra.gmra.mxu0 %v9577_v13  ;;  %5985 = vmatpush1.bf16.msra.mxu1 %v8457_v19  ;;  %v8540_v19 = vld [vmem:[#allocation11 + $0x103c] ss:$28 sps:$4 sm:$0xff]  }
 0x313   : > { %6016 = vmatprep.mubr.bf16.mxu1 %v9575_v25  ;;  %6028 = vmatpush1.bf16.msra.mxu0 %v8460_v5  ;;  %v8535_v5 = vld [vmem:[#allocation11 + $0xcb8] ss:$28 sps:$4 sm:$0xff]  }
 0x314   : > { %6059 = vmatprep.mubr.bf16.mxu0 %v9590_v46  ;;  %5986 = vmatprep.subr.bf16.mxu1 %v8465_v31  ;;  %v8538_v31 = vld [vmem:[#allocation11 + $0x1038] ss:$28 sps:$4 sm:$0xff]  }
 0x315   : > { %6029 = vmatprep.subr.bf16.mxu0 %v8468_v22  ;;  %v8543_v22 = vld [vmem:[#allocation11 + $0xc84] ss:$28 sps:$4 sm:$0xff]  }
 0x316   : > { %5987 = vmatpush1.bf16.msra.mxu1 %v8463_v37  ;;  %v8546_v37 = vld [vmem:[#allocation11 + $0x1004] ss:$28 sps:$4 sm:$0xff]  }
 0x317   : > { %6030 = vmatpush1.bf16.msra.mxu0 %v8466_v6  ;;  %5988 = vmatprep.subr.bf16.mxu1 %v8471_v16  ;;  %v8541_v6 = vld [vmem:[#allocation11 + $0xc80] ss:$28 sps:$4 sm:$0xff]  }
 0x318   : > { %6031 = vmatprep.subr.bf16.mxu0 %v8474_v8  ;;  %v8544_v16 = vld [vmem:[#allocation11 + $0x1000] ss:$28 sps:$4 sm:$0xff]   ;;  %v8549_v8 = vld [vmem:[#allocation11 + $0xc4c] ss:$28 sps:$4 sm:$0xff]  }
 0x31a   : > { %5989 = vmatpush1.bf16.msra.mxu1 %v8469_v28  ;;  %v8552_v28 = vld [vmem:[#allocation11 + $0xfcc] ss:$28 sps:$4 sm:$0xff]  }
 0x31b   : > { %6032 = vmatpush1.bf16.msra.mxu0 %v8472_v9  ;;  %5990 = vmatprep.subr.bf16.mxu1 %v8477_v54  ;;  %v8547_v9 = vld [vmem:[#allocation11 + $0xc48] ss:$28 sps:$4 sm:$0xff]  }
 0x31c   : > { %6033 = vmatprep.subr.bf16.mxu0 %v8480_v40  ;;  %v8550_v54 = vld [vmem:[#allocation11 + $0xfc8] ss:$28 sps:$4 sm:$0xff]   ;;  %v8555_v40 = vld [vmem:[#allocation11 + $0x19c] ss:$28 sps:$4 sm:$0xff]  }
 0x31e   : > { %5991 = vmatpush1.bf16.msra.mxu1 %v8475_v57  ;;  %v8558_v57 = vld [vmem:[#allocation11 + $0x51c] ss:$28 sps:$4 sm:$0xff]  }
 0x31f   : > { %6034 = vmatpush1.bf16.msra.mxu0 %v8478_v15  ;;  %5992 = vmatprep.subr.bf16.mxu1 %v8483_v10  ;;  %v8553_v15 = vld [vmem:[#allocation11 + $0x198] ss:$28 sps:$4 sm:$0xff]  }
 0x320   : > { %6035 = vmatprep.subr.bf16.mxu0 %v8486_v17  ;;  %v8556_v10 = vld [vmem:[#allocation11 + $0x518] ss:$28 sps:$4 sm:$0xff]   ;;  %v8561_v17 = vld [vmem:[#allocation11 + $0x164] ss:$28 sps:$4 sm:$0xff]  }
 0x322   : > { %5993 = vmatpush1.bf16.msra.mxu1 %v8481_v0  ;;  %v8564_v0 = vld [vmem:[#allocation11 + $0x4e4] ss:$28 sps:$4 sm:$0xff]  }
 0x323   : > { %6036 = vmatpush1.bf16.msra.mxu0 %v8484_v52  ;;  %5994 = vmatprep.subr.bf16.mxu1 %v8489_v7  ;;  %v8559_v52 = vld [vmem:[#allocation11 + $0x160] ss:$28 sps:$4 sm:$0xff]  }
 0x324   : > { %6037 = vmatprep.subr.bf16.mxu0 %v8492_v4  ;;  %v8562_v7 = vld [vmem:[#allocation11 + $0x4e0] ss:$28 sps:$4 sm:$0xff]   ;;  %v8567_v4 = vld [vmem:[#allocation11 + $0x12c] ss:$28 sps:$4 sm:$0xff]  }
 0x326   : > { %5995 = vmatpush1.bf16.msra.mxu1 %v8487_v14  ;;  %v8570_v14 = vld [vmem:[#allocation11 + $0x4ac] ss:$28 sps:$4 sm:$0xff]  }
 0x327   : > { %6038 = vmatpush1.bf16.msra.mxu0 %v8490_v23  ;;  %5996 = vmatprep.subr.bf16.mxu1 %v8495_v24  ;;  %v8565_v23 = vld [vmem:[#allocation11 + $0x128] ss:$28 sps:$4 sm:$0xff]  }
 0x328   : > { %6039 = vmatprep.subr.bf16.mxu0 %v8498_v26  ;;  %v8568_v24 = vld [vmem:[#allocation11 + $0x4a8] ss:$28 sps:$4 sm:$0xff]   ;;  %v8573_v26 = vld [vmem:[#allocation11 + $0xf4] ss:$28 sps:$4 sm:$0xff]  }
 0x32a   : > { %5997 = vmatpush1.bf16.msra.mxu1 %v8493_v27  ;;  %v8576_v27 = vld [vmem:[#allocation11 + $0x474] ss:$28 sps:$4 sm:$0xff]  }
 0x32b   : > { %6040 = vmatpush1.bf16.msra.mxu0 %v8496_v29  ;;  %5998 = vmatprep.subr.bf16.mxu1 %v8501_v30  ;;  %v8571_v29 = vld [vmem:[#allocation11 + $0xf0] ss:$28 sps:$4 sm:$0xff]  }
 0x32c   : > { %6041 = vmatprep.subr.bf16.mxu0 %v8504_v32  ;;  %v8574_v30 = vld [vmem:[#allocation11 + $0x470] ss:$28 sps:$4 sm:$0xff]   ;;  %v8579_v32 = vld [vmem:[#allocation11 + $0xbc] ss:$28 sps:$4 sm:$0xff]  }
 0x32e   : > { %5999 = vmatpush1.bf16.msra.mxu1 %v8499_v33  ;;  %v8582_v33 = vld [vmem:[#allocation11 + $0x43c] ss:$28 sps:$4 sm:$0xff]  }
 0x32f   : > { %6042 = vmatpush1.bf16.msra.mxu0 %v8502_v38  ;;  %6000 = vmatprep.subr.bf16.mxu1 %v8507_v39  ;;  %v8577_v38 = vld [vmem:[#allocation11 + $0xb8] ss:$28 sps:$4 sm:$0xff]  }
 0x330   : > { %6043 = vmatprep.subr.bf16.mxu0 %v8510_v41  ;;  %v8580_v39 = vld [vmem:[#allocation11 + $0x438] ss:$28 sps:$4 sm:$0xff]   ;;  %v8585_v41 = vld [vmem:[#allocation11 + $0x84] ss:$28 sps:$4 sm:$0xff]  }
 0x332   : > { %6001 = vmatpush2.bf16.msra.mxu1 %v8505_v42  ;;  %v8588_v42 = vld [vmem:[#allocation11 + $0x404] ss:$28 sps:$4 sm:$0xff]  }
 0x333   : > { %6044 = vmatpush2.bf16.msra.mxu0 %v8508_v44  ;;  %6002 = vmatprep.subr.bf16.mxu1 %v8513_v45  ;;  %v8583_v44 = vld [vmem:[#allocation11 + $0x80] ss:$28 sps:$4 sm:$0xff]  }
 0x334   : > { %6045 = vmatprep.subr.bf16.mxu0 %v8516_v47  ;;  %v8586_v45 = vld [vmem:[#allocation11 + $0x400] ss:$28 sps:$4 sm:$0xff]   ;;  %v8591_v47 = vld [vmem:[#allocation11 + $0x4c] ss:$28 sps:$4 sm:$0xff]  }
 0x336   : > { %6003 = vmatpush2.bf16.msra.mxu1 %v8511_v48  ;;  %v8594_v48 = vld [vmem:[#allocation11 + $0x3cc] ss:$28 sps:$4 sm:$0xff]  }
 0x337   : > { %6046 = vmatpush2.bf16.msra.mxu0 %v8514_v50  ;;  %6004 = vmatprep.subr.bf16.mxu1 %v8519_v43  ;;  %v8589_v50 = vld [vmem:[#allocation11 + $0x48] ss:$28 sps:$4 sm:$0xff]  }
 0x338   : > { %6047 = vmatprep.subr.bf16.mxu0 %v8522_v51  ;;  %v8592_v43 = vld [vmem:[#allocation11 + $0x3c8] ss:$28 sps:$4 sm:$0xff]   ;;  %v8597_v51 = vld [vmem:[#allocation11 + $0x14] ss:$28 sps:$4 sm:$0xff]  }
 0x33a   : > { %6005 = vmatpush2.bf16.msra.mxu1 %v8517_v53  ;;  %v8600_v53 = vld [vmem:[#allocation11 + $0x394] ss:$28 sps:$4 sm:$0xff]  }
 0x33b   : > { %6048 = vmatpush2.bf16.msra.mxu0 %v8520_v55  ;;  %6006 = vmatprep.subr.bf16.mxu1 %v8525_v56  ;;  %v8595_v55 = vld [vmem:[#allocation11 + $0x10] ss:$28 sps:$4 sm:$0xff]  }
 0x33c   : > { %6049 = vmatprep.subr.bf16.mxu0 %v8528_v58  ;;  %v8598_v56 = vld [vmem:[#allocation11 + $0x390] ss:$28 sps:$4 sm:$0xff]   ;;  %v8603_v58 = vld [vmem:[#allocation11 + $0x35c] ss:$28 sps:$4 sm:$0xff]  }
 0x33e   : > { %6007 = vmatpush2.bf16.msra.mxu1 %v8523_v60  ;;  %v8606_v60 = vld [vmem:[#allocation11 + $0x6dc] ss:$28 sps:$4 sm:$0xff]  }
 0x33f   : > { %6050 = vmatpush2.bf16.msra.mxu0 %v8526_v61  ;;  %6008 = vmatprep.subr.bf16.mxu1 %v8531_v62  ;;  %v8601_v61 = vld [vmem:[#allocation11 + $0x358] ss:$28 sps:$4 sm:$0xff]  }
 0x340   : > { %6051 = vmatprep.subr.bf16.mxu0 %v8534_v63  ;;  %v8604_v62 = vld [vmem:[#allocation11 + $0x6d8] ss:$28 sps:$4 sm:$0xff]   ;;  %v8609_v63 = vld [vmem:[#allocation11 + $0x324] ss:$28 sps:$4 sm:$0xff]  }
 0x342   : > { %6009 = vmatpush2.bf16.msra.mxu1 %v8529_v1  ;;  %v8612_v1 = vld [vmem:[#allocation11 + $0x6a4] ss:$28 sps:$4 sm:$0xff]  }
 0x343   : > { %6052 = vmatpush2.bf16.msra.mxu0 %v8532_v2  ;;  %6010 = vmatprep.subr.bf16.mxu1 %v8537_v3  ;;  %v8607_v2 = vld [vmem:[#allocation11 + $0x320] ss:$28 sps:$4 sm:$0xff]  }
 0x344   : > { %6053 = vmatprep.subr.bf16.mxu0 %v8540_v19  ;;  %v8610_v3 = vld [vmem:[#allocation11 + $0x6a0] ss:$28 sps:$4 sm:$0xff]   ;;  %v8615_v19 = vld [vmem:[#allocation11 + $0x2ec] ss:$28 sps:$4 sm:$0xff]  }
 0x346   : > { %6011 = vmatpush2.bf16.msra.mxu1 %v8535_v5  ;;  %v8618_v5 = vld [vmem:[#allocation11 + $0x66c] ss:$28 sps:$4 sm:$0xff]  }
 0x347   : > { %6054 = vmatpush2.bf16.msra.mxu0 %v8538_v31  ;;  %6012 = vmatprep.subr.bf16.mxu1 %v8543_v22  ;;  %v5674_v31 = vpop.f32.mrf.mxu1  ;;  %v8613_v22 = vld [vmem:[#allocation11 + $0x2e8] ss:$28 sps:$4 sm:$0xff]  }
 0x348   : > { %6055 = vmatprep.subr.bf16.mxu0 %v8546_v37  ;;  %v8616_v37 = vld [vmem:[#allocation11 + $0x668] ss:$28 sps:$4 sm:$0xff]  }
 0x34a   : > { %6013 = vmatpush2.bf16.msra.mxu1 %v8541_v6  ;;  %v8621_v6 = vld [vmem:[#allocation11 + $0x2b4] ss:$28 sps:$4 sm:$0xff]  }
 0x34b   : > { %6056 = vmatpush2.bf16.msra.mxu0 %v8544_v16  ;;  %6014 = vmatprep.subr.bf16.mxu1 %v8549_v8  ;;  %v8624_v16 = vld [vmem:[#allocation11 + $0x634] ss:$28 sps:$4 sm:$0xff]   ;;  %v5676_v8 = vpop.f32.mrf.mxu1 }
 0x34c   : > { %6057 = vmatprep.subr.bf16.mxu0 %v8552_v28  ;;  %v8619_v28 = vld [vmem:[#allocation11 + $0x2b0] ss:$28 sps:$4 sm:$0xff]  }
 0x34e   : > { %6015 = vmatpush2.bf16.msra.mxu1 %v8547_v9  ;;  %v5717_v9 = vpop.f32.mrf.mxu0 }
 0x34f   : > { %6058 = vmatpush2.bf16.msra.mxu0 %v8550_v54  ;;  %6070 = vmatprep.subr.bf16.mxu1 %v8555_v40  ;;  %v8622_v54 = vld [vmem:[#allocation11 + $0x630] ss:$28 sps:$4 sm:$0xff]   ;;  %v8627_v40 = vld [vmem:[#allocation11 + $0x27c] ss:$28 sps:$4 sm:$0xff]  }
 0x350   : > { %6113 = vmatprep.subr.bf16.mxu0 %v8558_v57  ;;  %v8630_v57 = vld [vmem:[#allocation11 + $0x5fc] ss:$28 sps:$4 sm:$0xff]  }
 0x351   : > { %6017 = vmatmul.mubr.bf16.vlgmr.msra.gmra.mxu1 %v9579_v59 }
 0x352   : > { %6060 = vmatmul.mubr.bf16.vlgmr.msra.gmra.mxu0 %v9592_v49  ;;  %6071 = vmatpush1.bf16.msra.mxu1 %v8553_v15  ;;  %v5678_v15 = vpop.f32.mrf.mxu1 }
 0x353   : > { %6102 = vmatprep.mubr.bf16.mxu1 %v9553_v18  ;;  %6114 = vmatpush1.bf16.msra.mxu0 %v8556_v10  ;;  %v8625_v10 = vld [vmem:[#allocation11 + $0x278] ss:$28 sps:$4 sm:$0xff]  }
 0x354   : > { %6145 = vmatprep.mubr.bf16.mxu0 %v9555_v12  ;;  %6072 = vmatprep.subr.bf16.mxu1 %v8561_v17  ;;  %v9607_v17 = vld [vmem:[#allocation13] sm:$0xff] }
 0x355   : > { %6115 = vmatprep.subr.bf16.mxu0 %v8564_v0  ;;  %v5719_v0 = vpop.f32.mrf.mxu0 }
 0x356   : > { %6073 = vmatpush1.bf16.msra.mxu1 %v8559_v52  ;;  %v8628_v52 = vld [vmem:[#allocation11 + $0x5f8] ss:$28 sps:$4 sm:$0xff]  }
 0x357   : > { %6116 = vmatpush1.bf16.msra.mxu0 %v8562_v7  ;;  %6074 = vmatprep.subr.bf16.mxu1 %v8567_v4  ;;  %v8633_v7 = vld [vmem:[#allocation11 + $0x244] ss:$28 sps:$4 sm:$0xff]  }
 0x358   : > { %6117 = vmatprep.subr.bf16.mxu0 %v8570_v14  ;;  %v8636_v4 = vld [vmem:[#allocation11 + $0x5c4] ss:$28 sps:$4 sm:$0xff]   ;;  %v5680_v14 = vpop.f32.mrf.mxu1 }
 0x35a   : > { %6075 = vmatpush1.bf16.msra.mxu1 %v8565_v23  ;;  %v2728_v23 = vrot.slane %v9607_v17, %v455_v36  ;;  %v8640_v36 = vld [vmem:[#allocation11 + $0x588] ss:$28 sps:$4 sm:$0xff]  }
 0x35b   : > { %6118 = vmatpush1.bf16.msra.mxu0 %v8568_v24  ;;  %6076 = vmatprep.subr.bf16.mxu1 %v8573_v26  ;;  %v8631_v24 = vld [vmem:[#allocation11 + $0x240] ss:$28 sps:$4 sm:$0xff]   ;;  %v5721_v26 = vpop.f32.mrf.mxu0 }
 0x35c   : > { %6119 = vmatprep.subr.bf16.mxu0 %v8576_v27  ;;  %v5760_v27 = vpop.f32.mrf.mxu1 }
 0x35e   : > { %6077 = vmatpush1.bf16.msra.mxu1 %v8571_v29  ;;  %v8634_v29 = vld [vmem:[#allocation11 + $0x5c0] ss:$28 sps:$4 sm:$0xff]  }
 0x35f   : > { %6120 = vmatpush1.bf16.msra.mxu0 %v8574_v30  ;;  %6078 = vmatprep.subr.bf16.mxu1 %v8579_v32  ;;  %v8639_v30 = vld [vmem:[#allocation11 + $0x20c] ss:$28 sps:$4 sm:$0xff]   ;;  %v2732_v32 = vrot.slane %v9607_v17, %v459_v35 }
 0x360   : > { %6121 = vmatprep.subr.bf16.mxu0 %v8582_v33  ;;  %v8642_v33 = vld [vmem:[#allocation11 + $0x58c] ss:$28 sps:$4 sm:$0xff]  }
 0x362   : > { %6079 = vmatpush1.bf16.msra.mxu1 %v8577_v38  ;;  %v5675_v38 = vadd.f32 %v5674_v31, %v2728_v23 }
 0x363   : > { %6122 = vmatpush1.bf16.msra.mxu0 %v8580_v39  ;;  %6080 = vmatprep.subr.bf16.mxu1 %v8585_v41  ;;  %v8637_v39 = vld [vmem:[#allocation11 + $0x208] ss:$28 sps:$4 sm:$0xff]   ;;  %v5723_v41 = vpop.f32.mrf.mxu0 }
 0x364   : > { %6123 = vmatprep.subr.bf16.mxu0 %v8588_v42  ;;  %v5762_v42 = vpop.f32.mrf.mxu1 }
 0x366   : > { %6081 = vmatpush1.bf16.msra.mxu1 %v8583_v44  ;;  %v8645_v44 = vld [vmem:[#allocation11 + $0x1d4] ss:$28 sps:$4 sm:$0xff]   ;;  %v5764_v35 = vpop.f32.mrf.mxu1 }
 0x367   : > { %6124 = vmatpush1.bf16.msra.mxu0 %v8586_v45  ;;  %6082 = vmatprep.subr.bf16.mxu1 %v8591_v47  ;;  %v5677_v45 = vadd.f32 %v5676_v8, %v2732_v32  ;;  %v8648_v47 = vld [vmem:[#allocation11 + $0x554] ss:$28 sps:$4 sm:$0xff]   ;;  %v8660_v8 = vld [vmem:[#allocation11 + $0xbe4] ss:$28 sps:$4 sm:$0xff]  }
 0x368   : > { %6125 = vmatprep.subr.bf16.mxu0 %v8594_v48  ;;  %v5803_v48 = vpop.f32.mrf.mxu0 }
 0x36a   : > { %6083 = vmatpush1.bf16.msra.mxu1 %v8589_v50  ;;  %v5718_v50 = vadd.f32 %v5717_v9, %v5675_v38  ;;  %v8669_v38 = vld [vmem:[#allocation11 + $0x7f4] ss:$28 sps:$4 sm:$0xff]  }
 0x36b   : > { %6126 = vmatpush1.bf16.msra.mxu0 %v8592_v43  ;;  %6084 = vmatprep.subr.bf16.mxu1 %v8597_v51  ;;  %v5679_v43 = vadd.f32 %v5678_v15, %v2728_v23  ;;  %v8643_v51 = vld [vmem:[#allocation11 + $0x1d0] ss:$28 sps:$4 sm:$0xff]   ;;  %v8658_v15 = vld [vmem:[#allocation11 + $0xbe0] ss:$28 sps:$4 sm:$0xff]  }
 0x36c   : > { %6127 = vmatprep.subr.bf16.mxu0 %v8600_v53  ;;  %v8646_v53 = vld [vmem:[#allocation11 + $0x550] ss:$28 sps:$4 sm:$0xff]  }
 0x36e   : > { %6085 = vmatpush1.bf16.msra.mxu1 %v8595_v55  ;;  %v8651_v55 = vld [vmem:[#allocation11 + $0x89c] ss:$28 sps:$4 sm:$0xff]  }
 0x36f   : > { %6128 = vmatpush1.bf16.msra.mxu0 %v8598_v56  ;;  %6086 = vmatprep.subr.bf16.mxu1 %v8603_v58  ;;  %v5720_v56 = vadd.f32 %v5719_v0, %v5677_v45  ;;  %v5681_v58 = vadd.f32 %v5680_v14, %v2732_v32 }
 0x370   : > { %6129 = vmatprep.subr.bf16.mxu0 %v8606_v60  ;;  %v5761_v60 = vadd.f32 %v5760_v27, %v5718_v50  ;;  %v8675_v50 = vld [vmem:[#allocation11 + $0x7bc] ss:$28 sps:$4 sm:$0xff]  }
 0x372   : > { %6087 = vmatpush2.bf16.msra.mxu1 %v8601_v61  ;;  %v8654_v61 = vld [vmem:[#allocation11 + $0xc1c] ss:$28 sps:$4 sm:$0xff]   ;;  %v5804_v31 = vadd.f32 %v5803_v48, %v5761_v60  ;;  %v8670_v48 = vld [vmem:[#allocation11 + $0xb70] ss:$28 sps:$4 sm:$0xff]  }
 0x373   : > { %6130 = vmatpush2.bf16.msra.mxu0 %v8604_v62  ;;  %6088 = vmatprep.subr.bf16.mxu1 %v8609_v63  ;;  %v5805_v62 = vpop.f32.mrf.mxu0  ;;  %v5722_v63 = vadd.f32 %v5721_v26, %v5679_v43  ;;  %v8682_v60 = vld [vmem:[#allocation11 + $0xb00] ss:$28 sps:$4 sm:$0xff]  }
 0x374   : > { %6131 = vmatprep.subr.bf16.mxu0 %v8612_v1  ;;  %v5763_v1 = vadd.f32 %v5762_v42, %v5720_v56  ;;  %v8684_v56 = vld [vmem:[#allocation11 + $0xb04] ss:$28 sps:$4 sm:$0xff]  }
 0x376   : > { %6089 = vmatpush2.bf16.msra.mxu1 %v8607_v2  ;;  %v8649_v2 = vld [vmem:[#allocation11 + $0x898] ss:$28 sps:$4 sm:$0xff]  }
 0x377   : > { %6132 = vmatpush2.bf16.msra.mxu0 %v8610_v3  ;;  %6090 = vmatprep.subr.bf16.mxu1 %v8615_v19  ;;  %v5766_v3 = vpop.f32.mrf.mxu1  ;;  %v8652_v19 = vld [vmem:[#allocation11 + $0xc18] ss:$28 sps:$4 sm:$0xff]  }
 0x378   : > { %6133 = vmatprep.subr.bf16.mxu0 %v8618_v5  ;;  %v5724_v5 = vadd.f32 %v5723_v41, %v5681_v58  ;;  %v8679_v58 = vld [vmem:[#allocation11 + $0x780] ss:$28 sps:$4 sm:$0xff]  }
 0x37a   : > { %6091 = vmatpush2.bf16.msra.mxu1 %v8613_v22  ;;  %v5765_v22 = vadd.f32 %v5764_v35, %v5722_v63  ;;  %v5767_v9 = vadd.f32 %v5766_v3, %v5724_v5  ;;  %v8673_v35 = vld [vmem:[#allocation11 + $0x7b8] ss:$28 sps:$4 sm:$0xff]  }
 0x37b   : > { %6134 = vmatpush2.bf16.msra.mxu0 %v8616_v37  ;;  %6092 = vmatprep.subr.bf16.mxu1 %v8621_v6  ;;  %v8657_v37 = vld [vmem:[#allocation11 + $0x864] ss:$28 sps:$4 sm:$0xff]   ;;  %v5807_v6 = vpop.f32.mrf.mxu0  ;;  %v8693_v5 = vld [vmem:[#allocation11 + $0x714] ss:$28 sps:$4 sm:$0xff]  }
 0x37c   : > { %6135 = vmatprep.subr.bf16.mxu0 %v8624_v16  ;;  %v5808_v0 = vadd.f32 %v5807_v6, %v5765_v22  ;;  %v8696_v22 = vld [vmem:[#allocation11 + $0xa94] ss:$28 sps:$4 sm:$0xff]  }
 0x37d   : > { %v5809_v14 = vpop.f32.mrf.mxu0 }
 0x37e   : > { %6093 = vmatpush2.bf16.msra.mxu1 %v8619_v28  ;;  %v5806_v28 = vadd.f32 %v5805_v62, %v5763_v1  ;;  %v8690_v62 = vld [vmem:[#allocation11 + $0xacc] ss:$28 sps:$4 sm:$0xff]  }
 0x37f   : > { %6136 = vmatpush2.bf16.msra.mxu0 %v8622_v54  ;;  %6094 = vmatprep.subr.bf16.mxu1 %v8627_v40  ;;  %v8655_v40 = vld [vmem:[#allocation11 + $0x860] ss:$28 sps:$4 sm:$0xff]  }
 0x380   : > { %6137 = vmatprep.subr.bf16.mxu0 %v8630_v57 }
 0x382   : > { %6095 = vmatpush2.bf16.msra.mxu1 %v8625_v10  ;;  %v8663_v10 = vld [vmem:[#allocation11 + $0x82c] ss:$28 sps:$4 sm:$0xff]  }
 0x383   : > { %6138 = vmatpush2.bf16.msra.mxu0 %v8628_v52  ;;  %6096 = vmatprep.subr.bf16.mxu1 %v8633_v7 }
 0x384   : > { %6139 = vmatprep.subr.bf16.mxu0 %v8636_v4  ;;  %v8666_v4 = vld [vmem:[#allocation11 + $0xbac] ss:$28 sps:$4 sm:$0xff]  }
 0x386   : > { %6097 = vmatpush2.bf16.msra.mxu1 %v8631_v24  ;;  %v5810_v24 = vadd.f32 %v5809_v14, %v5767_v9  ;;  %v8699_v9 = vld [vmem:[#allocation11 + $0xa5c] ss:$28 sps:$4 sm:$0xff]   ;;  %v8714_v14 = vld [vmem:[#allocation11 + $0xd6c] ss:$28 sps:$4 sm:$0xff]  }
 0x387   : > { %6140 = vmatpush2.bf16.msra.mxu0 %v8634_v29  ;;  %6098 = vmatprep.subr.bf16.mxu1 %v8639_v30  ;;  %v8661_v30 = vld [vmem:[#allocation11 + $0x828] ss:$28 sps:$4 sm:$0xff]  }
 0x388   : > { %6141 = vmatprep.subr.bf16.mxu0 %v8642_v33  ;;  %v8664_v33 = vld [vmem:[#allocation11 + $0xba8] ss:$28 sps:$4 sm:$0xff]  }
 0x38a   : > { %6099 = vmatpush2.bf16.msra.mxu1 %v8637_v39 }
 0x38b   : > { %6142 = vmatpush2.bf16.msra.mxu0 %v8640_v36  ;;  %6100 = vmatprep.subr.bf16.mxu1 %v8645_v44  ;;  %v8672_v36 = vld [vmem:[#allocation11 + $0xb74] ss:$28 sps:$4 sm:$0xff]  }
 0x38c   : > { %6143 = vmatprep.subr.bf16.mxu0 %v8648_v47  ;;  %v8667_v47 = vld [vmem:[#allocation11 + $0x7f0] ss:$28 sps:$4 sm:$0xff]  }
 0x38e   : > { %6101 = vmatpush2.bf16.msra.mxu1 %v8643_v51  ;;  %v8678_v51 = vld [vmem:[#allocation11 + $0xb3c] ss:$28 sps:$4 sm:$0xff]  }
 0x38f   : > { %6144 = vmatpush2.bf16.msra.mxu0 %v8646_v53  ;;  %6156 = vmatprep.subr.bf16.mxu1 %v8651_v55  ;;  %v8676_v53 = vld [vmem:[#allocation11 + $0xb38] ss:$28 sps:$4 sm:$0xff]   ;;  %v8681_v55 = vld [vmem:[#allocation11 + $0x784] ss:$28 sps:$4 sm:$0xff]  }
 0x390   : > { %6199 = vmatprep.subr.bf16.mxu0 %v8654_v61  ;;  %v8687_v61 = vld [vmem:[#allocation11 + $0x74c] ss:$28 sps:$4 sm:$0xff]  }
 0x391   : > { %v5846_v16 = vpop.f32.mrf.mxu1  ;;  %6103 = vmatmul.mubr.bf16.vlgmr.msra.gmra.mxu1 %v9557_v20 }
 0x392   : > { %v5847_v54 = vadd.f32 %v5846_v16, %v5804_v31  ;;  %6146 = vmatmul.mubr.bf16.vlgmr.msra.gmra.mxu0 %v9559_v21  ;;  %6157 = vmatpush1.bf16.msra.mxu1 %v8649_v2  ;;  %v8685_v2 = vld [vmem:[#allocation11 + $0x748] ss:$28 sps:$4 sm:$0xff]   ;;  %v8691_v16 = vld [vmem:[#allocation11 + $0x710] ss:$28 sps:$4 sm:$0xff]  }
 0x393   : > { %6188 = vmatprep.mubr.bf16.mxu1 %v9573_v11  ;;  %6200 = vmatpush1.bf16.msra.mxu0 %v8652_v19  ;;  %v5848_v57 = vpop.f32.mrf.mxu1  ;;  %v8688_v19 = vld [vmem:[#allocation11 + $0xac8] ss:$28 sps:$4 sm:$0xff]  }
 0x394   : > { %v6490_v52 = vsub.f32 0.0, %v5847_v54  ;;  %6231 = vmatprep.mubr.bf16.mxu0 %v9575_v25  ;;  %v5849_v7 = vadd.f32 %v5848_v57, %v5806_v28  ;;  %6158 = vmatprep.subr.bf16.mxu1 %v8657_v37  ;;  %v8694_v28 = vld [vmem:[#allocation11 + $0xa90] ss:$28 sps:$4 sm:$0xff]   ;;  %v8697_v57 = vld [vmem:[#allocation11 + $0xa58] ss:$28 sps:$4 sm:$0xff]  }
 0x395   : > { %v5850_v23 = vpop.f32.mrf.mxu1  ;;  %6201 = vmatprep.subr.bf16.mxu0 %v8660_v8 }
 0x396   : > { %v6504_v26 = vmul.f32 1.442695, %v6490_v52  ;;  %v6491_v27 = vsub.f32 0.0, %v5849_v7  ;;  %v5851_v29 = vadd.f32 %v5850_v23, %v5808_v0  ;;  %6159 = vmatpush1.bf16.msra.mxu1 %v8655_v40  ;;  %v8702_v40 = vld [vmem:[#allocation11 + $0xddc] ss:$28 sps:$4 sm:$0xff]  }
 0x397   : > { %6202 = vmatpush1.bf16.msra.mxu0 %v8658_v15  ;;  %v5852_v32 = vpop.f32.mrf.mxu1  ;;  %6160 = vmatprep.subr.bf16.mxu1 %v8663_v10  ;;  %v8700_v15 = vld [vmem:[#allocation11 + $0xdd8] ss:$28 sps:$4 sm:$0xff]   ;;  %v8705_v10 = vld [vmem:[#allocation11 + $0xa24] ss:$28 sps:$4 sm:$0xff]  }
 0x398   : > { %8873 = vpow2.f32 %v6504_v26  ;;  %v6506_v39 = vmul.f32 1.442695, %v6491_v27  ;;  %v6497_v41 = vsub.f32 0.0, %v5851_v29  ;;  %v5853_v42 = vadd.f32 %v5852_v32, %v5810_v24  ;;  %6203 = vmatprep.subr.bf16.mxu0 %v8666_v4  ;;  %v8708_v0 = vld [vmem:[#allocation11 + $0xda4] ss:$28 sps:$4 sm:$0xff]  }
 0x399   : > { %v8703_v52 = vld [vmem:[#allocation11 + $0xa20] ss:$28 sps:$4 sm:$0xff]   ;;  %v8711_v4 = vld [vmem:[#allocation11 + $0x9ec] ss:$28 sps:$4 sm:$0xff]   ;;  %v8717_v29 = vld [vmem:[#allocation11 + $0x9b4] ss:$28 sps:$4 sm:$0xff]  }
 0x39a   : > { %8875 = vpow2.f32 %v6506_v39  ;;  %v6518_v44 = vmul.f32 1.442695, %v6497_v41  ;;  %v6498_v45 = vsub.f32 0.0, %v5853_v42  ;;  %6161 = vmatpush1.bf16.msra.mxu1 %v8661_v30  ;;  %v8706_v7 = vld [vmem:[#allocation11 + $0xda0] ss:$28 sps:$4 sm:$0xff]  }
 0x39b   : > { %6204 = vmatpush1.bf16.msra.mxu0 %v8664_v33  ;;  %6162 = vmatprep.subr.bf16.mxu1 %v8669_v38  ;;  %v8709_v24 = vld [vmem:[#allocation11 + $0x9e8] ss:$28 sps:$4 sm:$0xff]   ;;  %v8720_v32 = vld [vmem:[#allocation11 + $0xd34] ss:$28 sps:$4 sm:$0xff]   ;;  %v8723_v42 = vld [vmem:[#allocation11 + $0x97c] ss:$28 sps:$4 sm:$0xff]  }
 0x39c   : > { %8877 = vpow2.f32 %v6518_v44  ;;  %v6520_v43 = vmul.f32 1.442695, %v6498_v45  ;;  %6205 = vmatprep.subr.bf16.mxu0 %v8672_v36  ;;  %v8712_v27 = vld [vmem:[#allocation11 + $0xd68] ss:$28 sps:$4 sm:$0xff]   ;;  %v8715_v38 = vld [vmem:[#allocation11 + $0x9b0] ss:$28 sps:$4 sm:$0xff]  }
 0x39d   : > { %v8718_v41 = vld [vmem:[#allocation11 + $0xd30] ss:$28 sps:$4 sm:$0xff]   ;;  %v8726_v44 = vld [vmem:[#allocation11 + $0xcfc] ss:$28 sps:$4 sm:$0xff]  }
 0x39e   : > { %8879 = vpow2.f32 %v6520_v43  ;;  %6163 = vmatpush1.bf16.msra.mxu1 %v8667_v47  ;;  %v8721_v45 = vld [vmem:[#allocation11 + $0x978] ss:$28 sps:$4 sm:$0xff]   ;;  %v8727_v43 = vld [vmem:[#allocation11 + $0x940] ss:$28 sps:$4 sm:$0xff]  }
 0x39f   : > { %6206 = vmatpush1.bf16.msra.mxu0 %v8670_v48  ;;  %6164 = vmatprep.subr.bf16.mxu1 %v8675_v50  ;;  %v8724_v47 = vld [vmem:[#allocation11 + $0xcf8] ss:$28 sps:$4 sm:$0xff]   ;;  %v8729_v48 = vld [vmem:[#allocation11 + $0x944] ss:$28 sps:$4 sm:$0xff]  }
 0x3a0   : > { %6207 = vmatprep.subr.bf16.mxu0 %v8678_v51  ;;  %v8732_v50 = vld [vmem:[#allocation11 + $0xcc4] ss:$28 sps:$4 sm:$0xff]  }
 0x3a1   : > { %v8730_v51 = vld [vmem:[#allocation11 + $0xcc0] ss:$28 sps:$4 sm:$0xff]  }
 0x3a2   : > { %6165 = vmatpush1.bf16.msra.mxu1 %v8673_v35  ;;  %v8735_v35 = vld [vmem:[#allocation11 + $0x90c] ss:$28 sps:$4 sm:$0xff]  }
 0x3a3   : > { %6208 = vmatpush1.bf16.msra.mxu0 %v8676_v53  ;;  %6166 = vmatprep.subr.bf16.mxu1 %v8681_v55  ;;  %v8738_v53 = vld [vmem:[#allocation11 + $0xc8c] ss:$28 sps:$4 sm:$0xff]  }
 0x3a4   : > { %6209 = vmatprep.subr.bf16.mxu0 %v8684_v56  ;;  %v8733_v55 = vld [vmem:[#allocation11 + $0x908] ss:$28 sps:$4 sm:$0xff]  }
 0x3a5   : > { %v8874_v63 = vpop.eup %8873  ;;  %v8736_v56 = vld [vmem:[#allocation11 + $0xc88] ss:$28 sps:$4 sm:$0xff]  }
 0x3a6   : > { %v6532_v1 = vadd.f32 1.0, %v8874_v63  ;;  %6167 = vmatpush1.bf16.msra.mxu1 %v8679_v58  ;;  %v8741_v58 = vld [vmem:[#allocation11 + $0x8d4] ss:$28 sps:$4 sm:$0xff]   ;;  %v8747_v63 = vld [vmem:[#allocation11 + $0xf9c] ss:$28 sps:$4 sm:$0xff]  }
 0x3a7   : > { %v8876_v3 = vpop.eup %8875  ;;  %6210 = vmatpush1.bf16.msra.mxu0 %v8682_v60  ;;  %6168 = vmatprep.subr.bf16.mxu1 %v8687_v61  ;;  %v8744_v60 = vld [vmem:[#allocation11 + $0xc54] ss:$28 sps:$4 sm:$0xff]  }
 0x3a8   : > { %v6533_v31 = vadd.f32 1.0, %v8876_v3  ;;  %6211 = vmatprep.subr.bf16.mxu0 %v8690_v62  ;;  %8881 = vrcp.f32 %v6532_v1  ;;  %v8739_v61 = vld [vmem:[#allocation11 + $0x8d0] ss:$28 sps:$4 sm:$0xff]   ;;  %v8748_v1 = vld [vmem:[#allocation11 + $0x360] ss:$28 sps:$4 sm:$0xff]  }
 0x3a9   : > { %v8878_v37 = vpop.eup %8877  ;;  %v8742_v62 = vld [vmem:[#allocation11 + $0xc50] ss:$28 sps:$4 sm:$0xff]   ;;  %v8749_v3 = vld [vmem:[#allocation11 + $0x1a0] ss:$28 sps:$4 sm:$0xff]  }
 0x3aa   : > { %8883 = vrcp.f32 %v6533_v31  ;;  %v6539_v6 = vadd.f32 1.0, %v8878_v37  ;;  %6169 = vmatpush1.bf16.msra.mxu1 %v8685_v2  ;;  %v8745_v2 = vld [vmem:[#allocation11 + $0xf98] ss:$28 sps:$4 sm:$0xff]   ;;  %v8750_v31 = vld [vmem:[#allocation11 + $0xf60] ss:$28 sps:$4 sm:$0xff]  }
 0x3ab   : > { %v8880_v8 = vpop.eup %8879  ;;  %6212 = vmatpush1.bf16.msra.mxu0 %v8688_v19  ;;  %6170 = vmatprep.subr.bf16.mxu1 %v8693_v5  ;;  %v8752_v19 = vld [vmem:[#allocation11 + $0xf64] ss:$28 sps:$4 sm:$0xff]   ;;  %v8757_v37 = vld [vmem:[#allocation11 + $0xf2c] ss:$28 sps:$4 sm:$0xff]  }
 0x3ac   : > { %v6540_v54 = vadd.f32 1.0, %v8880_v8  ;;  %6213 = vmatprep.subr.bf16.mxu0 %v8696_v22  ;;  %8885 = vrcp.f32 %v6539_v6  ;;  %v8753_v5 = vld [vmem:[#allocation11 + $0x328] ss:$28 sps:$4 sm:$0xff]   ;;  %v8758_v6 = vld [vmem:[#allocation11 + $0x2f0] ss:$28 sps:$4 sm:$0xff]  }
 0x3ad   : > { %v8754_v22 = vld [vmem:[#allocation11 + $0x168] ss:$28 sps:$4 sm:$0xff]   ;;  %v8759_v8 = vld [vmem:[#allocation11 + $0x130] ss:$28 sps:$4 sm:$0xff]  }
 0x3ae   : > { %8887 = vrcp.f32 %v6540_v54  ;;  %6171 = vmatpush1.bf16.msra.mxu1 %v8691_v16  ;;  %v8755_v16 = vld [vmem:[#allocation11 + $0xf28] ss:$28 sps:$4 sm:$0xff]   ;;  %v8760_v54 = vld [vmem:[#allocation11 + $0xef0] ss:$28 sps:$4 sm:$0xff]  }
 0x3af   : > { %6214 = vmatpush1.bf16.msra.mxu0 %v8694_v28  ;;  %6172 = vmatprep.subr.bf16.mxu1 %v8699_v9  ;;  %v8762_v28 = vld [vmem:[#allocation11 + $0xef4] ss:$28 sps:$4 sm:$0xff]  }
 0x3b0   : > { %6215 = vmatprep.subr.bf16.mxu0 %v8702_v40  ;;  %v8763_v9 = vld [vmem:[#allocation11 + $0x2b8] ss:$28 sps:$4 sm:$0xff]  }
 0x3b1   : > { %v8764_v40 = vld [vmem:[#allocation11 + $0xf8] ss:$28 sps:$4 sm:$0xff]  }
 0x3b2   : > { %6173 = vmatpush2.bf16.msra.mxu1 %v8697_v57  ;;  %v8767_v57 = vld [vmem:[#allocation11 + $0xebc] ss:$28 sps:$4 sm:$0xff]  }
 0x3b3   : > { %6216 = vmatpush2.bf16.msra.mxu0 %v8700_v15  ;;  %6174 = vmatprep.subr.bf16.mxu1 %v8705_v10  ;;  %v8768_v15 = vld [vmem:[#allocation11 + $0x280] ss:$28 sps:$4 sm:$0xff]  }
 0x3b4   : > { %6217 = vmatprep.subr.bf16.mxu0 %v8708_v0  ;;  %v8769_v10 = vld [vmem:[#allocation11 + $0xc0] ss:$28 sps:$4 sm:$0xff]  }
 0x3b5   : > { %v8882_v23 = vpop.eup %8881  ;;  %v8772_v0 = vld [vmem:[#allocation11 + $0xe84] ss:$28 sps:$4 sm:$0xff]  }
 0x3b6   : > { %6175 = vmatpush2.bf16.msra.mxu1 %v8703_v52  ;;  %v8773_v52 = vld [vmem:[#allocation11 + $0x248] ss:$28 sps:$4 sm:$0xff]  }
 0x3b7   : > { %v8884_v26 = vpop.eup %8883  ;;  %6218 = vmatpush2.bf16.msra.mxu0 %v8706_v7  ;;  %6176 = vmatprep.subr.bf16.mxu1 %v8711_v4  ;;  %v8770_v7 = vld [vmem:[#allocation11 + $0xe80] ss:$28 sps:$4 sm:$0xff]   ;;  %v8774_v4 = vld [vmem:[#allocation11 + $0x88] ss:$28 sps:$4 sm:$0xff]  }
 0x3b8   : > { %v7557_v30 = vpack.c.bf16 %v8884_v26, %v8882_v23  ;;  %6219 = vmatprep.subr.bf16.mxu0 %v8714_v14  ;;  %v8777_v14 = vld [vmem:[#allocation11 + $0xe4c] ss:$28 sps:$4 sm:$0xff]  }
 0x3b9   : > { %v8886_v33 = vpop.eup %8885  ;;  %v8778_v23 = vld [vmem:[#allocation11 + $0x210] ss:$28 sps:$4 sm:$0xff]  }
 0x3ba   : > { %6604 = vst [vmem:[%s9620_s22] sm:$0xff] %v7557_v30  ;;  %6177 = vmatpush2.bf16.msra.mxu1 %v8709_v24  ;;  %v8775_v24 = vld [vmem:[#allocation11 + $0xe48] ss:$28 sps:$4 sm:$0xff]   ;;  %v8779_v26 = vld [vmem:[#allocation11 + $0x50] ss:$28 sps:$4 sm:$0xff]  }
 0x3bb   : > { %v8888_v39 = vpop.eup %8887  ;;  %6220 = vmatpush2.bf16.msra.mxu0 %v8712_v27  ;;  %6178 = vmatprep.subr.bf16.mxu1 %v8717_v29  ;;  %v8782_v27 = vld [vmem:[#allocation11 + $0xe14] ss:$28 sps:$4 sm:$0xff]  }
 0x3bc   : > { %v7561_v36 = vpack.c.bf16 %v8888_v39, %v8886_v33  ;;  %6221 = vmatprep.subr.bf16.mxu0 %v8720_v32  ;;  %v8783_v29 = vld [vmem:[#allocation11 + $0x1d8] ss:$28 sps:$4 sm:$0xff]   ;;  %v8780_v30 = vld [vmem:[#allocation11 + $0xe10] ss:$28 sps:$4 sm:$0xff]  }
 0x3bd   : > { %v8784_v32 = vld [vmem:[#allocation11 + $0x18] ss:$28 sps:$4 sm:$0xff]  }
 0x3be   : > { %6608 = vst [vmem:[%s9620_s22 + $0x1c] sm:$0xff] %v7561_v36  ;;  %6179 = vmatpush2.bf16.msra.mxu1 %v8715_v38  ;;  %v8787_v33 = vld [vmem:[#allocation11 + $0x115c] ss:$28 sps:$4 sm:$0xff]   ;;  %v8793_v36 = vld [vmem:[#allocation11 + $0xa28] ss:$28 sps:$4 sm:$0xff]  }
 0x3bf   : > { %6222 = vmatpush2.bf16.msra.mxu0 %v8718_v41  ;;  %6180 = vmatprep.subr.bf16.mxu1 %v8723_v42  ;;  %v8788_v38 = vld [vmem:[#allocation11 + $0xa60] ss:$28 sps:$4 sm:$0xff]   ;;  %v8785_v39 = vld [vmem:[#allocation11 + $0x1158] ss:$28 sps:$4 sm:$0xff]  }
 0x3c0   : > { %6223 = vmatprep.subr.bf16.mxu0 %v8726_v44  ;;  %v8789_v41 = vld [vmem:[#allocation11 + $0x8a0] ss:$28 sps:$4 sm:$0xff]  }
 0x3c1   : > { %v8792_v42 = vld [vmem:[#allocation11 + $0x1124] ss:$28 sps:$4 sm:$0xff]  }
 0x3c2   : > { %6181 = vmatpush2.bf16.msra.mxu1 %v8721_v45  ;;  %v8790_v44 = vld [vmem:[#allocation11 + $0x1120] ss:$28 sps:$4 sm:$0xff]   ;;  %v8794_v45 = vld [vmem:[#allocation11 + $0x868] ss:$28 sps:$4 sm:$0xff]  }
 0x3c3   : > { %6224 = vmatpush2.bf16.msra.mxu0 %v8724_v47  ;;  %6182 = vmatprep.subr.bf16.mxu1 %v8729_v48  ;;  %v8797_v47 = vld [vmem:[#allocation11 + $0x10ec] ss:$28 sps:$4 sm:$0xff]  }
 0x3c4   : > { %6225 = vmatprep.subr.bf16.mxu0 %v8732_v50  ;;  %v8798_v48 = vld [vmem:[#allocation11 + $0x9f0] ss:$28 sps:$4 sm:$0xff]   ;;  %v5889_v50 = vpop.f32.mrf.mxu0 }
 0x3c6   : > { %6183 = vmatpush2.bf16.msra.mxu1 %v8727_v43  ;;  %v8795_v43 = vld [vmem:[#allocation11 + $0x10e8] ss:$28 sps:$4 sm:$0xff]  }
 0x3c7   : > { %6226 = vmatpush2.bf16.msra.mxu0 %v8730_v51  ;;  %6184 = vmatprep.subr.bf16.mxu1 %v8735_v35  ;;  %v8799_v51 = vld [vmem:[#allocation11 + $0x830] ss:$28 sps:$4 sm:$0xff]  }
 0x3c8   : > { %6227 = vmatprep.subr.bf16.mxu0 %v8738_v53  ;;  %v8802_v35 = vld [vmem:[#allocation11 + $0x10b4] ss:$28 sps:$4 sm:$0xff]  }
 0x3c9   : > { %v8803_v53 = vld [vmem:[#allocation11 + $0x9b8] ss:$28 sps:$4 sm:$0xff]  }
 0x3ca   : > { %6185 = vmatpush2.bf16.msra.mxu1 %v8733_v55  ;;  %v8800_v55 = vld [vmem:[#allocation11 + $0x10b0] ss:$28 sps:$4 sm:$0xff]  }
 0x3cb   : > { %6228 = vmatpush2.bf16.msra.mxu0 %v8736_v56  ;;  %6186 = vmatprep.subr.bf16.mxu1 %v8741_v58  ;;  %v8807_v56 = vld [vmem:[#allocation11 + $0x107c] ss:$28 sps:$4 sm:$0xff]  }
 0x3cc   : > { %6229 = vmatprep.subr.bf16.mxu0 %v8744_v60  ;;  %v8808_v58 = vld [vmem:[#allocation11 + $0x980] ss:$28 sps:$4 sm:$0xff]  }
 0x3ce   : > { %6187 = vmatpush2.bf16.msra.mxu1 %v8739_v61  ;;  %v8805_v61 = vld [vmem:[#allocation11 + $0x1078] ss:$28 sps:$4 sm:$0xff]  }
 0x3cf   : > { %6230 = vmatpush2.bf16.msra.mxu0 %v8742_v62  ;;  %6242 = vmatprep.subr.bf16.mxu1 %v8747_v63  ;;  %v8809_v62 = vld [vmem:[#allocation11 + $0x7c0] ss:$28 sps:$4 sm:$0xff]  }
 0x3d0   : > { %7565 = vmatprep.subr.bf16.mxu0 %v8748_v1  ;;  %v8812_v63 = vld [vmem:[#allocation11 + $0x1044] ss:$28 sps:$4 sm:$0xff]  }
 0x3d1   : > { %6189 = vmatmul.mubr.bf16.vlgmr.msra.gmra.mxu1 %v9577_v13  ;;  %v8813_v1 = vld [vmem:[#allocation11 + $0x948] ss:$28 sps:$4 sm:$0xff]  }
 0x3d2   : > { %6232 = vmatmul.mubr.bf16.vlgmr.msra.gmra.mxu0 %v9579_v59  ;;  %6243 = vmatpush1.bf16.msra.mxu1 %v8745_v2  ;;  %v2735_v2 = vsub.s32 2, %v9483_v34 }
 0x3d3   : > { %6274 = vmatprep.mubr.bf16.mxu1 %v9590_v46  ;;  %7566 = vmatpush3.bf16.msra.mxu0 %v8749_v3 }
 0x3d4   : > { %6317 = vmatprep.mubr.bf16.mxu0 %v9553_v18  ;;  %6244 = vmatprep.subr.bf16.mxu1 %v8752_v19  ;;  %v8765_v18 = vld [vmem:[#allocation11 + $0xeb8] ss:$28 sps:$4 sm:$0xff]   ;;  %v8810_v19 = vld [vmem:[#allocation11 + $0x1040] ss:$28 sps:$4 sm:$0xff]  }
 0x3d5   : > { %7567 = vmatprep.subr.bf16.mxu0 %v8753_v5  ;;  %v5932_v5 = vpop.f32.mrf.mxu1 }
 0x3d6   : > { %6245 = vmatpush1.bf16.msra.mxu1 %v8750_v31  ;;  %v8814_v31 = vld [vmem:[#allocation11 + $0x788] ss:$28 sps:$4 sm:$0xff]  }
 0x3d7   : > { %7568 = vmatpush3.bf16.msra.mxu0 %v8754_v22  ;;  %6246 = vmatprep.subr.bf16.mxu1 %v8757_v37  ;;  %v8817_v22 = vld [vmem:[#allocation11 + $0x100c] ss:$28 sps:$4 sm:$0xff]   ;;  %v2739_v37 = vsub.s32 3, %v9483_v34 }
 0x3d8   : > { %7569 = vmatprep.subr.bf16.mxu0 %v8758_v6 }
 0x3da   : > { %6247 = vmatpush1.bf16.msra.mxu1 %v8755_v16  ;;  %v8818_v16 = vld [vmem:[#allocation11 + $0x910] ss:$28 sps:$4 sm:$0xff]  }
 0x3db   : > { %7570 = vmatpush3.bf16.msra.mxu0 %v8759_v8  ;;  %6248 = vmatprep.subr.bf16.mxu1 %v8762_v28  ;;  %v2736_v8 = vrot.slane %v9607_v17, %v2735_v2  ;;  %v8815_v28 = vld [vmem:[#allocation11 + $0x1008] ss:$28 sps:$4 sm:$0xff]  }
 0x3dc   : > { %7571 = vmatprep.subr.bf16.mxu0 %v8763_v9  ;;  %v5934_v9 = vpop.f32.mrf.mxu1 }
 0x3de   : > { %6249 = vmatpush1.bf16.msra.mxu1 %v8760_v54  ;;  %v8819_v54 = vld [vmem:[#allocation11 + $0x750] ss:$28 sps:$4 sm:$0xff]  }
 0x3df   : > { %7572 = vmatpush3.bf16.msra.mxu0 %v8764_v40  ;;  %6250 = vmatprep.subr.bf16.mxu1 %v8767_v57  ;;  %v8822_v40 = vld [vmem:[#allocation11 + $0xfd4] ss:$28 sps:$4 sm:$0xff]   ;;  %v2740_v57 = vrot.slane %v9607_v17, %v2739_v37  ;;  %v8827_v17 = vld [vmem:[#allocation11 + $0x520] ss:$28 sps:$4 sm:$0xff]  }
 0x3e0   : > { %7573 = vmatprep.subr.bf16.mxu0 %v8768_v15  ;;  %v8838_v37 = vld [vmem:[#allocation11 + $0x10b8] ss:$28 sps:$4 sm:$0xff]  }
 0x3e2   : > { %6251 = vmatpush1.bf16.msra.mxu1 %v8765_v18  ;;  %v8823_v18 = vld [vmem:[#allocation11 + $0x8d8] ss:$28 sps:$4 sm:$0xff]  }
 0x3e3   : > { %7574 = vmatpush3.bf16.msra.mxu0 %v8769_v10  ;;  %6252 = vmatprep.subr.bf16.mxu1 %v8772_v0  ;;  %v5890_v10 = vadd.f32 %v5889_v50, %v2736_v8  ;;  %v8820_v0 = vld [vmem:[#allocation11 + $0xfd0] ss:$28 sps:$4 sm:$0xff]  }
 0x3e4   : > { %7575 = vmatprep.subr.bf16.mxu0 %v8773_v52  ;;  %v5936_v52 = vpop.f32.mrf.mxu1 }
 0x3e6   : > { %6253 = vmatpush1.bf16.msra.mxu1 %v8770_v7  ;;  %v8824_v7 = vld [vmem:[#allocation11 + $0x718] ss:$28 sps:$4 sm:$0xff]  }
 0x3e7   : > { %7576 = vmatpush3.bf16.msra.mxu0 %v8774_v4  ;;  %6254 = vmatprep.subr.bf16.mxu1 %v8777_v14  ;;  %v8825_v4 = vld [vmem:[#allocation11 + $0x6e0] ss:$28 sps:$4 sm:$0xff]  }
 0x3e8   : > { %7577 = vmatprep.subr.bf16.mxu0 %v8778_v23  ;;  %v5933_v23 = vadd.f32 %v5932_v5, %v5890_v10 }
 0x3ea   : > { %6255 = vmatpush1.bf16.msra.mxu1 %v8775_v24 }
 0x3eb   : > { %7578 = vmatpush3.bf16.msra.mxu0 %v8779_v26  ;;  %6256 = vmatprep.subr.bf16.mxu1 %v8782_v27  ;;  %v8826_v26 = vld [vmem:[#allocation11 + $0x1160] ss:$28 sps:$4 sm:$0xff]  }
 0x3ec   : > { %7579 = vmatprep.subr.bf16.mxu0 %v8783_v29 }
 0x3ee   : > { %6257 = vmatpush1.bf16.msra.mxu1 %v8780_v30  ;;  %v5938_v30 = vpop.f32.mrf.mxu1 }
 0x3ef   : > { %7580 = vmatpush3.bf16.msra.mxu0 %v8784_v32  ;;  %6258 = vmatprep.subr.bf16.mxu1 %v8787_v33  ;;  %v8828_v32 = vld [vmem:[#allocation11 + $0xfa0] ss:$28 sps:$4 sm:$0xff]  }
 0x3f0   : > { %7609 = vmatprep.subr.bf16.mxu0 %v8788_v38 }
 0x3f2   : > { %6318 = vmatmul.mubr.bf16.vlgmr.msra.gmra.mxu0 %v9557_v20  ;;  %6259 = vmatpush2.bf16.msra.mxu1 %v8785_v39  ;;  %v5891_v20 = vpop.f32.mrf.mxu0 }
 0x3f3   : > { %7610 = vmatpush3.bf16.msra.mxu0 %v8789_v41  ;;  %6399 = vmatprep.mubr.bf16.mxu0 %v9573_v11  ;;  %v8804_v11 = vld [vmem:[#allocation11 + $0x7f8] ss:$28 sps:$4 sm:$0xff]   ;;  %v5892_v14 = vadd.f32 %v5891_v20, %v2740_v57 }
 0x3f4   : > { %6260 = vmatprep.subr.bf16.mxu1 %v8792_v42  ;;  %7611 = vmatprep.subr.bf16.mxu0 %v8793_v36  ;;  %v5893_v60 = vpop.f32.mrf.mxu0  ;;  %v8829_v42 = vld [vmem:[#allocation11 + $0x6a8] ss:$28 sps:$4 sm:$0xff]  }
 0x3f5   : > { %v5894_v27 = vadd.f32 %v5893_v60, %v2736_v8  ;;  %v5935_v29 = vadd.f32 %v5934_v9, %v5892_v14  ;;  %v8839_v9 = vld [vmem:[#allocation11 + $0x478] ss:$28 sps:$4 sm:$0xff]   ;;  %v8847_v14 = vld [vmem:[#allocation11 + $0x408] ss:$28 sps:$4 sm:$0xff]  }
 0x3f6   : > { %6261 = vmatpush2.bf16.msra.mxu1 %v8790_v44  ;;  %v5895_v3 = vpop.f32.mrf.mxu0  ;;  %v8830_v44 = vld [vmem:[#allocation11 + $0x1128] ss:$28 sps:$4 sm:$0xff]  }
 0x3f7   : > { %7612 = vmatpush3.bf16.msra.mxu0 %v8794_v45  ;;  %6262 = vmatprep.subr.bf16.mxu1 %v8797_v47  ;;  %v5896_v33 = vadd.f32 %v5895_v3, %v2740_v57  ;;  %v5937_v39 = vadd.f32 %v5936_v52, %v5894_v27  ;;  %v8836_v3 = vld [vmem:[#allocation11 + $0xf30] ss:$28 sps:$4 sm:$0xff]   ;;  %v8844_v52 = vld [vmem:[#allocation11 + $0xec0] ss:$28 sps:$4 sm:$0xff]  }
 0x3f8   : > { %7613 = vmatprep.subr.bf16.mxu0 %v8798_v48  ;;  %v5975_v6 = vpop.f32.mrf.mxu0  ;;  %v8851_v27 = vld [vmem:[#allocation11 + $0x3d0] ss:$28 sps:$4 sm:$0xff]  }
 0x3f9   : > { %v5976_v38 = vadd.f32 %v5975_v6, %v5933_v23  ;;  %v5939_v47 = vadd.f32 %v5938_v30, %v5896_v33  ;;  %v8848_v23 = vld [vmem:[#allocation11 + $0xe88] ss:$28 sps:$4 sm:$0xff]   ;;  %v8853_v30 = vld [vmem:[#allocation11 + $0x558] ss:$28 sps:$4 sm:$0xff]  }
 0x3fa   : > { %6263 = vmatpush2.bf16.msra.mxu1 %v8795_v43  ;;  %v5977_v15 = vpop.f32.mrf.mxu0  ;;  %v8831_v43 = vld [vmem:[#allocation11 + $0x4e8] ss:$28 sps:$4 sm:$0xff]   ;;  %v8854_v33 = vld [vmem:[#allocation11 + $0xfd8] ss:$28 sps:$4 sm:$0xff]  }
 0x3fb   : > { %7614 = vmatpush3.bf16.msra.mxu0 %v8799_v51  ;;  %6264 = vmatprep.subr.bf16.mxu1 %v8802_v35  ;;  %v5978_v45 = vadd.f32 %v5977_v15, %v5935_v29  ;;  %v8832_v35 = vld [vmem:[#allocation11 + $0xf68] ss:$28 sps:$4 sm:$0xff]  }
 0x3fc   : > { %7615 = vmatprep.subr.bf16.mxu0 %v8803_v53  ;;  %v5979_v24 = vpop.f32.mrf.mxu0  ;;  %v8833_v53 = vld [vmem:[#allocation11 + $0x670] ss:$28 sps:$4 sm:$0xff]  }
 0x3fd   : > { %v5980_v20 = vadd.f32 %v5979_v24, %v5937_v39  ;;  %v8849_v24 = vld [vmem:[#allocation11 + $0x590] ss:$28 sps:$4 sm:$0xff]  }
 0x3fe   : > { %6265 = vmatpush2.bf16.msra.mxu1 %v8800_v55  ;;  %v5981_v41 = vpop.f32.mrf.mxu0 }
 0x3ff   : > { %7616 = vmatpush3.bf16.msra.mxu0 %v8804_v11  ;;  %6266 = vmatprep.subr.bf16.mxu1 %v8807_v56 }
 0x400   : > { %7617 = vmatprep.subr.bf16.mxu0 %v8808_v58  ;;  %v8834_v58 = vld [vmem:[#allocation11 + $0x10f0] ss:$28 sps:$4 sm:$0xff]  }
 0x402   : > { %6267 = vmatpush2.bf16.msra.mxu1 %v8805_v61  ;;  %v5982_v61 = vadd.f32 %v5981_v41, %v5939_v47  ;;  %v8855_v41 = vld [vmem:[#allocation11 + $0x398] ss:$28 sps:$4 sm:$0xff]  }
 0x403   : > { %7618 = vmatpush3.bf16.msra.mxu0 %v8809_v62  ;;  %6268 = vmatprep.subr.bf16.mxu1 %v8812_v63 }
 0x404   : > { %7619 = vmatprep.subr.bf16.mxu0 %v8813_v1 }
 0x406   : > { %6269 = vmatpush2.bf16.msra.mxu1 %v8810_v19  ;;  %v8837_v19 = vld [vmem:[#allocation11 + $0x638] ss:$28 sps:$4 sm:$0xff]  }
 0x407   : > { %7620 = vmatpush3.bf16.msra.mxu0 %v8814_v31  ;;  %6270 = vmatprep.subr.bf16.mxu1 %v8817_v22 }
 0x408   : > { %7621 = vmatprep.subr.bf16.mxu0 %v8818_v16 }
 0x40a   : > { %6271 = vmatpush2.bf16.msra.mxu1 %v8815_v28 }
 0x40b   : > { %7622 = vmatpush3.bf16.msra.mxu0 %v8819_v54  ;;  %6272 = vmatprep.subr.bf16.mxu1 %v8822_v40  ;;  %v8840_v54 = vld [vmem:[#allocation11 + $0xef8] ss:$28 sps:$4 sm:$0xff]   ;;  %v8841_v40 = vld [vmem:[#allocation11 + $0x600] ss:$28 sps:$4 sm:$0xff]  }
 0x40c   : > { %7623 = vmatprep.subr.bf16.mxu0 %v8823_v18  ;;  %v8842_v18 = vld [vmem:[#allocation11 + $0x1080] ss:$28 sps:$4 sm:$0xff]  }
 0x40e   : > { %6273 = vmatpush2.bf16.msra.mxu1 %v8820_v0  ;;  %v8843_v0 = vld [vmem:[#allocation11 + $0x440] ss:$28 sps:$4 sm:$0xff]  }
 0x40f   : > { %7624 = vmatpush3.bf16.msra.mxu0 %v8824_v7  ;;  %7587 = vmatprep.subr.bf16.mxu1 %v8825_v4  ;;  %v8845_v7 = vld [vmem:[#allocation11 + $0x5c8] ss:$28 sps:$4 sm:$0xff]  }
 0x410   : > { %7653 = vmatprep.subr.bf16.mxu0 %v8826_v26  ;;  %v8846_v4 = vld [vmem:[#allocation11 + $0x1048] ss:$28 sps:$4 sm:$0xff]   ;;  %v8850_v26 = vld [vmem:[#allocation11 + $0x1010] ss:$28 sps:$4 sm:$0xff]  }
 0x411   : > { %v6018_v36 = vpop.f32.mrf.mxu1  ;;  %6275 = vmatmul.mubr.bf16.vlgmr.msra.gmra.mxu1 %v9592_v49 }
 0x412   : > { %v6019_v48 = vadd.f32 %v6018_v36, %v5976_v38  ;;  %v6061_v50 = vpop.f32.mrf.mxu0  ;;  %6400 = vmatmul.mubr.bf16.vlgmr.msra.gmra.mxu0 %v9577_v13  ;;  %7588 = vmatpush3.bf16.msra.mxu1 %v8827_v17  ;;  %v8852_v17 = vld [vmem:[#allocation11 + $0xe50] ss:$28 sps:$4 sm:$0xff]   ;;  %v8856_v36 = vld [vmem:[#allocation11 + $0xe18] ss:$28 sps:$4 sm:$0xff]  }
 0x413   : > { %6358 = vmatprep.mubr.bf16.mxu1 %v9555_v12  ;;  %7654 = vmatpush3.bf16.msra.mxu0 %v8828_v32  ;;  %v6020_v51 = vpop.f32.mrf.mxu1  ;;  %v8835_v12 = vld [vmem:[#allocation11 + $0x4b0] ss:$28 sps:$4 sm:$0xff]  }
 0x414   : > { %v6062_v55 = vadd.f32 %v6061_v50, %v6019_v48  ;;  %6481 = vmatprep.mubr.bf16.mxu0 %v9590_v46  ;;  %v6021_v11 = vadd.f32 %v6020_v51, %v5978_v45  ;;  %v6063_v56 = vpop.f32.mrf.mxu0  ;;  %7589 = vmatprep.subr.bf16.mxu1 %v8829_v42  ;;  %v8858_v50 = vld [vmem:[#allocation11 + $0xc20] ss:$28 sps:$4 sm:$0xff]   ;;  %v8860_v51 = vld [vmem:[#allocation11 + $0xbe8] ss:$28 sps:$4 sm:$0xff]  }
 0x415   : > { %v6022_v60 = vpop.f32.mrf.mxu1  ;;  %7655 = vmatprep.subr.bf16.mxu0 %v8830_v44  ;;  %v8857_v44 = vld [vmem:[#allocation11 + $0xde0] ss:$28 sps:$4 sm:$0xff]  }
 0x416   : > { %v6492_v13 = vsub.f32 0.0, %v6062_v55  ;;  %v6064_v62 = vadd.f32 %v6063_v56, %v6021_v11  ;;  %v6023_v63 = vadd.f32 %v6022_v60, %v5980_v20  ;;  %v6065_v1 = vpop.f32.mrf.mxu0  ;;  %7590 = vmatpush3.bf16.msra.mxu1 %v8831_v43  ;;  %v8859_v43 = vld [vmem:[#allocation11 + $0xda8] ss:$28 sps:$4 sm:$0xff]   ;;  %v8863_v20 = vld [vmem:[#allocation11 + $0xd38] ss:$28 sps:$4 sm:$0xff]  }
 0x417   : > { %7656 = vmatpush3.bf16.msra.mxu0 %v8832_v35  ;;  %v6024_v2 = vpop.f32.mrf.mxu1  ;;  %7591 = vmatprep.subr.bf16.mxu1 %v8833_v53  ;;  %v8861_v35 = vld [vmem:[#allocation11 + $0xd70] ss:$28 sps:$4 sm:$0xff]  }
 0x418   : > { %v6508_v5 = vmul.f32 1.442695, %v6492_v13  ;;  %v6493_v46 = vsub.f32 0.0, %v6064_v62  ;;  %v6066_v31 = vadd.f32 %v6065_v1, %v6023_v63  ;;  %v6025_v22 = vadd.f32 %v6024_v2, %v5982_v61  ;;  %7657 = vmatprep.subr.bf16.mxu0 %v8834_v58  ;;  %v6067_v6 = vpop.f32.mrf.mxu0  ;;  %v8862_v53 = vld [vmem:[#allocation11 + $0xbb0] ss:$28 sps:$4 sm:$0xff]  }
 0x419   : > { %v8864_v58 = vld [vmem:[#allocation11 + $0xb78] ss:$28 sps:$4 sm:$0xff]   ;;  %v8867_v13 = vld [vmem:[#allocation11 + $0xcc8] ss:$28 sps:$4 sm:$0xff]   ;;  %v8869_v63 = vld [vmem:[#allocation11 + $0xc90] ss:$28 sps:$4 sm:$0xff]  }
 0x41a   : > { %8889 = vpow2.f32 %v6508_v5  ;;  %v6510_v16 = vmul.f32 1.442695, %v6493_v46  ;;  %v6499_v8 = vsub.f32 0.0, %v6066_v31  ;;  %v6068_v28 = vadd.f32 %v6067_v6, %v6025_v22  ;;  %7592 = vmatpush3.bf16.msra.mxu1 %v8835_v12  ;;  %v8868_v62 = vld [vmem:[#allocation11 + $0xb08] ss:$28 sps:$4 sm:$0xff]  }
 0x41b   : > { %7658 = vmatpush3.bf16.msra.mxu0 %v8836_v3  ;;  %7593 = vmatprep.subr.bf16.mxu1 %v8837_v19  ;;  %v8870_v1 = vld [vmem:[#allocation11 + $0xad0] ss:$28 sps:$4 sm:$0xff]   ;;  %v8871_v12 = vld [vmem:[#allocation11 + $0xc58] ss:$28 sps:$4 sm:$0xff]   ;;  %v2743_v31 = vsub.s32 4, %v9483_v34 }
 0x41c   : > { %8891 = vpow2.f32 %v6510_v16  ;;  %v6522_v57 = vmul.f32 1.442695, %v6499_v8  ;;  %v6500_v15 = vsub.f32 0.0, %v6068_v28  ;;  %7659 = vmatprep.subr.bf16.mxu0 %v8838_v37  ;;  %v8872_v2 = vld [vmem:[#allocation11 + $0xa98] ss:$28 sps:$4 sm:$0xff]   ;;  %v2747_v37 = vsub.s32 5, %v9483_v34 }
 0x41d   : > { %v9646_v16 = vld [vmem:[#allocation13] sm:$0xff] }
 0x41e   : > { %8893 = vpow2.f32 %v6522_v57  ;;  %v6524_v10 = vmul.f32 1.442695, %v6500_v15  ;;  %7594 = vmatpush3.bf16.msra.mxu1 %v8839_v9  ;;  %v2744_v8 = vrot.slane %v9646_v16, %v2743_v31 }
 0x41f   : > { %7660 = vmatpush3.bf16.msra.mxu0 %v8840_v54  ;;  %7595 = vmatprep.subr.bf16.mxu1 %v8841_v40  ;;  %v2748_v54 = vrot.slane %v9646_v16, %v2747_v37 }
 0x420   : > { %8895 = vpow2.f32 %v6524_v10  ;;  %7661 = vmatprep.subr.bf16.mxu0 %v8842_v18 }
 0x422   : > { %7596 = vmatpush3.bf16.msra.mxu1 %v8843_v0 }
 0x423   : > { %7662 = vmatpush3.bf16.msra.mxu0 %v8844_v52  ;;  %7597 = vmatprep.subr.bf16.mxu1 %v8845_v7 }
 0x424   : > { %7663 = vmatprep.subr.bf16.mxu0 %v8846_v4 }
 0x426   : > { %7598 = vmatpush3.bf16.msra.mxu1 %v8847_v14 }
 0x427   : > { %v8890_v29 = vpop.eup %8889  ;;  %7664 = vmatpush3.bf16.msra.mxu0 %v8848_v23  ;;  %7599 = vmatprep.subr.bf16.mxu1 %v8849_v24 }
 0x428   : > { %v6534_v32 = vadd.f32 1.0, %v8890_v29  ;;  %7665 = vmatprep.subr.bf16.mxu0 %v8850_v26 }
 0x429   : > { %v8892_v38 = vpop.eup %8891 }
 0x42a   : > { %v6535_v39 = vadd.f32 1.0, %v8892_v38  ;;  %7600 = vmatpush3.bf16.msra.mxu1 %v8851_v27  ;;  %8897 = vrcp.f32 %v6534_v32 }
 0x42b   : > { %v8894_v42 = vpop.eup %8893  ;;  %7666 = vmatpush3.bf16.msra.mxu0 %v8852_v17  ;;  %7601 = vmatprep.subr.bf16.mxu1 %v8853_v30 }
 0x42c   : > { %8899 = vrcp.f32 %v6535_v39  ;;  %v6541_v45 = vadd.f32 1.0, %v8894_v42  ;;  %7667 = vmatprep.subr.bf16.mxu0 %v8854_v33 }
 0x42d   : > { %v8896_v47 = vpop.eup %8895 }
 0x42e   : > { %v6542_v48 = vadd.f32 1.0, %v8896_v47  ;;  %7602 = vmatpush3.bf16.msra.mxu1 %v8855_v41  ;;  %8901 = vrcp.f32 %v6541_v45 }
 0x42f   : > { %7668 = vmatpush3.bf16.msra.mxu0 %v8856_v36  ;;  %7631 = vmatprep.subr.bf16.mxu1 %v8857_v44 }
 0x430   : > { %8903 = vrcp.f32 %v6542_v48 }
 0x431   : > { %6359 = vmatmul.mubr.bf16.vlgmr.msra.gmra.mxu1 %v9559_v21  ;;  %v8865_v21 = vld [vmem:[#allocation11 + $0xd00] ss:$28 sps:$4 sm:$0xff]  }
 0x432   : > { %6482 = vmatmul.mubr.bf16.vlgmr.msra.gmra.mxu0 %v9592_v49  ;;  %7632 = vmatpush3.bf16.msra.mxu1 %v8858_v50 }
 0x433   : > { %6440 = vmatprep.mubr.bf16.mxu1 %v9575_v25  ;;  %7633 = vmatprep.subr.bf16.mxu1 %v8859_v43  ;;  %v8866_v25 = vld [vmem:[#allocation11 + $0xb40] ss:$28 sps:$4 sm:$0xff]  }
 0x436   : > { %7634 = vmatpush3.bf16.msra.mxu1 %v8860_v51 }
 0x437   : > { %7635 = vmatprep.subr.bf16.mxu1 %v8861_v35  ;;  %v8898_v55 = vpop.eup %8897 }
 0x439   : > { %v8900_v11 = vpop.eup %8899 }
 0x43a   : > { %v7558_v56 = vpack.c.bf16 %v8900_v11, %v8898_v55  ;;  %7636 = vmatpush3.bf16.msra.mxu1 %v8862_v53 }
 0x43b   : > { %7637 = vmatprep.subr.bf16.mxu1 %v8863_v20  ;;  %v8902_v49 = vpop.eup %8901 }
 0x43c   : > { %6605 = vst [vmem:[%s9620_s22 + $0x8] sm:$0xff] %v7558_v56 }
 0x43d   : > { %v8904_v60 = vpop.eup %8903 }
 0x43e   : > { %v7562_v61 = vpack.c.bf16 %v8904_v60, %v8902_v49  ;;  %7638 = vmatpush3.bf16.msra.mxu1 %v8864_v58 }
 0x43f   : > { %7639 = vmatprep.subr.bf16.mxu1 %v8865_v21 }
 0x440   : > { %6609 = vst [vmem:[%s9620_s22 + $0x24] sm:$0xff] %v7562_v61 }
 0x442   : > { %7640 = vmatpush3.bf16.msra.mxu1 %v8866_v25 }
 0x443   : > { %7641 = vmatprep.subr.bf16.mxu1 %v8867_v13 }
 0x446   : > { %7642 = vmatpush3.bf16.msra.mxu1 %v8868_v62 }
 0x447   : > { %7643 = vmatprep.subr.bf16.mxu1 %v8869_v63 }
 0x44a   : > { %7644 = vmatpush3.bf16.msra.mxu1 %v8870_v1 }
 0x44b   : > { %7645 = vmatprep.subr.bf16.mxu1 %v8871_v12 }
 0x44e   : > { %7646 = vmatpush3.bf16.msra.mxu1 %v8872_v2 }
 0x451   : > { %6441 = vmatmul.mubr.bf16.vlgmr.msra.gmra.mxu1 %v9579_v59  ;;  %v6104_v3 = vpop.f32.mrf.mxu1 }
 0x452   : > { %v6147_v5 = vpop.f32.mrf.mxu0  ;;  %v6105_v40 = vadd.f32 %v6104_v3, %v2744_v8 }
 0x453   : > { %v6106_v19 = vpop.f32.mrf.mxu1 }
 0x454   : > { %v6149_v22 = vpop.f32.mrf.mxu0  ;;  %v6107_v15 = vadd.f32 %v6106_v19, %v2748_v54  ;;  %v6148_v10 = vadd.f32 %v6147_v5, %v6105_v40 }
 0x455   : > { %v6108_v46 = vpop.f32.mrf.mxu1 }
 0x456   : > { %v6151_v28 = vpop.f32.mrf.mxu0  ;;  %v6109_v0 = vadd.f32 %v6108_v46, %v2744_v8  ;;  %v6150_v7 = vadd.f32 %v6149_v22, %v6107_v15 }
 0x457   : > { %v6110_v6 = vpop.f32.mrf.mxu1 }
 0x458   : > { %v6153_v59 = vpop.f32.mrf.mxu0  ;;  %v6111_v4 = vadd.f32 %v6110_v6, %v2748_v54  ;;  %v6152_v24 = vadd.f32 %v6151_v28, %v6109_v0 }
 0x45a   : > { %v6154_v29 = vadd.f32 %v6153_v59, %v6111_v4  ;;  %v2751_v59 = vsub.s32 6, %v9483_v34 }
 0x491   : > { %v6190_v9 = vpop.f32.mrf.mxu1 }
 0x492   : > { %v6233_v18 = vpop.f32.mrf.mxu0  ;;  %v6191_v14 = vadd.f32 %v6190_v9, %v6148_v10 }
 0x493   : > { %v6192_v57 = vpop.f32.mrf.mxu1 }
 0x494   : > { %v6235_v23 = vpop.f32.mrf.mxu0  ;;  %v6193_v26 = vadd.f32 %v6192_v57, %v6150_v7  ;;  %v6234_v17 = vadd.f32 %v6233_v18, %v6191_v14  ;;  %v2752_v18 = vrot.slane %v9646_v16, %v2751_v59 }
 0x495   : > { %v6194_v52 = vpop.f32.mrf.mxu1 }
 0x496   : > { %v6195_v30 = vadd.f32 %v6194_v52, %v6152_v24  ;;  %v6237_v32 = vpop.f32.mrf.mxu0  ;;  %v6236_v38 = vadd.f32 %v6235_v23, %v6193_v26 }
 0x497   : > { %v6196_v27 = vpop.f32.mrf.mxu1 }
 0x498   : > { %v6197_v39 = vadd.f32 %v6196_v27, %v6154_v29  ;;  %v6238_v36 = vadd.f32 %v6237_v32, %v6195_v30  ;;  %v6239_v47 = vpop.f32.mrf.mxu0 }
 0x49a   : > { %v6240_v50 = vadd.f32 %v6239_v47, %v6197_v39 }
 0x4b2   : > { %v7581_v12 = vpop.f32.mrf.mxu0 }
 0x4b4   : > { %v7582_v2 = vpop.f32.mrf.mxu0 }
 0x4b5   : > { %v7583_v10 = vadd.f32 %v7582_v2, %v7581_v12 }
 0x4b6   : > { %v7584_v5 = vpop.f32.mrf.mxu0 }
 0x4b7   : > { %v6320_v4 = vadd.f32 %v7583_v10, %v2752_v18 }
 0x4b8   : > { %v7585_v37 = vpop.f32.mrf.mxu0 }
 0x4b9   : > { %v7586_v14 = vadd.f32 %v7585_v37, %v7584_v5 }
 0x4bb   : > { %v6323_v29 = vadd.f32 %v7586_v14, %v2752_v18 }
 0x4d1   : > { %v6276_v33 = vpop.f32.mrf.mxu1 }
 0x4d2   : > { %v6277_v41 = vadd.f32 %v6276_v33, %v6234_v17  ;;  %v7625_v8 = vpop.f32.mrf.mxu0 }
 0x4d3   : > { %v6278_v42 = vpop.f32.mrf.mxu1 }
 0x4d4   : > { %v6494_v44 = vsub.f32 0.0, %v6277_v41  ;;  %v6279_v45 = vadd.f32 %v6278_v42, %v6236_v38  ;;  %v7626_v28 = vpop.f32.mrf.mxu0 }
 0x4d5   : > { %v6280_v48 = vpop.f32.mrf.mxu1  ;;  %v7627_v17 = vadd.f32 %v7626_v28, %v7625_v8 }
 0x4d6   : > { %v6512_v43 = vmul.f32 1.442695, %v6494_v44  ;;  %v6495_v51 = vsub.f32 0.0, %v6279_v45  ;;  %v6281_v35 = vadd.f32 %v6280_v48, %v6238_v36  ;;  %v7628_v54 = vpop.f32.mrf.mxu0 }
 0x4d7   : > { %v6282_v53 = vpop.f32.mrf.mxu1 }
 0x4d8   : > { %8905 = vpow2.f32 %v6512_v43  ;;  %v6514_v20 = vmul.f32 1.442695, %v6495_v51  ;;  %v6501_v55 = vsub.f32 0.0, %v6281_v35  ;;  %v6283_v11 = vadd.f32 %v6282_v53, %v6240_v50  ;;  %v7629_v57 = vpop.f32.mrf.mxu0 }
 0x4d9   : > { %v7630_v41 = vadd.f32 %v7629_v57, %v7628_v54 }
 0x4da   : > { %8907 = vpow2.f32 %v6514_v20  ;;  %v6526_v56 = vmul.f32 1.442695, %v6501_v55  ;;  %v6502_v58 = vsub.f32 0.0, %v6283_v11 }
 0x4dc   : > { %8909 = vpow2.f32 %v6526_v56  ;;  %v6528_v21 = vmul.f32 1.442695, %v6502_v58 }
 0x4de   : > { %8911 = vpow2.f32 %v6528_v21 }
 0x4e5   : > { %v8906_v49 = vpop.eup %8905 }
 0x4e6   : > { %v6536_v60 = vadd.f32 1.0, %v8906_v49 }
 0x4e7   : > { %v8908_v61 = vpop.eup %8907 }
 0x4e8   : > { %v6537_v25 = vadd.f32 1.0, %v8908_v61  ;;  %8913 = vrcp.f32 %v6536_v60 }
 0x4e9   : > { %v8910_v13 = vpop.eup %8909 }
 0x4ea   : > { %8915 = vrcp.f32 %v6537_v25  ;;  %v6543_v62 = vadd.f32 1.0, %v8910_v13 }
 0x4eb   : > { %v8912_v63 = vpop.eup %8911 }
 0x4ec   : > { %v6544_v1 = vadd.f32 1.0, %v8912_v63  ;;  %8917 = vrcp.f32 %v6543_v62 }
 0x4ee   : > { %8919 = vrcp.f32 %v6544_v1 }
 0x4f1   : > { %v7603_v9 = vpop.f32.mrf.mxu1 }
 0x4f2   : > { %v7669_v0 = vpop.f32.mrf.mxu0 }
 0x4f3   : > { %v7604_v40 = vpop.f32.mrf.mxu1 }
 0x4f4   : > { %v7605_v52 = vadd.f32 %v7604_v40, %v7603_v9  ;;  %v7670_v23 = vpop.f32.mrf.mxu0 }
 0x4f5   : > { %v8914_v3 = vpop.eup %8913  ;;  %v7606_v15 = vpop.f32.mrf.mxu1  ;;  %v7671_v16 = vadd.f32 %v7670_v23, %v7669_v0 }
 0x4f6   : > { %v6361_v24 = vadd.f32 %v7605_v52, %v6320_v4  ;;  %v7672_v30 = vpop.f32.mrf.mxu0 }
 0x4f7   : > { %v8916_v19 = vpop.eup %8915  ;;  %v7607_v7 = vpop.f32.mrf.mxu1 }
 0x4f8   : > { %v7559_v46 = vpack.c.bf16 %v8916_v19, %v8914_v3  ;;  %v7608_v26 = vadd.f32 %v7607_v7, %v7606_v15  ;;  %v6402_v34 = vadd.f32 %v7627_v17, %v6361_v24  ;;  %v7673_v36 = vpop.f32.mrf.mxu0 }
 0x4f9   : > { %v8918_v31 = vpop.eup %8917  ;;  %v7674_v50 = vadd.f32 %v7673_v36, %v7672_v30 }
 0x4fa   : > { %6606 = vst [vmem:[%s9620_s22 + $0x10] sm:$0xff] %v7559_v46  ;;  %v6364_v33 = vadd.f32 %v7608_v26, %v6323_v29 }
 0x4fb   : > { %v8920_v22 = vpop.eup %8919 }
 0x4fc   : > { %v7563_v6 = vpack.c.bf16 %v8920_v22, %v8918_v31  ;;  %v6405_v47 = vadd.f32 %v7630_v41, %v6364_v33 }
 0x4fe   : > { %6610 = vst [vmem:[%s9620_s22 + $0x2c] sm:$0xff] %v7563_v6 }
 0x511   : > { %v7647_v27 = vpop.f32.mrf.mxu1 }
 0x513   : > { %v7648_v32 = vpop.f32.mrf.mxu1 }
 0x514   : > { %v7649_v38 = vadd.f32 %v7648_v32, %v7647_v27 }
 0x515   : > { %v7650_v39 = vpop.f32.mrf.mxu1 }
 0x516   : > { %v6443_v42 = vadd.f32 %v7649_v38, %v6402_v34 }
 0x517   : > { %v7651_v44 = vpop.f32.mrf.mxu1 }
 0x518   : > { %v6484_v45 = vadd.f32 %v7671_v16, %v6443_v42  ;;  %v7652_v48 = vadd.f32 %v7651_v44, %v7650_v39 }
 0x51a   : > { %v6496_v43 = vsub.f32 0.0, %v6484_v45  ;;  %v6446_v51 = vadd.f32 %v7652_v48, %v6405_v47 }
 0x51c   : > { %v6516_v35 = vmul.f32 1.442695, %v6496_v43  ;;  %v6487_v53 = vadd.f32 %v7674_v50, %v6446_v51 }
 0x51e   : > { %8921 = vpow2.f32 %v6516_v35  ;;  %v6503_v20 = vsub.f32 0.0, %v6487_v53 }
 0x520   : > { %v6530_v55 = vmul.f32 1.442695, %v6503_v20 }
 0x522   : > { %8923 = vpow2.f32 %v6530_v55 }
 0x52b   : > { %v8922_v11 = vpop.eup %8921 }
 0x52c   : > { %v6538_v56 = vadd.f32 1.0, %v8922_v11 }
 0x52e   : > { %8925 = vrcp.f32 %v6538_v56 }
 0x52f   : > { %v8924_v58 = vpop.eup %8923 }
 0x530   : > { %v6545_v21 = vadd.f32 1.0, %v8924_v58 }
 0x532   : > { %8927 = vrcp.f32 %v6545_v21 }
 0x53b   : > { %v8926_v49 = vpop.eup %8925 }
 0x53c   : > { %v7560_v60 = vpack.c.bf16 %v8926_v49, %v8926_v49 }
 0x53e   : > { %6607 = vst [vmem:[%s9620_s22 + $0x18] sm:$0xf] %v7560_v60 }
 0x53f   : > { %v8928_v61 = vpop.eup %8927 }
 0x540   : > { %v7564_v25 = vpack.c.bf16 %v8928_v61, %v8928_v61 }
 0x542   : > { %6611 = vst [vmem:[%s9620_s22 + $0x34] sm:$0xf] %v7564_v25 }
 0x543   : > { %9127 = shalt.err (!%p9124_p1)
}
 0x544   : > { %s9128_s17 = scalar_lea.hbm %s9660_s3, 896  ;;  %s9132_s26 = scalar_lea.hbm %s9714_s8, 1792 }
 0x545   : > { %p9129_p3 = scmp.ne.s32.totalorder %s9660_s3, %s9128_s17  ;;  %p9133_p10 = scmp.lt.s32.totalorder %s9660_s3, %s9714_s8 }
 0x546   : > { %p9134_p11 = scmp.lt.s32.totalorder %s9132_s26, %s9128_s17 }
 0x547   : > { %p9130_p4 = pnand %p9129_p3, %p9744_p0 }
 0x548   : > { %p9135_p12 = por %p9134_p11, %p9133_p10 }
 0x549   : > { %p9131_p9 = pneg %p9130_p4 }
 0x54b   : > { %p9136_p13 = pnand %p9135_p12, %p9131_p9 }
 0x54d   : > { %9139 = shalt.err (!%p9136_p13)
}
 0x54e   : > { %s9207_s2 = smov 448   ;;  %s9208_s24 = smov 28  }
 0x54f   : > { %7703 = dma.vmem_to_hbm [thread:$0]  (%p9744_p0), %s9662_s14, 896, %s9660_s3, %s6613_s9, %s9207_s2, %s9207_s2, %s9208_s24  }
 0x550 PF: > { %s6642_s18 = sand.u32 1, %s9178_s27   ;;  %p9745_p2 = scmp.ne.s32.totalorder %s9732_s19, 0 }
 0x551   : > { %p9746_p5 = scmp.ge.s32.totalorder %s9190_s30, 2  ;;  %s6643_s11 = scalar_lea.sflag [#allocation4], %s6642_s18 }
 0x553   : > { %p7729_p8 = pnand %p9746_p5, %p9745_p2 }
 0x555   : > { %p7730_p7 = pneg %p7729_p8 }
 0x557   : > { %9173 = dma.done.wait (%p7730_p7), %s6643_s11, 896  }
 0x558   : > { %9175 = vsyncadd (%p7730_p7), %s6643_s11, 4294966400  ;;  %p24_p6 = scmp.ge.s32.totalorder %s9362_s15, 4   ;;  %s9747_s27 = smov %s9182_s28 }
 0x559   : > { %s9748_s28 = smov %s9186_s29  ;;  %s9749_s29 = smov %s9373_s10 }
 0x55a   : > { %s9750_s30 = smov %s9362_s15  ;;  %26 = sbr.rel (!%p24_p6) target bundleno = 11 (0xb), region = 124 }
 0x55f   :  { %6648 = vsyncpa [#allocation3], 1 }
 0x560   :  { %6650 = vsyncpa [#allocation3 + $0x1], 1 }
 0x561   :  { %6651 = vsyncpa [#allocation6], 1 }
 0x562   :  { %6652 = vsyncpa [#allocation9], 1 }
 0x563   :  { %6653 = vsyncpa [#allocation12], 1 }
 0x564   :  { %6654 = vsyncpa [#allocation4], 1 }
 0x565   :  { %6656 = vsyncpa [#allocation4 + $0x1], 1 }

</bundles_post_ra>
